<compile_context>
chip_gen: v7x
topology: tpu7x:2x2x1
jax: 0.10.0
libtpu: 0.0.40
codegen_flags: <defaults>
</compile_context>

<pallas_src>
import numpy as np
import jax
import jax.numpy as jnp
from jax.experimental import pallas as pl
from jax.experimental.pallas import tpu as pltpu

NUM_NODES = 32
NUM_NODE_FEATURES = 25   # forced by Linear(32*11, 2*32): 25 -7+1 -5+1 -5+1 = 11
EMBED_DIM = 32
TOPK = 15
BN_EPS = 1e-5

# conv stack geometry
L0 = NUM_NODE_FEATURES          # 25
L1, C1, K1 = L0 - 7 + 1, 8, 7   # 19
L2, C2, K2 = L1 - 5 + 1, 16, 5  # 15
L3, C3, K3 = L2 - 5 + 1, 32, 5  # 11
LIN_IN, LIN_OUT = C3 * L3, 2 * EMBED_DIM  # 352, 64

_HI = jax.lax.Precision.HIGHEST


# ----------------------------- Pallas kernel ----------------------------- #
def conv_embed_kernel(x_ref,
                      w1_ref, b1_ref, g1_ref, be1_ref, s1_ref, c1_ref,
                      w2_ref, b2_ref, g2_ref, be2_ref, s2_ref, c2_ref,
                      w3_ref, b3_ref, g3_ref, be3_ref, s3_ref, c3_ref,
                      wl_ref, bl_ref,
                      a_ref):
    def conv_relu_bn(h, w_ref, b_ref, g_ref, be_ref, seg_ref, bc_ref, lo):
        # Conv1d lowered to a dense bf16 matmul (f32 accumulation) + bias, then ReLU.
        y = jnp.dot(h.astype(jnp.bfloat16), w_ref[...],
                    preferred_element_type=jnp.float32) + b_ref[...]
        y = jnp.maximum(y, 0.0)                                        # (N, C*Lo), f32

        # BatchNorm1d, training-mode batch statistics (mean / biased var over batch and length).
        # Column sums are f32 VPU reductions; the per-channel reduce and the broadcast back use
        # tiny 0/1 matrices at HIGHEST precision, so no bf16 rounding of the statistics.
        sums = jnp.concatenate([jnp.sum(y, axis=0, keepdims=True),
                                jnp.sum(y * y, axis=0, keepdims=True)], axis=0)   # (2, C*Lo)
        stats = jnp.dot(sums, seg_ref[...], preferred_element_type=jnp.float32,
                        precision=_HI) * (1.0 / float(NUM_NODES * lo))            # (2, C)
        mean_c = stats[0:1, :]
        var_c = jnp.maximum(stats[1:2, :] - mean_c * mean_c, 0.0)
        inv_c = jax.lax.rsqrt(var_c + BN_EPS)
        scale_c = g_ref[...] * inv_c                                   # (1, C)
        shift_c = be_ref[...] - mean_c * scale_c                       # (1, C)
        ss = jnp.concatenate([scale_c, shift_c], axis=0)               # (2, C)
        ss_b = jnp.dot(ss, bc_ref[...], preferred_element_type=jnp.float32,
                       precision=_HI)                                  # (2, C*Lo)
        # fused normalize + affine: single FMA pass over (N, C*Lo)
        return y * ss_b[0:1, :] + ss_b[1:2, :]

    h = x_ref[...]                                                              # (N, 25)
    h = conv_relu_bn(h, w1_ref, b1_ref, g1_ref, be1_ref, s1_ref, c1_ref, L1)    # (N, 8*19)
    h = conv_relu_bn(h, w2_ref, b2_ref, g2_ref, be2_ref, s2_ref, c2_ref, L2)    # (N, 16*15)
    h = conv_relu_bn(h, w3_ref, b3_ref, g3_ref, be3_ref, s3_ref, c3_ref, L3)    # (N, 32*11)

    # Linear(352 -> 64) + ReLU
    e = jnp.dot(h.astype(jnp.bfloat16), wl_ref[...],
                preferred_element_type=jnp.float32) + bl_ref[...]
    e = jnp.maximum(e, 0.0)                                            # (N, 64)

    # chunk(2, dim=-1)
    m1 = e[:, :EMBED_DIM].astype(jnp.bfloat16)
    m2 = e[:, EMBED_DIM:].astype(jnp.bfloat16)

    # S = M1 @ M2.T ;  M2 @ M1.T == S.T  =>  A = relu(S - S.T)  (antisymmetry exact by construction)
    s = jax.lax.dot_general(m1, m2, (((1,), (1,)), ((), ())),
                            preferred_element_type=jnp.float32)
    a_ref[...] = jnp.maximum(s - s.T, 0.0)


# --------------------------- parameter plumbing --------------------------- #
def conv1d_to_matrix(w, li):
    """Dense (Ci*Li, Co*Lo) bf16 matrix M s.t. flatten(conv1d(X)) == flatten(X) @ M."""
    w = np.asarray(w, np.float32)
    co, ci, k = w.shape
    lo = li - k + 1
    m = np.zeros((ci * li, co * lo), dtype=np.float32)
    for o in range(co):
        for c in range(ci):
            for kk in range(k):
                for t in range(lo):
                    m[c * li + t + kk, o * lo + t] = w[o, c, kk]
    return jnp.asarray(m, dtype=jnp.bfloat16)


def per_column(v, lo):
    """Per-channel vector -> (1, C*Lo) row broadcast over positions (f32)."""
    return jnp.asarray(np.repeat(np.asarray(v, np.float32), lo)[None, :])


def per_channel(v):
    """Per-channel vector -> (1, C) row (f32)."""
    return jnp.asarray(np.asarray(v, np.float32)[None, :])


def seg_matrix(c, lo):
    """(C*Lo, C) 0/1 segment-sum matrix: column sums of y grouped per channel."""
    return jnp.asarray(np.kron(np.eye(c, dtype=np.float32), np.ones((lo, 1), np.float32)))


def bcast_matrix(c, lo):
    """(C, C*Lo) 0/1 broadcast matrix: per-channel value -> every column of that channel."""
    return jnp.asarray(np.kron(np.eye(c, dtype=np.float32), np.ones((1, lo), np.float32)))


def init_params(key):
    ks = jax.random.split(key, 16)
    nrm = lambda k, shape, s: s * jax.random.normal(k, shape, jnp.float32)
    return dict(
        w_conv1=nrm(ks[0], (C1, 1, K1), 0.3),  b_conv1=nrm(ks[1], (C1,), 0.1),
        w_conv2=nrm(ks[2], (C2, C1, K2), 0.15), b_conv2=nrm(ks[3], (C2,), 0.1),
        w_conv3=nrm(ks[4], (C3, C2, K3), 0.1),  b_conv3=nrm(ks[5], (C3,), 0.1),
        w_lin=nrm(ks[6], (LIN_OUT, LIN_IN), 0.05), b_lin=nrm(ks[7], (LIN_OUT,), 0.1),
        g1=1.0 + nrm(ks[8], (C1,), 0.1),  be1=nrm(ks[9], (C1,), 0.1),
        g2=1.0 + nrm(ks[10], (C2,), 0.1), be2=nrm(ks[11], (C2,), 0.1),
        g3=1.0 + nrm(ks[12], (C3,), 0.1), be3=nrm(ks[13], (C3,), 0.1),
    )


def build_operands(p):
    return [
        conv1d_to_matrix(p["w_conv1"], L0), per_column(p["b_conv1"], L1),
        per_channel(p["g1"]), per_channel(p["be1"]), seg_matrix(C1, L1), bcast_matrix(C1, L1),

        conv1d_to_matrix(p["w_conv2"], L1), per_column(p["b_conv2"], L2),
        per_channel(p["g2"]), per_channel(p["be2"]), seg_matrix(C2, L2), bcast_matrix(C2, L2),

        conv1d_to_matrix(p["w_conv3"], L2), per_column(p["b_conv3"], L3),
        per_channel(p["g3"]), per_channel(p["be3"]), seg_matrix(C3, L3), bcast_matrix(C3, L3),

        jnp.asarray(np.asarray(p["w_lin"], np.float32).T, dtype=jnp.bfloat16),  # (352, 64) bf16
        jnp.asarray(np.asarray(p["b_lin"], np.float32)[None, :]),               # (1, 64) f32
    ]


# ------------------------------ entry point ------------------------------ #
def conv_embedding_A(x, operands):
    n_in = 1 + len(operands)
    return pl.pallas_call(
        conv_embed_kernel,
        out_shape=jax.ShapeDtypeStruct((NUM_NODES, NUM_NODES), jnp.float32),
        in_specs=[pl.BlockSpec(memory_space=pltpu.MemorySpace.VMEM)] * n_in,
        out_specs=pl.BlockSpec(memory_space=pltpu.MemorySpace.VMEM),
    )(x, *operands)


def sparsify_and_edges(A, topk):
    # Top-k per row; zero the rest; extract edges (done in plain JAX: sort + dynamic-shape
    # boolean masking have no clean static-shape Pallas equivalent).
    n = A.shape[0]
    order = jnp.argsort(-A, axis=1)                       # descending (ties may differ from torch)
    j = order[:, topk:].reshape(-1)
    i = jnp.repeat(jnp.arange(n), n - topk)
    A_sp = A.at[i, j].set(0.0)
    msk = A_sp > 0
    num_edges = jnp.sum(msk)
    # TODO(synk): torch returns dynamically-shaped edge lists; here they are padded to n*topk.
    rows, cols = jnp.nonzero(msk, size=n * topk, fill_value=0)
    valid = jnp.arange(n * topk) < num_edges
    edge_indices = jnp.stack([rows, cols], axis=0)        # (2, n*topk) padded
    edge_attr = jnp.where(valid, A_sp[rows, cols], 0.0)   # (n*topk,)   padded
    return edge_indices, edge_attr, num_edges, A_sp


if __name__ == "__main__":
    key = jax.random.PRNGKey(0)
    k_x, k_p = jax.random.split(key)
    x = jax.random.normal(k_x, (NUM_NODES, NUM_NODE_FEATURES), jnp.float32)
    params = init_params(k_p)
    operands = build_operands(params)

    A = conv_embedding_A(x, operands)
    edge_indices, edge_attr, num_edges, A_sp = sparsify_and_edges(A, TOPK)
    jax.block_until_ready((A, A_sp, edge_indices, edge_attr, num_edges))
    print("KERNEL_OK")
</pallas_src>

<mosaic_0001>
module attributes {stable_mosaic.version = 11 : i64} {
  func.func @conv_embed_kernel(%arg0: memref<32x25xf32, #tpu.memory_space<vmem>>, %arg1: memref<25x152xbf16, #tpu.memory_space<vmem>>, %arg2: memref<1x152xf32, #tpu.memory_space<vmem>>, %arg3: memref<1x8xf32, #tpu.memory_space<vmem>>, %arg4: memref<1x8xf32, #tpu.memory_space<vmem>>, %arg5: memref<152x8xf32, #tpu.memory_space<vmem>>, %arg6: memref<8x152xf32, #tpu.memory_space<vmem>>, %arg7: memref<152x240xbf16, #tpu.memory_space<vmem>>, %arg8: memref<1x240xf32, #tpu.memory_space<vmem>>, %arg9: memref<1x16xf32, #tpu.memory_space<vmem>>, %arg10: memref<1x16xf32, #tpu.memory_space<vmem>>, %arg11: memref<240x16xf32, #tpu.memory_space<vmem>>, %arg12: memref<16x240xf32, #tpu.memory_space<vmem>>, %arg13: memref<240x352xbf16, #tpu.memory_space<vmem>>, %arg14: memref<1x352xf32, #tpu.memory_space<vmem>>, %arg15: memref<1x32xf32, #tpu.memory_space<vmem>>, %arg16: memref<1x32xf32, #tpu.memory_space<vmem>>, %arg17: memref<352x32xf32, #tpu.memory_space<vmem>>, %arg18: memref<32x352xf32, #tpu.memory_space<vmem>>, %arg19: memref<352x64xbf16, #tpu.memory_space<vmem>>, %arg20: memref<1x64xf32, #tpu.memory_space<vmem>>, %arg21: memref<32x32xf32, #tpu.memory_space<vmem>>) attributes {dimension_semantics = [], scalar_prefetch = 0 : i64, scratch_operands = 0 : i64, tpu.core_type = #tpu.core_type<tc>} {
    %c0 = arith.constant 0 : index
    %c0_0 = arith.constant 0 : index
    %0 = vector.load %arg0[%c0, %c0_0] : memref<32x25xf32, #tpu.memory_space<vmem>>, vector<32x25xf32>
    %1 = arith.truncf %0 : vector<32x25xf32> to vector<32x25xbf16>
    %c0_1 = arith.constant 0 : index
    %c0_2 = arith.constant 0 : index
    %2 = vector.load %arg1[%c0_1, %c0_2] : memref<25x152xbf16, #tpu.memory_space<vmem>>, vector<25x152xbf16>
    %cst = arith.constant dense<0.000000e+00> : vector<32x152xf32>
    %3 = tpu.matmul %1, %2, %cst {dimension_numbers = #tpu.dot_dimension_numbers<[1], [0], [0], [1], [0, 0, 1, 1], [], []>} : vector<32x25xbf16>, vector<25x152xbf16>, vector<32x152xf32> -> vector<32x152xf32>
    %c0_3 = arith.constant 0 : index
    %c0_4 = arith.constant 0 : index
    %4 = vector.load %arg2[%c0_3, %c0_4] : memref<1x152xf32, #tpu.memory_space<vmem>>, vector<1x152xf32>
    %5 = vector.broadcast %4 : vector<1x152xf32> to vector<32x152xf32>
    %6 = arith.addf %3, %5 : vector<32x152xf32>
    %cst_5 = arith.constant 0.000000e+00 : f32
    %7 = vector.broadcast %cst_5 : f32 to vector<32x152xf32>
    %8 = arith.maximumf %6, %7 : vector<32x152xf32>
    %cst_6 = arith.constant dense<0.000000e+00> : vector<152xf32>
    %9 = vector.multi_reduction <add>, %8, %cst_6 [0] : vector<32x152xf32> to vector<152xf32>
    %10 = vector.shape_cast %9 : vector<152xf32> to vector<1x152xf32>
    %11 = arith.mulf %8, %8 : vector<32x152xf32>
    %cst_7 = arith.constant dense<0.000000e+00> : vector<152xf32>
    %12 = vector.multi_reduction <add>, %11, %cst_7 [0] : vector<32x152xf32> to vector<152xf32>
    %13 = vector.shape_cast %12 : vector<152xf32> to vector<1x152xf32>
    %14 = tpu.concatenate %10, %13 in 0 : vector<1x152xf32>, vector<1x152xf32> -> vector<2x152xf32>
    %c0_8 = arith.constant 0 : index
    %c0_9 = arith.constant 0 : index
    %15 = vector.load %arg5[%c0_8, %c0_9] : memref<152x8xf32, #tpu.memory_space<vmem>>, vector<152x8xf32>
    %cst_10 = arith.constant dense<0.000000e+00> : vector<2x8xf32>
    %16 = tpu.matmul %14, %15, %cst_10 {dimension_numbers = #tpu.dot_dimension_numbers<[1], [0], [0], [1], [0, 0, 1, 1], [], []>, precision = #tpu.contract_precision<fp32>} : vector<2x152xf32>, vector<152x8xf32>, vector<2x8xf32> -> vector<2x8xf32>
    %cst_11 = arith.constant 0.00164473685 : f32
    %17 = vector.broadcast %cst_11 : f32 to vector<2x8xf32>
    %18 = arith.mulf %16, %17 : vector<2x8xf32>
    %19 = vector.extract_strided_slice %18 {offsets = [0, 0], sizes = [1, 8], strides = [1, 1]} : vector<2x8xf32> to vector<1x8xf32>
    %20 = vector.extract_strided_slice %18 {offsets = [1, 0], sizes = [1, 8], strides = [1, 1]} : vector<2x8xf32> to vector<1x8xf32>
    %21 = arith.mulf %19, %19 : vector<1x8xf32>
    %22 = arith.subf %20, %21 : vector<1x8xf32>
    %cst_12 = arith.constant 0.000000e+00 : f32
    %23 = vector.broadcast %cst_12 : f32 to vector<1x8xf32>
    %24 = arith.maximumf %22, %23 : vector<1x8xf32>
    %cst_13 = arith.constant 9.99999974E-6 : f32
    %25 = vector.broadcast %cst_13 : f32 to vector<1x8xf32>
    %26 = arith.addf %24, %25 : vector<1x8xf32>
    %27 = math.rsqrt %26 : vector<1x8xf32>
    %c0_14 = arith.constant 0 : index
    %c0_15 = arith.constant 0 : index
    %28 = vector.load %arg3[%c0_14, %c0_15] : memref<1x8xf32, #tpu.memory_space<vmem>>, vector<1x8xf32>
    %29 = arith.mulf %28, %27 : vector<1x8xf32>
    %c0_16 = arith.constant 0 : index
    %c0_17 = arith.constant 0 : index
    %30 = vector.load %arg4[%c0_16, %c0_17] : memref<1x8xf32, #tpu.memory_space<vmem>>, vector<1x8xf32>
    %31 = arith.mulf %19, %29 : vector<1x8xf32>
    %32 = arith.subf %30, %31 : vector<1x8xf32>
    %33 = tpu.concatenate %29, %32 in 0 : vector<1x8xf32>, vector<1x8xf32> -> vector<2x8xf32>
    %c0_18 = arith.constant 0 : index
    %c0_19 = arith.constant 0 : index
    %34 = vector.load %arg6[%c0_18, %c0_19] : memref<8x152xf32, #tpu.memory_space<vmem>>, vector<8x152xf32>
    %cst_20 = arith.constant dense<0.000000e+00> : vector<2x152xf32>
    %35 = tpu.matmul %33, %34, %cst_20 {dimension_numbers = #tpu.dot_dimension_numbers<[1], [0], [0], [1], [0, 0, 1, 1], [], []>, precision = #tpu.contract_precision<fp32>} : vector<2x8xf32>, vector<8x152xf32>, vector<2x152xf32> -> vector<2x152xf32>
    %36 = vector.extract_strided_slice %35 {offsets = [0, 0], sizes = [1, 152], strides = [1, 1]} : vector<2x152xf32> to vector<1x152xf32>
    %37 = vector.broadcast %36 : vector<1x152xf32> to vector<32x152xf32>
    %38 = arith.mulf %8, %37 : vector<32x152xf32>
    %39 = vector.extract_strided_slice %35 {offsets = [1, 0], sizes = [1, 152], strides = [1, 1]} : vector<2x152xf32> to vector<1x152xf32>
    %40 = vector.broadcast %39 : vector<1x152xf32> to vector<32x152xf32>
    %41 = arith.addf %38, %40 : vector<32x152xf32>
    %42 = arith.truncf %41 : vector<32x152xf32> to vector<32x152xbf16>
    %c0_21 = arith.constant 0 : index
    %c0_22 = arith.constant 0 : index
    %43 = vector.load %arg7[%c0_21, %c0_22] : memref<152x240xbf16, #tpu.memory_space<vmem>>, vector<152x240xbf16>
    %cst_23 = arith.constant dense<0.000000e+00> : vector<32x240xf32>
    %44 = tpu.matmul %42, %43, %cst_23 {dimension_numbers = #tpu.dot_dimension_numbers<[1], [0], [0], [1], [0, 0, 1, 1], [], []>} : vector<32x152xbf16>, vector<152x240xbf16>, vector<32x240xf32> -> vector<32x240xf32>
    %c0_24 = arith.constant 0 : index
    %c0_25 = arith.constant 0 : index
    %45 = vector.load %arg8[%c0_24, %c0_25] : memref<1x240xf32, #tpu.memory_space<vmem>>, vector<1x240xf32>
    %46 = vector.broadcast %45 : vector<1x240xf32> to vector<32x240xf32>
    %47 = arith.addf %44, %46 : vector<32x240xf32>
    %cst_26 = arith.constant 0.000000e+00 : f32
    %48 = vector.broadcast %cst_26 : f32 to vector<32x240xf32>
    %49 = arith.maximumf %47, %48 : vector<32x240xf32>
    %cst_27 = arith.constant dense<0.000000e+00> : vector<240xf32>
    %50 = vector.multi_reduction <add>, %49, %cst_27 [0] : vector<32x240xf32> to vector<240xf32>
    %51 = vector.shape_cast %50 : vector<240xf32> to vector<1x240xf32>
    %52 = arith.mulf %49, %49 : vector<32x240xf32>
    %cst_28 = arith.constant dense<0.000000e+00> : vector<240xf32>
    %53 = vector.multi_reduction <add>, %52, %cst_28 [0] : vector<32x240xf32> to vector<240xf32>
    %54 = vector.shape_cast %53 : vector<240xf32> to vector<1x240xf32>
    %55 = tpu.concatenate %51, %54 in 0 : vector<1x240xf32>, vector<1x240xf32> -> vector<2x240xf32>
    %c0_29 = arith.constant 0 : index
    %c0_30 = arith.constant 0 : index
    %56 = vector.load %arg11[%c0_29, %c0_30] : memref<240x16xf32, #tpu.memory_space<vmem>>, vector<240x16xf32>
    %cst_31 = arith.constant dense<0.000000e+00> : vector<2x16xf32>
    %57 = tpu.matmul %55, %56, %cst_31 {dimension_numbers = #tpu.dot_dimension_numbers<[1], [0], [0], [1], [0, 0, 1, 1], [], []>, precision = #tpu.contract_precision<fp32>} : vector<2x240xf32>, vector<240x16xf32>, vector<2x16xf32> -> vector<2x16xf32>
    %cst_32 = arith.constant 0.00208333344 : f32
    %58 = vector.broadcast %cst_32 : f32 to vector<2x16xf32>
    %59 = arith.mulf %57, %58 : vector<2x16xf32>
    %60 = vector.extract_strided_slice %59 {offsets = [0, 0], sizes = [1, 16], strides = [1, 1]} : vector<2x16xf32> to vector<1x16xf32>
    %61 = vector.extract_strided_slice %59 {offsets = [1, 0], sizes = [1, 16], strides = [1, 1]} : vector<2x16xf32> to vector<1x16xf32>
    %62 = arith.mulf %60, %60 : vector<1x16xf32>
    %63 = arith.subf %61, %62 : vector<1x16xf32>
    %cst_33 = arith.constant 0.000000e+00 : f32
    %64 = vector.broadcast %cst_33 : f32 to vector<1x16xf32>
    %65 = arith.maximumf %63, %64 : vector<1x16xf32>
    %cst_34 = arith.constant 9.99999974E-6 : f32
    %66 = vector.broadcast %cst_34 : f32 to vector<1x16xf32>
    %67 = arith.addf %65, %66 : vector<1x16xf32>
    %68 = math.rsqrt %67 : vector<1x16xf32>
    %c0_35 = arith.constant 0 : index
    %c0_36 = arith.constant 0 : index
    %69 = vector.load %arg9[%c0_35, %c0_36] : memref<1x16xf32, #tpu.memory_space<vmem>>, vector<1x16xf32>
    %70 = arith.mulf %69, %68 : vector<1x16xf32>
    %c0_37 = arith.constant 0 : index
    %c0_38 = arith.constant 0 : index
    %71 = vector.load %arg10[%c0_37, %c0_38] : memref<1x16xf32, #tpu.memory_space<vmem>>, vector<1x16xf32>
    %72 = arith.mulf %60, %70 : vector<1x16xf32>
    %73 = arith.subf %71, %72 : vector<1x16xf32>
    %74 = tpu.concatenate %70, %73 in 0 : vector<1x16xf32>, vector<1x16xf32> -> vector<2x16xf32>
    %c0_39 = arith.constant 0 : index
    %c0_40 = arith.constant 0 : index
    %75 = vector.load %arg12[%c0_39, %c0_40] : memref<16x240xf32, #tpu.memory_space<vmem>>, vector<16x240xf32>
    %cst_41 = arith.constant dense<0.000000e+00> : vector<2x240xf32>
    %76 = tpu.matmul %74, %75, %cst_41 {dimension_numbers = #tpu.dot_dimension_numbers<[1], [0], [0], [1], [0, 0, 1, 1], [], []>, precision = #tpu.contract_precision<fp32>} : vector<2x16xf32>, vector<16x240xf32>, vector<2x240xf32> -> vector<2x240xf32>
    %77 = vector.extract_strided_slice %76 {offsets = [0, 0], sizes = [1, 240], strides = [1, 1]} : vector<2x240xf32> to vector<1x240xf32>
    %78 = vector.broadcast %77 : vector<1x240xf32> to vector<32x240xf32>
    %79 = arith.mulf %49, %78 : vector<32x240xf32>
    %80 = vector.extract_strided_slice %76 {offsets = [1, 0], sizes = [1, 240], strides = [1, 1]} : vector<2x240xf32> to vector<1x240xf32>
    %81 = vector.broadcast %80 : vector<1x240xf32> to vector<32x240xf32>
    %82 = arith.addf %79, %81 : vector<32x240xf32>
    %83 = arith.truncf %82 : vector<32x240xf32> to vector<32x240xbf16>
    %c0_42 = arith.constant 0 : index
    %c0_43 = arith.constant 0 : index
    %84 = vector.load %arg13[%c0_42, %c0_43] : memref<240x352xbf16, #tpu.memory_space<vmem>>, vector<240x352xbf16>
    %cst_44 = arith.constant dense<0.000000e+00> : vector<32x352xf32>
    %85 = tpu.matmul %83, %84, %cst_44 {dimension_numbers = #tpu.dot_dimension_numbers<[1], [0], [0], [1], [0, 0, 1, 1], [], []>} : vector<32x240xbf16>, vector<240x352xbf16>, vector<32x352xf32> -> vector<32x352xf32>
    %c0_45 = arith.constant 0 : index
    %c0_46 = arith.constant 0 : index
    %86 = vector.load %arg14[%c0_45, %c0_46] : memref<1x352xf32, #tpu.memory_space<vmem>>, vector<1x352xf32>
    %87 = vector.broadcast %86 : vector<1x352xf32> to vector<32x352xf32>
    %88 = arith.addf %85, %87 : vector<32x352xf32>
    %cst_47 = arith.constant 0.000000e+00 : f32
    %89 = vector.broadcast %cst_47 : f32 to vector<32x352xf32>
    %90 = arith.maximumf %88, %89 : vector<32x352xf32>
    %cst_48 = arith.constant dense<0.000000e+00> : vector<352xf32>
    %91 = vector.multi_reduction <add>, %90, %cst_48 [0] : vector<32x352xf32> to vector<352xf32>
    %92 = vector.shape_cast %91 : vector<352xf32> to vector<1x352xf32>
    %93 = arith.mulf %90, %90 : vector<32x352xf32>
    %cst_49 = arith.constant dense<0.000000e+00> : vector<352xf32>
    %94 = vector.multi_reduction <add>, %93, %cst_49 [0] : vector<32x352xf32> to vector<352xf32>
    %95 = vector.shape_cast %94 : vector<352xf32> to vector<1x352xf32>
    %96 = tpu.concatenate %92, %95 in 0 : vector<1x352xf32>, vector<1x352xf32> -> vector<2x352xf32>
    %c0_50 = arith.constant 0 : index
    %c0_51 = arith.constant 0 : index
    %97 = vector.load %arg17[%c0_50, %c0_51] : memref<352x32xf32, #tpu.memory_space<vmem>>, vector<352x32xf32>
    %cst_52 = arith.constant dense<0.000000e+00> : vector<2x32xf32>
    %98 = tpu.matmul %96, %97, %cst_52 {dimension_numbers = #tpu.dot_dimension_numbers<[1], [0], [0], [1], [0, 0, 1, 1], [], []>, precision = #tpu.contract_precision<fp32>} : vector<2x352xf32>, vector<352x32xf32>, vector<2x32xf32> -> vector<2x32xf32>
    %cst_53 = arith.constant 0.00284090918 : f32
    %99 = vector.broadcast %cst_53 : f32 to vector<2x32xf32>
    %100 = arith.mulf %98, %99 : vector<2x32xf32>
    %101 = vector.extract_strided_slice %100 {offsets = [0, 0], sizes = [1, 32], strides = [1, 1]} : vector<2x32xf32> to vector<1x32xf32>
    %102 = vector.extract_strided_slice %100 {offsets = [1, 0], sizes = [1, 32], strides = [1, 1]} : vector<2x32xf32> to vector<1x32xf32>
    %103 = arith.mulf %101, %101 : vector<1x32xf32>
    %104 = arith.subf %102, %103 : vector<1x32xf32>
    %cst_54 = arith.constant 0.000000e+00 : f32
    %105 = vector.broadcast %cst_54 : f32 to vector<1x32xf32>
    %106 = arith.maximumf %104, %105 : vector<1x32xf32>
    %cst_55 = arith.constant 9.99999974E-6 : f32
    %107 = vector.broadcast %cst_55 : f32 to vector<1x32xf32>
    %108 = arith.addf %106, %107 : vector<1x32xf32>
    %109 = math.rsqrt %108 : vector<1x32xf32>
    %c0_56 = arith.constant 0 : index
    %c0_57 = arith.constant 0 : index
    %110 = vector.load %arg15[%c0_56, %c0_57] : memref<1x32xf32, #tpu.memory_space<vmem>>, vector<1x32xf32>
    %111 = arith.mulf %110, %109 : vector<1x32xf32>
    %c0_58 = arith.constant 0 : index
    %c0_59 = arith.constant 0 : index
    %112 = vector.load %arg16[%c0_58, %c0_59] : memref<1x32xf32, #tpu.memory_space<vmem>>, vector<1x32xf32>
    %113 = arith.mulf %101, %111 : vector<1x32xf32>
    %114 = arith.subf %112, %113 : vector<1x32xf32>
    %115 = tpu.concatenate %111, %114 in 0 : vector<1x32xf32>, vector<1x32xf32> -> vector<2x32xf32>
    %c0_60 = arith.constant 0 : index
    %c0_61 = arith.constant 0 : index
    %116 = vector.load %arg18[%c0_60, %c0_61] : memref<32x352xf32, #tpu.memory_space<vmem>>, vector<32x352xf32>
    %cst_62 = arith.constant dense<0.000000e+00> : vector<2x352xf32>
    %117 = tpu.matmul %115, %116, %cst_62 {dimension_numbers = #tpu.dot_dimension_numbers<[1], [0], [0], [1], [0, 0, 1, 1], [], []>, precision = #tpu.contract_precision<fp32>} : vector<2x32xf32>, vector<32x352xf32>, vector<2x352xf32> -> vector<2x352xf32>
    %118 = vector.extract_strided_slice %117 {offsets = [0, 0], sizes = [1, 352], strides = [1, 1]} : vector<2x352xf32> to vector<1x352xf32>
    %119 = vector.broadcast %118 : vector<1x352xf32> to vector<32x352xf32>
    %120 = arith.mulf %90, %119 : vector<32x352xf32>
    %121 = vector.extract_strided_slice %117 {offsets = [1, 0], sizes = [1, 352], strides = [1, 1]} : vector<2x352xf32> to vector<1x352xf32>
    %122 = vector.broadcast %121 : vector<1x352xf32> to vector<32x352xf32>
    %123 = arith.addf %120, %122 : vector<32x352xf32>
    %124 = arith.truncf %123 : vector<32x352xf32> to vector<32x352xbf16>
    %c0_63 = arith.constant 0 : index
    %c0_64 = arith.constant 0 : index
    %125 = vector.load %arg19[%c0_63, %c0_64] : memref<352x64xbf16, #tpu.memory_space<vmem>>, vector<352x64xbf16>
    %cst_65 = arith.constant dense<0.000000e+00> : vector<32x64xf32>
    %126 = tpu.matmul %124, %125, %cst_65 {dimension_numbers = #tpu.dot_dimension_numbers<[1], [0], [0], [1], [0, 0, 1, 1], [], []>} : vector<32x352xbf16>, vector<352x64xbf16>, vector<32x64xf32> -> vector<32x64xf32>
    %c0_66 = arith.constant 0 : index
    %c0_67 = arith.constant 0 : index
    %127 = vector.load %arg20[%c0_66, %c0_67] : memref<1x64xf32, #tpu.memory_space<vmem>>, vector<1x64xf32>
    %128 = vector.broadcast %127 : vector<1x64xf32> to vector<32x64xf32>
    %129 = arith.addf %126, %128 : vector<32x64xf32>
    %cst_68 = arith.constant 0.000000e+00 : f32
    %130 = vector.broadcast %cst_68 : f32 to vector<32x64xf32>
    %131 = arith.maximumf %129, %130 : vector<32x64xf32>
    %132 = vector.extract_strided_slice %131 {offsets = [0, 0], sizes = [32, 32], strides = [1, 1]} : vector<32x64xf32> to vector<32x32xf32>
    %133 = arith.truncf %132 : vector<32x32xf32> to vector<32x32xbf16>
    %134 = vector.extract_strided_slice %131 {offsets = [0, 32], sizes = [32, 32], strides = [1, 1]} : vector<32x64xf32> to vector<32x32xf32>
    %135 = arith.truncf %134 : vector<32x32xf32> to vector<32x32xbf16>
    %cst_69 = arith.constant dense<0.000000e+00> : vector<32x32xf32>
    %136 = tpu.matmul %133, %135, %cst_69 {dimension_numbers = #tpu.dot_dimension_numbers<[1], [1], [0], [0], [0, 0, 1, 0], [], []>} : vector<32x32xbf16>, vector<32x32xbf16>, vector<32x32xf32> -> vector<32x32xf32>
    %137 = tpu.transpose %136, [1, 0] : vector<32x32xf32> -> vector<32x32xf32>
    %138 = arith.subf %136, %137 : vector<32x32xf32>
    %cst_70 = arith.constant 0.000000e+00 : f32
    %139 = vector.broadcast %cst_70 : f32 to vector<32x32xf32>
    %140 = arith.maximumf %138, %139 : vector<32x32xf32>
    %c0_71 = arith.constant 0 : index
    %c0_72 = arith.constant 0 : index
    %141 = vector.load %arg21[%c0_71, %c0_72] : memref<32x32xf32, #tpu.memory_space<vmem>>, vector<32x32xf32>
    tpu.vector_store %arg21[%c0_71, %c0_72], %140 {strides = array<i32>} : memref<32x32xf32, #tpu.memory_space<vmem>>, vector<32x32xf32>,
    return
  }
}

</mosaic_0001>

<bundles_post_ra>
// kernel: tpu_custom_call.1
= control target key start
LH: loop header
LB: loop body
LE: loop exit
PB: predicated region body
PF: predicated region fallthrough
CT: control target
= control target key end

     0   :  { %s11353_s0 = inlined_call_operand.vmem [shape: f32[32,25], index: 0, kind: input, shape index: {}]   ;;  %s11354_s1 = inlined_call_operand.vmem [shape: bf16[25,152], index: 1, kind: input, shape index: {}]   ;;  %s11355_s2 = inlined_call_operand.vmem [shape: f32[1,152], index: 2, kind: input, shape index: {}]   ;;  %s11356_s3 = inlined_call_operand.vmem [shape: f32[1,8], index: 3, kind: input, shape index: {}]   ;;  %s11357_s4 = inlined_call_operand.vmem [shape: f32[1,8], index: 4, kind: input, shape index: {}]   ;;  %s11358_s5 = inlined_call_operand.vmem [shape: f32[152,8], index: 5, kind: input, shape index: {}]   ;;  %s11359_s6 = inlined_call_operand.vmem [shape: f32[8,152], index: 6, kind: input, shape index: {}]   ;;  %s11360_s7 = inlined_call_operand.vmem [shape: bf16[152,240], index: 7, kind: input, shape index: {}]   ;;  %s11361_s8 = inlined_call_operand.vmem [shape: f32[1,240], index: 8, kind: input, shape index: {}]   ;;  %s11362_s9 = inlined_call_operand.vmem [shape: f32[1,16], index: 9, kind: input, shape index: {}]   ;;  %s11363_s10 = inlined_call_operand.vmem [shape: f32[1,16], index: 10, kind: input, shape index: {}]   ;;  %s11364_s11 = inlined_call_operand.vmem [shape: f32[240,16], index: 11, kind: input, shape index: {}]   ;;  %s11365_s12 = inlined_call_operand.vmem [shape: f32[16,240], index: 12, kind: input, shape index: {}]   ;;  %s11366_s13 = inlined_call_operand.vmem [shape: bf16[240,352], index: 13, kind: input, shape index: {}]   ;;  %s11367_s14 = inlined_call_operand.vmem [shape: f32[1,352], index: 14, kind: input, shape index: {}]   ;;  %s11368_s15 = inlined_call_operand.vmem [shape: f32[1,32], index: 15, kind: input, shape index: {}]   ;;  %s11369_s16 = inlined_call_operand.vmem [shape: f32[1,32], index: 16, kind: input, shape index: {}]   ;;  %s11370_s17 = inlined_call_operand.vmem [shape: f32[352,32], index: 17, kind: input, shape index: {}]   ;;  %s11371_s18 = inlined_call_operand.vmem [shape: f32[32,352], index: 18, kind: input, shape index: {}]   ;;  %s11372_s19 = inlined_call_operand.vmem [shape: bf16[352,64], index: 19, kind: input, shape index: {}]   ;;  %s11373_s20 = inlined_call_operand.vmem [shape: f32[1,64], index: 20, kind: input, shape index: {}]   ;;  %s11374_s21 = inlined_call_operand.hbm [shape: f32[32,32], index: 21, kind: output, shape index: {}]  }
   0x1   :  { %11556 = sst [smem:[#allocation43_spill]] %s11353_s0 }
   0x2   :  { %11557 = sst [smem:[#allocation44_spill]] %s11354_s1 }
   0x3   :  { %11558 = sst [smem:[#allocation45_spill]] %s11355_s2 }
   0x4   :  { %11559 = sst [smem:[#allocation46_spill]] %s11356_s3 }
   0x5   :  { %11560 = sst [smem:[#allocation47_spill]] %s11357_s4 }
   0x6   :  { %11561 = sst [smem:[#allocation48_spill]] %s11358_s5 }
   0x7   :  { %s11562_s26 = sld [smem:[#allocation44_spill]]  ;;  %vm117_vm0 = vcmask 1043456   ;;  %vm118_vm1 = vcmask 1044480   ;;  %v8554_v3 = vmov 65535   ;;  %v11378_v7 = vmov 0   ;;  %s11563_s22 = sld [smem:[#allocation43_spill]] }
   0x8   :  { %v119_v4 = vsel %vm117_vm0, 4294967295, %v8554_v3  ;;  %159 = vmatprep.mubr.bf16.mxu0 %v11378_v7  ;;  %vm110_vm2 = vcmask 203776  }
   0x9   :  { %v120_v5 = vsel %vm118_vm1, %v119_v4, 0 }
   0xd   :  { %v8407_v0 = vld [vmem:[%s11562_s26 + $0x4] ss:$8 sps:$4 sm:$0xff]   ;;  %v8409_v1 = vld [vmem:[%s11562_s26] ss:$8 sps:$4 sm:$0xff]   ;;  %v72_v13 = vld [vmem:[%s11563_s22 + $0x10] sm:$0xff] }
   0xe   :  { %127 = vmatprep.subr.bf16.mxu0 %v8407_v0  ;;  %v8410_v2 = vld [vmem:[%s11562_s26 + $0x14] ss:$8 sps:$4 sm:$0x1f]   ;;  %v8412_v6 = vld [vmem:[%s11562_s26 + $0x10] ss:$8 sps:$4 sm:$0x1f]  }
   0xf   :  { %128 = vmatpush1.bf16.msra.mxu0 %v8409_v1  ;;  %v70_v8 = vld [vmem:[%s11563_s22] sm:$0xff]  ;;  %v71_v9 = vld [vmem:[%s11563_s22 + $0x8] sm:$0xff]  ;;  %v125_v10 = vand.u32 %v8410_v2, %v120_v5  ;;  %v122_v11 = vand.u32 %v8412_v6, %v120_v5  ;;  %v73_v14 = vld [vmem:[%s11563_s22 + $0x18] sm:$0xff] }
  0x10   :  { %v74_v12 = vpack.c.bf16 %v71_v9, %v70_v8  ;;  %v75_v15 = vpack.c.bf16 %v73_v14, %v72_v13 }
  0x11   :  { %129 = vmatprep.subr.bf16.mxu0 %v125_v10 }
  0x13   :  { %130 = vmatpush1.bf16.msra.mxu0 %v122_v11 }
  0x16   :  { %6773 = vmatmul.mubr.msk.bf16.vlgmr.msra.gmra.mrb[0].mxu0 %vm110_vm2, %v74_v12 }
  0x17   :  { %169 = vmatprep.mubr.bf16.mxu0 %v11378_v7 }
  0x1e   :  { %6774 = vmatmul.mubr.msk.bf16.gmra.mrb[4].mxu0 %vm110_vm2, %v75_v15 }
  0x1f   :  { %26 = vsyncpa [#allocation3], 0  ;;  %s11564_s28 = sld [smem:[#allocation48_spill]]  ;;  %v11400_v21 = vmov 0.0|0.0   ;;  %s11569_s2 = sld [smem:[#allocation45_spill]]  ;;  %vm197_vm3 = vcmask 195584  }
  0x20   :  { %7484 = vmatprep.subr.bf16.mxu1 %v11400_v21  ;;  %vm241_vm4 = vcmask 1040384   ;;  %s11610_s0 = sld [smem:[#allocation46_spill]]  ;;  %s11611_s5 = sld [smem:[#allocation47_spill]]  ;;  %vm999_vm5 = vcmask 64512   ;;  %vm1712_vm6 = vcmask 916480   ;;  %vm2669_vm7 = vcmask 130048  }
  0x21   :  { %vm3655_vm8 = vcmask 785408   ;;  %vm8559_vm9 = vmmov 0   ;;  %vm5263_vm10 = vcmask 261120   ;;  %s8560_s23 = smov 96  }
  0x25   :  { %v244_v16 = vld [vmem:[%s11564_s28] sm:$0xff]  ;;  %v245_v17 = vld [vmem:[%s11564_s28 + $0x8] sm:$0xff]  ;;  %v246_v22 = vld [vmem:[%s11564_s28 + $0x10] sm:$0xff] }
  0x26   :  { %v267_v18 = vand.u32 4294901760, %v244_v16  ;;  %v270_v19 = vand.u32 4294901760, %v245_v17  ;;  %v247_v23 = vld [vmem:[%s11564_s28 + $0x18] sm:$0xff]  ;;  %v273_v24 = vand.u32 4294901760, %v246_v22  ;;  %v248_v27 = vld [vmem:[%s11564_s28 + $0x20] sm:$0xff]  ;;  %v249_v28 = vld [vmem:[%s11564_s28 + $0x28] sm:$0xff] }
  0x27   :  { %v276_v25 = vand.u32 4294901760, %v247_v23  ;;  %v279_v29 = vand.u32 4294901760, %v248_v27  ;;  %v282_v30 = vand.u32 4294901760, %v249_v28  ;;  %v250_v34 = vld [vmem:[%s11564_s28 + $0x30] sm:$0xff]  ;;  %v251_v35 = vld [vmem:[%s11564_s28 + $0x38] sm:$0xff]  ;;  %v252_v39 = vld [vmem:[%s11564_s28 + $0x40] sm:$0xff] }
  0x28   :  { %v8707_v20 = vpack.c.bf16 %v270_v19, %v267_v18  ;;  %v8730_v32 = vsub.f32 %v244_v16, %v267_v18  ;;  %v8732_v33 = vsub.f32 %v245_v17, %v270_v19  ;;  %v285_v36 = vand.u32 4294901760, %v250_v34  ;;  %v253_v40 = vld [vmem:[%s11564_s28 + $0x48] sm:$0xff]  ;;  %v254_v44 = vld [vmem:[%s11564_s28 + $0x50] sm:$0xff]  ;;  %v255_v45 = vld [vmem:[%s11564_s28 + $0x58] sm:$0xff] }
  0x29   :  { %v8718_v26 = vpack.c.bf16 %v276_v25, %v273_v24  ;;  %v8728_v31 = vpack.c.bf16 %v282_v30, %v279_v29  ;;  %v288_v37 = vand.u32 4294901760, %v251_v35  ;;  %v291_v41 = vand.u32 4294901760, %v252_v39  ;;  %v256_v49 = vld [vmem:[%s11564_s28 + $0x60] sm:$0xff]  ;;  %v257_v50 = vld [vmem:[%s11564_s28 + $0x68] sm:$0xff]  ;;  %v258_v57 = vld [vmem:[%s11564_s28 + $0x70] sm:$0xff] }
  0x2a   :  { %7486 = vmatpush1.bf16.msra.mxu1 %v8707_v20  ;;  %v294_v42 = vand.u32 4294901760, %v253_v40  ;;  %v297_v46 = vand.u32 4294901760, %v254_v44  ;;  %v300_v47 = vand.u32 4294901760, %v255_v45  ;;  %v303_v51 = vand.u32 4294901760, %v256_v49  ;;  %v259_v58 = vld [vmem:[%s11564_s28 + $0x78] sm:$0xff]  ;;  %v260_v59 = vld [vmem:[%s11564_s28 + $0x80] sm:$0xff] }
  0x2b   :  { %7487 = vmatprep.subr.bf16.mxu1 %v11400_v21  ;;  %v8742_v38 = vpack.c.bf16 %v288_v37, %v285_v36  ;;  %v306_v52 = vand.u32 4294901760, %v257_v50  ;;  %v8771_v53 = vsub.f32 %v246_v22, %v273_v24  ;;  %v8773_v54 = vsub.f32 %v247_v23, %v276_v25  ;;  %v261_v0 = vld [vmem:[%s11564_s28 + $0x88] sm:$0xff]  ;;  %v8830_v18 = vld [vmem:[%s11564_s28 + $0x90] sm:$0xff] }
  0x2c   :  { %v8752_v43 = vpack.c.bf16 %v294_v42, %v291_v41  ;;  %v8762_v48 = vpack.c.bf16 %v300_v47, %v297_v46  ;;  %v8775_v55 = vsub.f32 %v248_v27, %v279_v29  ;;  %v8777_v56 = vsub.f32 %v249_v28, %v282_v30 }
  0x2d   :  { %v8789_v60 = vsub.f32 %v250_v34, %v285_v36  ;;  %v8791_v61 = vsub.f32 %v251_v35, %v288_v37  ;;  %v8793_v62 = vsub.f32 %v252_v39, %v291_v41  ;;  %v8795_v63 = vsub.f32 %v253_v40, %v294_v42 }
  0x2e   :  { %7489 = vmatpush1.bf16.msra.mxu1 %v8718_v26  ;;  %v8800_v1 = vsub.f32 %v254_v44, %v297_v46  ;;  %v8802_v2 = vsub.f32 %v255_v45, %v300_v47  ;;  %v8804_v3 = vpack.c.bf16 %v306_v52, %v303_v51  ;;  %v8806_v4 = vsub.f32 %v256_v49, %v303_v51 }
  0x2f   :  { %7490 = vmatprep.subr.bf16.mxu1 %v11400_v21  ;;  %v8808_v5 = vsub.f32 %v257_v50, %v306_v52  ;;  %v309_v6 = vand.u32 4294901760, %v258_v57  ;;  %v312_v8 = vand.u32 4294901760, %v259_v58  ;;  %v315_v9 = vand.u32 4294901760, %v260_v59 }
  0x30   :  { %v318_v10 = vand.u32 4294901760, %v261_v0  ;;  %v11398_v16 = vmov 0.0   ;;  %v11397_v19 = vand.u32 4294901760, %v8730_v32  ;;  %v11396_v22 = vand.u32 4294901760, %v8732_v33 }
  0x31   :  { %v8812_v11 = vpack.c.bf16 %v312_v8, %v309_v6  ;;  %v8814_v12 = vsub.f32 %v258_v57, %v309_v6  ;;  %v8816_v13 = vsub.f32 %v259_v58, %v312_v8  ;;  %v8818_v14 = vsub.f32 %v260_v59, %v315_v9  ;;  %1069 = vmatprep.mubr.f32.mxu0 %v11398_v16 }
  0x32   :  { %7492 = vmatpush1.bf16.msra.mxu1 %v8728_v31  ;;  %v8820_v15 = vsub.f32 %v261_v0, %v318_v10  ;;  %v8824_v17 = vpack.c.bf16 %v318_v10, %v315_v9  ;;  %v369_v23 = vsub.f32 %v8730_v32, %v11397_v19  ;;  %v376_v24 = vsub.f32 %v8732_v33, %v11396_v22 }
  0x33   :  { %7493 = vmatprep.subr.bf16.mxu1 %v11400_v21  ;;  %v8842_v25 = vand.u32 4294901760, %v8830_v18  ;;  %v11395_v29 = vand.u32 4294901760, %v8771_v53  ;;  %v11394_v30 = vand.u32 4294901760, %v8773_v54  ;;  %v11393_v40 = vand.u32 4294901760, %v8775_v55 }
  0x34   :  { %11565 = vst [vmem:[#allocation5_spill] sm:$0xff] %v8824_v17  ;;  %v370_v27 = vand.u32 4294901760, %v369_v23  ;;  %v377_v28 = vand.u32 4294901760, %v376_v24  ;;  %v11392_v41 = vand.u32 4294901760, %v8777_v56  ;;  %v11391_v49 = vand.u32 4294901760, %v8789_v60 }
  0x35   :  { %v383_v35 = vsub.f32 %v8771_v53, %v11395_v29  ;;  %v390_v36 = vsub.f32 %v8773_v54, %v11394_v30  ;;  %v397_v44 = vsub.f32 %v8775_v55, %v11393_v40  ;;  %v11390_v50 = vand.u32 4294901760, %v8791_v61 }
  0x36   :  { %7495 = vmatpush1.bf16.msra.mxu1 %v8742_v38  ;;  %v8847_v34 = vpack.c.bf16 %v377_v28, %v370_v27  ;;  %v404_v45 = vsub.f32 %v8777_v56, %v11392_v41  ;;  %v411_v52 = vsub.f32 %v8789_v60, %v11391_v49  ;;  %v11389_v0 = vand.u32 4294901760, %v8793_v62 }
  0x37   :  { %7496 = vmatprep.subr.bf16.mxu1 %v11400_v21  ;;  %v384_v37 = vand.u32 4294901760, %v383_v35  ;;  %v391_v39 = vand.u32 4294901760, %v390_v36  ;;  %v398_v46 = vand.u32 4294901760, %v397_v44  ;;  %v418_v57 = vsub.f32 %v8791_v61, %v11390_v50 }
  0x38   :  { %v405_v47 = vand.u32 4294901760, %v404_v45  ;;  %v412_v58 = vand.u32 4294901760, %v411_v52  ;;  %v11388_v6 = vand.u32 4294901760, %v8795_v63  ;;  %v425_v9 = vsub.f32 %v8793_v62, %v11389_v0 }
  0x39   :  { %v8859_v42 = vpack.c.bf16 %v391_v39, %v384_v37  ;;  %v419_v59 = vand.u32 4294901760, %v418_v57  ;;  %v11387_v27 = vand.u32 4294901760, %v8800_v1  ;;  %v11386_v28 = vand.u32 4294901760, %v8802_v2 }
  0x3a   :  { %7498 = vmatpush1.bf16.msra.mxu1 %v8752_v43  ;;  %v8869_v51 = vpack.c.bf16 %v405_v47, %v398_v46  ;;  %v432_v10 = vsub.f32 %v8795_v63, %v11388_v6  ;;  %v426_v23 = vand.u32 4294901760, %v425_v9  ;;  %v11385_v45 = vand.u32 4294901760, %v8806_v4 }
  0x3b   :  { %7499 = vmatprep.subr.bf16.mxu1 %v11400_v21  ;;  %v8879_v8 = vpack.c.bf16 %v419_v59, %v412_v58  ;;  %v439_v36 = vsub.f32 %v8800_v1, %v11387_v27  ;;  %v446_v37 = vsub.f32 %v8802_v2, %v11386_v28  ;;  %v11381_v46 = vand.u32 4294901760, %v8808_v5  ;;  %v80_v27 = vld [vmem:[%s11569_s2] sm:$0x3] }
  0x3c   :  { %v433_v24 = vand.u32 4294901760, %v432_v10  ;;  %v453_v52 = vsub.f32 %v8806_v4, %v11385_v45  ;;  %v11380_v9 = vand.u32 4294901760, %v8814_v12  ;;  %v11384_v10 = vand.u32 4294901760, %v8816_v13 }
  0x3d   :  { %v440_v39 = vand.u32 4294901760, %v439_v36  ;;  %v447_v44 = vand.u32 4294901760, %v446_v37  ;;  %v460_v57 = vsub.f32 %v8808_v5, %v11381_v46 }
  0x3e   :  { %7501 = vmatpush1.bf16.msra.mxu1 %v8762_v48  ;;  %v8889_v35 = vpack.c.bf16 %v433_v24, %v426_v23  ;;  %v454_v58 = vand.u32 4294901760, %v453_v52  ;;  %v467_v24 = vsub.f32 %v8814_v12, %v11380_v9  ;;  %v474_v36 = vsub.f32 %v8816_v13, %v11384_v10 }
  0x3f   :  { %7502 = vmatprep.subr.bf16.mxu1 %v11400_v21  ;;  %v8899_v47 = vpack.c.bf16 %v447_v44, %v440_v39  ;;  %v461_v59 = vand.u32 4294901760, %v460_v57  ;;  %v11382_v44 = vand.u32 4294901760, %v8818_v14  ;;  %v11383_v52 = vand.u32 4294901760, %v8820_v15 }
  0x40   :  { %v468_v37 = vand.u32 4294901760, %v467_v24  ;;  %v475_v39 = vand.u32 4294901760, %v474_v36 }
  0x41   :  { %v8909_v23 = vpack.c.bf16 %v461_v59, %v454_v58  ;;  %v481_v58 = vsub.f32 %v8818_v14, %v11382_v44  ;;  %v488_v59 = vsub.f32 %v8820_v15, %v11383_v52 }
  0x42   :  { %7504 = vmatpush1.bf16.msra.mxu1 %v8804_v3  ;;  %v8919_v57 = vpack.c.bf16 %v475_v39, %v468_v37 }
  0x43   :  { %7505 = vmatprep.subr.bf16.mxu1 %v11400_v21  ;;  %v482_v7 = vand.u32 4294901760, %v481_v58  ;;  %v489_v9 = vand.u32 4294901760, %v488_v59  ;;  %v82_v59 = vlaneseq }
  0x45   :  { %v8927_v46 = vpack.c.bf16 %v489_v9, %v482_v7  ;;  %v8947_v10 = vshrl.u32 %v82_v59, 7 }
  0x46   :  { %7507 = vmatpush1.bf16.msra.mxu1 %v8812_v11 }
  0x47   :  { %7508 = vmatprep.subr.bf16.mxu1 %v11400_v21  ;;  %11566 = vst [vmem:[#allocation6_spill] sm:$0xff] %v8947_v10  ;;  %v8950_v45 = vsub.s32 0, %v8947_v10  ;;  %v8953_v28 = vsub.s32 1, %v8947_v10 }
  0x49   :  { %11567 = vst [vmem:[#allocation7_spill] sm:$0xff] %v8950_v45  ;;  %11568 = vst [vmem:[#allocation8_spill] sm:$0xff] %v8953_v28  ;;  %v85_v6 = vrot.slane %v80_v27, %v8950_v45  ;;  %v89_v0 = vrot.slane %v80_v27, %v8953_v28 }
  0x4a   :  { %7510 = vmatpush1.bf16.msra.mxu1 %v8824_v17 }
  0x4b   :  { %320 = vmatprep.subr.mxu1 %v11398_v16 }
  0x4e   :  { %322 = vmatpush1.msra.mxu1 %v8842_v25 }
  0x4f   :  { %7511 = vmatprep.subr.bf16.mxu1 %v11400_v21 }
  0xe9   :  { %v161_v50 = vpop.f32.mrb[0].mxu0 }
  0xea   :  { %v163_v49 = vpop.f32.mrb[1].mxu0  ;;  %v162_v41 = vadd.f32 %v161_v50, %v85_v6 }
  0xeb   :  { %v164_v40 = vadd.f32 %v163_v49, %v89_v0  ;;  %v165_v59 = vpop.f32.mrb[2].mxu0 }
  0xec   :  { %v166_v30 = vadd.f32 %v165_v59, %v85_v6  ;;  %v167_v29 = vpop.f32.mrb[3].mxu0  ;;  %v8964_v9 = vmax.f32 %v162_v41, 0.0 }
  0xed   :  { %v8960_v22 = vmax.f32 %v164_v40, 0.0  ;;  %v168_v19 = vadd.f32 %v167_v29, %v89_v0 }
  0xee   :  { %v8962_v52 = vmax.f32 %v166_v30, 0.0  ;;  %11572 = vst [vmem:[#allocation11_spill] sm:$0xff] %v8964_v9  ;;  %v211_v29 = vmul.f32 %v8964_v9, %v8964_v9 }
  0xef   :  { %11570 = vst [vmem:[#allocation9_spill] sm:$0xff] %v8960_v22  ;;  %v8966_v7 = vmax.f32 %v168_v19, 0.0  ;;  %v212_v27 = vmul.f32 %v8960_v22, %v8960_v22  ;;  %v198_v19 = vsel %vm197_vm3, %v8960_v22, 0.0 }
  0xf0   :  { %11571 = vst [vmem:[#allocation10_spill] sm:$0xff] %v8962_v52  ;;  %v213_v50 = vmul.f32 %v8962_v52, %v8962_v52  ;;  %v188_v39 = vadd.f32 %v8962_v52, %v8964_v9 }
  0xf1   :  { %11573 = vst [vmem:[#allocation12_spill] sm:$0xff] %v8966_v7  ;;  %v214_v49 = vmul.f32 %v8966_v7, %v8966_v7  ;;  %v171_v59 = vpop.f32.mrb[4].mxu0  ;;  %v199_v30 = vsel %vm197_vm3, %v8966_v7, 0.0  ;;  %v228_v16 = vsel %vm197_vm3, %v212_v27, 0.0 }
  0xf2   :  { %v172_v40 = vadd.f32 %v171_v59, %v85_v6  ;;  %v173_v58 = vpop.f32.mrb[5].mxu0  ;;  %v219_v21 = vadd.f32 %v213_v50, %v211_v29  ;;  %v200_v45 = vadd.f32 %v199_v30, %v198_v19 }
  0xf3   :  { %v174_v41 = vadd.f32 %v173_v58, %v89_v0  ;;  %v175_v44 = vpop.f32.mrb[6].mxu0  ;;  %v229_v37 = vsel %vm197_vm3, %v214_v49, 0.0 }
  0xf4   :  { %v8983_v36 = vmax.f32 %v172_v40, 0.0  ;;  %v176_v59 = vadd.f32 %v175_v44, %v85_v6  ;;  %v177_v24 = vpop.f32.mrb[7].mxu0  ;;  %v230_v52 = vadd.f32 %v229_v37, %v228_v16 }
  0xf5   :  { %v8986_v28 = vmax.f32 %v174_v41, 0.0  ;;  %v178_v22 = vadd.f32 %v177_v24, %v89_v0 }
  0xf6   :  { %11574 = vst [vmem:[#allocation13_spill] sm:$0xff] %v8983_v36  ;;  %v189_v7 = vadd.f32 %v188_v39, %v8983_v36  ;;  %v215_v58 = vmul.f32 %v8983_v36, %v8983_v36  ;;  %v8991_v10 = vmax.f32 %v176_v59, 0.0 }
  0xf7   :  { %11575 = vst [vmem:[#allocation14_spill] sm:$0xff] %v8986_v28  ;;  %v201_v49 = vsel %vm197_vm3, %v8986_v28, 0.0  ;;  %v216_v6 = vmul.f32 %v8986_v28, %v8986_v28  ;;  %v8997_v44 = vmax.f32 %v178_v22, 0.0 }
  0xf8   :  { %11576 = vst [vmem:[#allocation15_spill] sm:$0xff] %v8991_v10  ;;  %v220_v27 = vadd.f32 %v219_v21, %v215_v58  ;;  %v202_v50 = vadd.f32 %v201_v49, %v200_v45  ;;  %v190_v0 = vadd.f32 %v189_v7, %v8991_v10  ;;  %v217_v24 = vmul.f32 %v8991_v10, %v8991_v10 }
  0xf9   :  { %11577 = vst [vmem:[#allocation16_spill] sm:$0xff] %v8997_v44  ;;  %v231_v39 = vsel %vm197_vm3, %v216_v6, 0.0  ;;  %v203_v16 = vsel %vm197_vm3, %v8997_v44, 0.0  ;;  %v218_v37 = vmul.f32 %v8997_v44, %v8997_v44 }
  0xfa   :  { %v232_v40 = vadd.f32 %v231_v39, %v230_v52  ;;  %v191_v29 = vrot.slane %v190_v0, 4  ;;  %v221_v19 = vadd.f32 %v220_v27, %v217_v24  ;;  %v204_v22 = vadd.f32 %v203_v16, %v202_v50 }
  0xfb   :  { %v233_v21 = vsel %vm197_vm3, %v218_v37, 0.0 }
  0xfc   :  { %v192_v45 = vadd.f32 %v191_v29, %v190_v0  ;;  %v222_v30 = vrot.slane %v221_v19, 4  ;;  %v205_v7 = vrot.slane %v204_v22, 4  ;;  %v234_v41 = vadd.f32 %v233_v21, %v232_v40 }
  0xfe   :  { %v193_v59 = vrot.slane %v192_v45, 2  ;;  %v223_v58 = vadd.f32 %v222_v30, %v221_v19  ;;  %v206_v49 = vadd.f32 %v205_v7, %v204_v22  ;;  %v235_v6 = vrot.slane %v234_v41, 4 }
 0x100   :  { %v194_v10 = vadd.f32 %v193_v59, %v192_v45  ;;  %v224_v36 = vrot.slane %v223_v58, 2  ;;  %v207_v28 = vrot.slane %v206_v49, 2  ;;  %v236_v9 = vadd.f32 %v235_v6, %v234_v41 }
 0x101   :  { %v11578_v59 = vmov 0.0|0.0   ;;  %v11587_v6 = vpack.c.bf16 %v8816_v13, %v8814_v12 }
 0x102   :  { %v195_v17 = vrot.slane %v194_v10, 1  ;;  %v225_v44 = vadd.f32 %v224_v36, %v223_v58  ;;  %v208_v52 = vadd.f32 %v207_v28, %v206_v49  ;;  %v237_v39 = vrot.slane %v236_v9, 2 }
 0x103   :  { %v11585_v58 = vpack.c.bf16 %v8802_v2, %v8800_v1  ;;  %v11586_v49 = vpack.c.bf16 %v8808_v5, %v8806_v4 }
 0x104   :  { %v226_v27 = vrot.slane %v225_v44, 1  ;;  %v209_v50 = vrot.slane %v208_v52, 1  ;;  %v238_v24 = vadd.f32 %v237_v39, %v236_v9  ;;  %v196_v0 = vadd.f32 %v195_v17, %v194_v10  ;;  %v11589_v39 = vld [vmem:[#allocation5_spill] sm:$0xff] }
 0x106   :  { %v227_v16 = vadd.f32 %v226_v27, %v225_v44  ;;  %v239_v37 = vrot.slane %v238_v24, 1  ;;  %v210_v40 = vadd.f32 %v209_v50, %v208_v52  ;;  %v11588_v52 = vpack.c.bf16 %v8820_v15, %v8818_v14 }
 0x107   :  { %v11590_v27 = vand.u32 4294901760, %v8730_v32  ;;  %v11591_v50 = vand.u32 4294901760, %v8732_v33 }
 0x108   :  { %v240_v29 = vadd.f32 %v239_v37, %v238_v24  ;;  %v242_v19 = vsel %vm241_vm4, %v196_v0, %v227_v16  ;;  %v11592_v0 = vand.u32 4294901760, %v8771_v53  ;;  %v11593_v16 = vand.u32 4294901760, %v8773_v54 }
 0x109   :  { %v9009_v22 = vand.u32 4294901760, %v242_v19  ;;  %v7593_v24 = vpack.c.bf16 %v11591_v50, %v11590_v27 }
 0x10a   :  { %v243_v21 = vsel %vm241_vm4, %v210_v40, %v240_v29  ;;  %v7596_v37 = vpack.c.bf16 %v11593_v16, %v11592_v0  ;;  %v11596_v29 = vand.u32 4294901760, %v8789_v60 }
 0x10b   :  { %v264_v45 = vsel %vm197_vm3, %v243_v21, 0  ;;  %v9014_v28 = vsub.f32 %v242_v19, %v9009_v22  ;;  %v11597_v19 = vand.u32 4294901760, %v8791_v61 }
 0x10c   :  { %v9016_v36 = vand.u32 4294901760, %v264_v45 }
 0x10d   :  { %v357_v9 = vand.u32 4294901760, %v9014_v28  ;;  %v7602_v21 = vpack.c.bf16 %v11597_v19, %v11596_v29  ;;  %v8413_v29 = vld [vmem:[%s11360_s7] ss:$8 sps:$4 sm:$0xff]   ;;  %v8418_v19 = vld [vmem:[%s11360_s7 + $0x14] ss:$8 sps:$4 sm:$0xff]  }
 0x10e   :  { %v350_v17 = vsub.f32 %v264_v45, %v9016_v36 }
 0x10f   :  { %v358_v44 = vsub.f32 %v9014_v28, %v357_v9 }
 0x110   :  { %v351_v10 = vand.u32 4294901760, %v350_v17 }
 0x111   :  { %v359_v41 = vand.u32 4294901760, %v358_v44 }
 0x112   :  { %v352_v30 = vsub.f32 %v350_v17, %v351_v10 }
 0x114   :  { %v353_v7 = vand.u32 4294901760, %v352_v30 }
 0x116   :  { %354 = vmatprep.mubr.f32.mxu1 %v353_v7  ;;  %v11608_v7 = vld [vmem:[#allocation6_spill] sm:$0xff] }
 0x117   :  { %360 = vmatmul.mubr.f32.vlgmr.msra.gmra.mrb[0].mxu1 %v359_v41 }
 0x118   :  { %7513 = vmatpush1.bf16.msra.mxu1 %v8847_v34  ;;  %525 = vmatprep.mubr.f32.mxu1 %v9016_v36  ;;  %v9036_v34 = vsub.f32 %v8830_v18, %v8842_v25 }
 0x119   :  { %7514 = vmatprep.subr.bf16.mxu1 %v11578_v59 }
 0x11c   :  { %7516 = vmatpush1.bf16.msra.mxu1 %v8859_v42  ;;  %v494_v42 = vand.u32 4294901760, %v9036_v34 }
 0x11d   :  { %7517 = vmatprep.subr.bf16.mxu1 %v11578_v59 }
 0x120   :  { %7519 = vmatpush1.bf16.msra.mxu1 %v8869_v51  ;;  %v495_v51 = vsub.f32 %v9036_v34, %v494_v42 }
 0x121   :  { %7520 = vmatprep.subr.bf16.mxu1 %v11578_v59 }
 0x122   :  { %v496_v18 = vand.u32 4294901760, %v495_v51 }
 0x124   :  { %7522 = vmatpush1.bf16.msra.mxu1 %v8879_v8  ;;  %v11579_v8 = vmov 0.0  }
 0x125   :  { %7523 = vmatprep.subr.bf16.mxu1 %v11578_v59 }
 0x128   :  { %7525 = vmatpush1.bf16.msra.mxu1 %v8889_v35  ;;  %v11580_v35 = vpack.c.bf16 %v8732_v33, %v8730_v32  ;;  %v11594_v32 = vand.u32 4294901760, %v8775_v55  ;;  %v11595_v33 = vand.u32 4294901760, %v8777_v56 }
 0x129   :  { %7526 = vmatprep.subr.bf16.mxu1 %v11578_v59 }
 0x12a   :  { %v7599_v40 = vpack.c.bf16 %v11595_v33, %v11594_v32 }
 0x12c   :  { %7528 = vmatpush1.bf16.msra.mxu1 %v8899_v47  ;;  %v11581_v47 = vpack.c.bf16 %v8773_v54, %v8771_v53  ;;  %v11598_v53 = vand.u32 4294901760, %v8793_v62  ;;  %v11599_v54 = vand.u32 4294901760, %v8795_v63 }
 0x12d   :  { %7529 = vmatprep.subr.bf16.mxu1 %v11578_v59 }
 0x12e   :  { %v7605_v45 = vpack.c.bf16 %v11599_v54, %v11598_v53  ;;  %v8421_v53 = vld [vmem:[%s11360_s7 + $0x24] ss:$8 sps:$4 sm:$0xff]   ;;  %v8419_v54 = vld [vmem:[%s11360_s7 + $0x20] ss:$8 sps:$4 sm:$0xff]  }
 0x130   :  { %7531 = vmatpush1.bf16.msra.mxu1 %v8909_v23  ;;  %v11583_v23 = vpack.c.bf16 %v8791_v61, %v8789_v60  ;;  %v11602_v60 = vand.u32 4294901760, %v8806_v4  ;;  %v11603_v61 = vand.u32 4294901760, %v8808_v5 }
 0x131   :  { %7532 = vmatprep.subr.bf16.mxu1 %v11578_v59 }
 0x134   :  { %7534 = vmatpush1.bf16.msra.mxu1 %v8919_v57  ;;  %v11584_v57 = vpack.c.bf16 %v8795_v63, %v8793_v62  ;;  %v11604_v62 = vand.u32 4294901760, %v8814_v12  ;;  %v11605_v63 = vand.u32 4294901760, %v8816_v13 }
 0x135   :  { %7535 = vmatprep.subr.bf16.mxu1 %v11578_v59 }
 0x138   :  { %7537 = vmatpush1.bf16.msra.mxu1 %v8927_v46  ;;  %v11582_v46 = vpack.c.bf16 %v8777_v56, %v8775_v55  ;;  %v11600_v55 = vand.u32 4294901760, %v8800_v1  ;;  %v11601_v56 = vand.u32 4294901760, %v8802_v2  ;;  %v11606_v1 = vand.u32 4294901760, %v8818_v14 }
 0x139   :  { %491 = vmatprep.subr.mxu1 %v11579_v8  ;;  %v11607_v2 = vand.u32 4294901760, %v8820_v15 }
 0x13c   :  { %497 = vmatpush1.msra.mxu1 %v496_v18  ;;  %v968_v18 = vld [vmem:[%s11610_s0] sm:$0x1] }
 0x13d   :  { %527 = vmatmul.mubr.f32.vlgmr.msra.gmra.mrb[0].mxu1 %v9009_v22  ;;  %7538 = vmatprep.subr.bf16.mxu1 %v11578_v59 }
 0x13e   :  { %7540 = vmatpush1.bf16.msra.mxu1 %v11580_v35  ;;  %636 = vmatprep.mubr.f32.mxu1 %v350_v17  ;;  %v7614_v17 = vpack.c.bf16 %v11605_v63, %v11604_v62  ;;  %v8431_v62 = vld [vmem:[%s11360_s7 + $0x60] ss:$8 sps:$4 sm:$0xff]   ;;  %v8436_v63 = vld [vmem:[%s11360_s7 + $0x74] ss:$8 sps:$4 sm:$0xff]  }
 0x13f   :  { %7541 = vmatprep.subr.bf16.mxu1 %v11578_v59 }
 0x142   :  { %7543 = vmatpush1.bf16.msra.mxu1 %v11581_v47 }
 0x143   :  { %7544 = vmatprep.subr.bf16.mxu1 %v11578_v59 }
 0x146   :  { %7546 = vmatpush1.bf16.msra.mxu1 %v11582_v46  ;;  %v987_v46 = vld [vmem:[%s11611_s5] sm:$0x1] }
 0x147   :  { %7547 = vmatprep.subr.bf16.mxu1 %v11578_v59 }
 0x14a   :  { %7549 = vmatpush1.bf16.msra.mxu1 %v11583_v23 }
 0x14b   :  { %7550 = vmatprep.subr.bf16.mxu1 %v11578_v59 }
 0x14e   :  { %7552 = vmatpush1.bf16.msra.mxu1 %v11584_v57 }
 0x14f   :  { %7553 = vmatprep.subr.bf16.mxu1 %v11578_v59 }
 0x152   :  { %7555 = vmatpush1.bf16.msra.mxu1 %v11585_v58 }
 0x153   :  { %7556 = vmatprep.subr.bf16.mxu1 %v11578_v59 }
 0x156   :  { %7558 = vmatpush1.bf16.msra.mxu1 %v11586_v49  ;;  %v11612_v49 = vld [vmem:[#allocation7_spill] sm:$0xff] }
 0x157   :  { %7559 = vmatprep.subr.bf16.mxu1 %v11578_v59 }
 0x15a   :  { %7561 = vmatpush1.bf16.msra.mxu1 %v11587_v6 }
 0x15b   :  { %7562 = vmatprep.subr.bf16.mxu1 %v11578_v59 }
 0x15e   :  { %7564 = vmatpush1.bf16.msra.mxu1 %v11588_v52 }
 0x15f   :  { %604 = vmatprep.subr.mxu1 %v11579_v8 }
 0x162   :  { %607 = vmatpush1.msra.mxu1 %v9036_v34 }
 0x163   :  { %639 = vmatmul.mubr.f32.vlgmr.msra.gmra.mrb[0].mxu1 %v9014_v28  ;;  %7565 = vmatprep.subr.bf16.mxu1 %v11578_v59  ;;  %v7608_v28 = vpack.c.bf16 %v11601_v56, %v11600_v55  ;;  %v8422_v55 = vld [vmem:[%s11360_s7 + $0x30] ss:$8 sps:$4 sm:$0xff]   ;;  %v8427_v56 = vld [vmem:[%s11360_s7 + $0x44] ss:$8 sps:$4 sm:$0xff]  }
 0x164   :  { %7567 = vmatpush1.bf16.msra.mxu1 %v8707_v20  ;;  %730 = vmatprep.mubr.f32.mxu1 %v351_v10  ;;  %v7617_v10 = vpack.c.bf16 %v11607_v2, %v11606_v1  ;;  %v8439_v1 = vld [vmem:[%s11360_s7 + $0x84] ss:$8 sps:$4 sm:$0xff]   ;;  %v8437_v2 = vld [vmem:[%s11360_s7 + $0x80] ss:$8 sps:$4 sm:$0xff]  }
 0x165   :  { %7568 = vmatprep.subr.bf16.mxu1 %v11578_v59 }
 0x168   :  { %7570 = vmatpush1.bf16.msra.mxu1 %v8718_v26 }
 0x169   :  { %7571 = vmatprep.subr.bf16.mxu1 %v11578_v59 }
 0x16c   :  { %7573 = vmatpush1.bf16.msra.mxu1 %v8728_v31 }
 0x16d   :  { %7574 = vmatprep.subr.bf16.mxu1 %v11578_v59 }
 0x170   :  { %7576 = vmatpush1.bf16.msra.mxu1 %v8742_v38 }
 0x171   :  { %7577 = vmatprep.subr.bf16.mxu1 %v11578_v59 }
 0x174   :  { %7579 = vmatpush1.bf16.msra.mxu1 %v8752_v43 }
 0x175   :  { %7580 = vmatprep.subr.bf16.mxu1 %v11578_v59 }
 0x178   :  { %7582 = vmatpush1.bf16.msra.mxu1 %v8762_v48 }
 0x179   :  { %7583 = vmatprep.subr.bf16.mxu1 %v11578_v59 }
 0x17c   :  { %7585 = vmatpush1.bf16.msra.mxu1 %v8804_v3 }
 0x17d   :  { %7586 = vmatprep.subr.bf16.mxu1 %v11578_v59 }
 0x180   :  { %7588 = vmatpush1.bf16.msra.mxu1 %v8812_v11 }
 0x181   :  { %7589 = vmatprep.subr.bf16.mxu1 %v11578_v59 }
 0x184   :  { %7591 = vmatpush1.bf16.msra.mxu1 %v11589_v39 }
 0x185   :  { %698 = vmatprep.subr.mxu1 %v11579_v8 }
 0x188   :  { %700 = vmatpush1.msra.mxu1 %v8842_v25 }
 0x189   :  { %734 = vmatmul.mubr.f32.vlgmr.msra.gmra.mrb[0].mxu1 %v357_v9  ;;  %7592 = vmatprep.subr.bf16.mxu1 %v11578_v59  ;;  %v7611_v9 = vpack.c.bf16 %v11603_v61, %v11602_v60  ;;  %v8430_v60 = vld [vmem:[%s11360_s7 + $0x54] ss:$8 sps:$4 sm:$0xff]   ;;  %v8428_v61 = vld [vmem:[%s11360_s7 + $0x50] ss:$8 sps:$4 sm:$0xff]  }
 0x18a   :  { %7594 = vmatpush1.bf16.msra.mxu1 %v7593_v24  ;;  %861 = vmatprep.mubr.f32.mxu1 %v9016_v36 }
 0x18b   :  { %7595 = vmatprep.subr.bf16.mxu1 %v11578_v59 }
 0x18e   :  { %7597 = vmatpush1.bf16.msra.mxu1 %v7596_v37 }
 0x18f   :  { %7598 = vmatprep.subr.bf16.mxu1 %v11578_v59 }
 0x192   :  { %7600 = vmatpush1.bf16.msra.mxu1 %v7599_v40  ;;  %v8415_v40 = vld [vmem:[%s11360_s7 + $0x4] ss:$8 sps:$4 sm:$0xff]  }
 0x193   :  { %7601 = vmatprep.subr.bf16.mxu1 %v11578_v59 }
 0x196   :  { %7603 = vmatpush1.bf16.msra.mxu1 %v7602_v21  ;;  %v8416_v21 = vld [vmem:[%s11360_s7 + $0x10] ss:$8 sps:$4 sm:$0xff]  }
 0x197   :  { %7604 = vmatprep.subr.bf16.mxu1 %v11578_v59 }
 0x19a   :  { %7606 = vmatpush1.bf16.msra.mxu1 %v7605_v45  ;;  %v8424_v45 = vld [vmem:[%s11360_s7 + $0x34] ss:$8 sps:$4 sm:$0xff]  }
 0x19b   :  { %7607 = vmatprep.subr.bf16.mxu1 %v11578_v59 }
 0x19e   :  { %7609 = vmatpush1.bf16.msra.mxu1 %v7608_v28  ;;  %v8425_v28 = vld [vmem:[%s11360_s7 + $0x40] ss:$8 sps:$4 sm:$0xff]  }
 0x19f   :  { %7610 = vmatprep.subr.bf16.mxu1 %v11578_v59 }
 0x1a2   :  { %7612 = vmatpush1.bf16.msra.mxu1 %v7611_v9  ;;  %v8433_v9 = vld [vmem:[%s11360_s7 + $0x64] ss:$8 sps:$4 sm:$0xff]  }
 0x1a3   :  { %7613 = vmatprep.subr.bf16.mxu1 %v11578_v59 }
 0x1a6   :  { %7615 = vmatpush1.bf16.msra.mxu1 %v7614_v17  ;;  %v8434_v17 = vld [vmem:[%s11360_s7 + $0x70] ss:$8 sps:$4 sm:$0xff]  }
 0x1a7   :  { %7616 = vmatprep.subr.bf16.mxu1 %v11578_v59 }
 0x1aa   :  { %7618 = vmatpush1.bf16.msra.mxu1 %v7617_v10  ;;  %v1522_v10 = vld [vmem:[%s11360_s7 + $0x90] sm:$0xff] }
 0x1ab   :  { %829 = vmatprep.subr.mxu1 %v11579_v8 }
 0x1ae   :  { %833 = vmatpush1.msra.mxu1 %v494_v42 }
 0x1af   :  { %863 = vmatmul.mubr.f32.vlgmr.msra.gmra.mrb[0].mxu1 %v9009_v22  ;;  %7619 = vmatprep.subr.bf16.mxu1 %v11578_v59 }
 0x1b0   :  { %7621 = vmatpush1.bf16.msra.mxu1 %v8707_v20  ;;  %952 = vmatprep.mubr.f32.mxu1 %v9016_v36  ;;  %v998_v20 = vld [vmem:[%s11359_s6 + $0x8] sm:$0xff]  ;;  %v8558_v36 = vmov 1966171168  }
 0x1b1   :  { %7622 = vmatprep.subr.bf16.mxu1 %v11578_v59  ;;  %v971_v44 = vunpack.c.l.s4 %v8558_v36 }
 0x1b3   :  { %v972_v30 = vunpack.c.0.s8 %v971_v44 }
 0x1b4   :  { %7624 = vmatpush1.bf16.msra.mxu1 %v8718_v26  ;;  %v997_v26 = vld [vmem:[%s11359_s6] sm:$0xff] }
 0x1b5   :  { %7625 = vmatprep.subr.bf16.mxu1 %v11578_v59  ;;  %v9192_v41 = vsub.s32 %v972_v30, %v11608_v7 }
 0x1b7   :  { %11609 = vst [vmem:[#allocation5_spill] sm:$0xff] %v9192_v41 }
 0x1b8   :  { %7627 = vmatpush1.bf16.msra.mxu1 %v8728_v31  ;;  %v1003_v31 = vand.u32 4294901760, %v998_v20 }
 0x1b9   :  { %7628 = vmatprep.subr.bf16.mxu1 %v11578_v59 }
 0x1ba   :  { %1004 = vmatprep.subr.mxu0 %v1003_v31 }
 0x1bc   :  { %7630 = vmatpush1.bf16.msra.mxu1 %v8742_v38  ;;  %v1005_v38 = vand.u32 4294901760, %v997_v26 }
 0x1bd   :  { %7631 = vmatprep.subr.bf16.mxu1 %v11578_v59 }
 0x1be   :  { %1006 = vmatpush1.msra.mxu0 %v1005_v38  ;;  %v1088_v58 = vsub.f32 %v997_v26, %v1005_v38  ;;  %v6793_v26 = vcombine.low %v1522_v10, %v1522_v10 }
 0x1c0   :  { %7633 = vmatpush1.bf16.msra.mxu1 %v8752_v43  ;;  %v1082_v43 = vsub.f32 %v998_v20, %v1003_v31  ;;  %v1089_v27 = vand.u32 4294901760, %v1088_v58  ;;  %v6794_v20 = vcombine.high %v1522_v10, %v1522_v10 }
 0x1c1   :  { %7634 = vmatprep.subr.bf16.mxu1 %v11578_v59 }
 0x1c2   :  { %v1090_v0 = vsub.f32 %v1088_v58, %v1089_v27 }
 0x1c4   :  { %7636 = vmatpush1.bf16.msra.mxu1 %v8762_v48  ;;  %v1083_v48 = vand.u32 4294901760, %v1082_v43  ;;  %v1091_v32 = vand.u32 4294901760, %v1090_v0  ;;  %v11615_v0 = vld [vmem:[#allocation8_spill] sm:$0xff] }
 0x1c5   :  { %7637 = vmatprep.subr.bf16.mxu1 %v11578_v59 }
 0x1c8   :  { %7639 = vmatpush1.bf16.msra.mxu1 %v8804_v3  ;;  %v1084_v3 = vsub.f32 %v1082_v43, %v1083_v48 }
 0x1c9   :  { %7640 = vmatprep.subr.bf16.mxu1 %v11578_v59 }
 0x1ca   :  { %v1085_v4 = vand.u32 4294901760, %v1084_v3 }
 0x1cc   :  { %7642 = vmatpush1.bf16.msra.mxu1 %v8812_v11  ;;  %1086 = vmatprep.subr.mxu0 %v1085_v4 }
 0x1cd   :  { %7643 = vmatprep.subr.bf16.mxu1 %v11578_v59 }
 0x1d0   :  { %7645 = vmatpush1.bf16.msra.mxu1 %v11589_v39 }
 0x1d1   :  { %922 = vmatprep.subr.mxu1 %v11579_v8 }
 0x1d4   :  { %924 = vmatpush1.msra.mxu1 %v8842_v25 }
 0x1d5   :  { %954 = vmatmul.mubr.f32.vlgmr.msra.gmra.mrb[0].mxu1 %v9009_v22 }
 0x1d6   :  { %2741 = vmatprep.mubr.f32.mxu1 %v11579_v8 }
 0x2a8   :  { %v955_v5 = vpop.f32.mrb[0].mxu1 }
 0x2a9   :  { %v959_v11 = vmul.f32 0.0016447369, %v955_v5  ;;  %v957_v12 = vpop.f32.mrb[1].mxu1  ;;  %v1761_v5 = vld [vmem:[%s11364_s11 + $0x18] sm:$0xff] }
 0x2aa   :  { %v1762_v12 = vld [vmem:[%s11364_s11 + $0x20] sm:$0xff] }
 0x2ab   :  { %v960_v13 = vmul.f32 %v959_v11, %v959_v11 }
 0x2ad   :  { %v962_v14 = vrot.slane %v960_v13, 7  ;;  %v1763_v13 = vld [vmem:[%s11364_s11 + $0x28] sm:$0xff] }
 0x2af   :  { %v964_v15 = vsub.f32 %v959_v11, %v962_v14  ;;  %v1801_v14 = vand.u32 4294901760, %v1761_v5 }
 0x2b1   :  { %v965_v25 = vmax.f32 %v964_v15, 0.0  ;;  %v1804_v15 = vand.u32 4294901760, %v1762_v12 }
 0x2b3   :  { %v966_v22 = vadd.f32 1e-05, %v965_v25  ;;  %v1764_v25 = vld [vmem:[%s11364_s11 + $0x30] sm:$0xff] }
 0x2b5   :  { %8524 = vrsqrt.f32 %v966_v22  ;;  %v1765_v22 = vld [vmem:[%s11364_s11 + $0x38] sm:$0xff] }
 0x2bf   :  { %v8525_v34 = vpop.eup %8524 }
 0x2c0   :  { %v976_v42 = vrot.slane %v8525_v34, %v9192_v41  ;;  %v1807_v34 = vand.u32 4294901760, %v1763_v13 }
 0x2c2   :  { %v977_v51 = vcombine.high %v976_v42, %v976_v42  ;;  %v9299_v42 = vsub.f32 %v1761_v5, %v1801_v14  ;;  %v1767_v5 = vld [vmem:[%s11364_s11 + $0x48] sm:$0xff] }
 0x2c4   :  { %v984_v35 = vrot.slane %v977_v51, %v9192_v41  ;;  %v9301_v51 = vsub.f32 %v1762_v12, %v1804_v15  ;;  %v1819_v12 = vand.u32 4294901760, %v1767_v5 }
 0x2c6   :  { %v986_v47 = vmul.f32 %v984_v35, %v968_v18  ;;  %v9303_v18 = vsub.f32 %v1763_v13, %v1807_v34  ;;  %v1810_v35 = vand.u32 4294901760, %v1764_v25 }
 0x2c8   :  { %v988_v23 = vmul.f32 %v986_v47, %v959_v11 }
 0x2ca   :  { %v989_v57 = vsub.f32 %v987_v46, %v988_v23  ;;  %v9305_v46 = vsub.f32 %v1764_v25, %v1810_v35 }
 0x2cc   :  { %v994_v6 = vrot.slane %v989_v57, %v11612_v49 }
 0x2ce   :  { %v996_v52 = vsel %vm241_vm4, %v986_v47, %v994_v6  ;;  %v1813_v47 = vand.u32 4294901760, %v1765_v22 }
 0x2cf   :  { %v1001_v39 = vsel %vm999_vm5, %v996_v52, 0 }
 0x2d0   :  { %v1070_v50 = vand.u32 4294901760, %v1001_v39  ;;  %v9307_v23 = vsub.f32 %v1765_v22, %v1813_v47 }
 0x2d2   :  { %v1071_v24 = vsub.f32 %v1001_v39, %v1070_v50  ;;  %v11613_v39 = vld [vmem:[#allocation11_spill] sm:$0xff] }
 0x2d4   :  { %v1072_v16 = vand.u32 4294901760, %v1071_v24 }
 0x2d6   :  { %v1073_v37 = vsub.f32 %v1071_v24, %v1072_v16 }
 0x2d8   :  { %v1074_v33 = vand.u32 4294901760, %v1073_v37 }
 0x2da   :  { %1075 = vmatmul.mubr.f32.vlgmr.msra.gmra.mrb[8].mxu0 %v1074_v33 }
 0x2db   :  { %1092 = vmatpush1.msra.mxu0 %v1091_v32  ;;  %1155 = vmatprep.mubr.f32.mxu0 %v11579_v8  ;;  %v11616_v32 = vld [vmem:[#allocation9_spill] sm:$0xff] }
 0x2dc   :  { %1165 = vmatprep.subr.mxu0 %v1082_v43  ;;  %v1759_v43 = vld [vmem:[%s11364_s11 + $0x8] sm:$0xff] }
 0x2dd   :  { %v1795_v4 = vand.u32 4294901760, %v1759_v43 }
 0x2df   :  { %v9295_v44 = vsub.f32 %v1759_v43, %v1795_v4  ;;  %v9330_v43 = vpack.c.bf16 %v1807_v34, %v1804_v15  ;;  %v1769_v15 = vld [vmem:[%s11364_s11 + $0x58] sm:$0xff] }
 0x2e0   :  { %v1825_v22 = vand.u32 4294901760, %v1769_v15 }
 0x2e2   :  { %1157 = vmatmul.mubr.f32.vlgmr.msra.gmra.mrb[8].mxu0 %v1070_v50 }
 0x2e3   :  { %1168 = vmatpush1.msra.mxu0 %v1088_v58  ;;  %1231 = vmatprep.mubr.f32.mxu0 %v11579_v8 }
 0x2e4   :  { %1241 = vmatprep.subr.mxu0 %v1003_v31 }
 0x2ea   :  { %1234 = vmatmul.mubr.f32.vlgmr.msra.gmra.mrb[8].mxu0 %v1071_v24 }
 0x2eb   :  { %1243 = vmatpush1.msra.mxu0 %v1005_v38  ;;  %1306 = vmatprep.mubr.f32.mxu0 %v11579_v8 }
 0x2ec   :  { %1319 = vmatprep.subr.mxu0 %v1083_v48  ;;  %v1760_v48 = vld [vmem:[%s11364_s11 + $0x10] sm:$0xff] }
 0x2ed   :  { %v1798_v11 = vand.u32 4294901760, %v1760_v48 }
 0x2ef   :  { %v9297_v30 = vsub.f32 %v1760_v48, %v1798_v11 }
 0x2f2   :  { %1310 = vmatmul.mubr.f32.vlgmr.msra.gmra.mrb[8].mxu0 %v1072_v16 }
 0x2f3   :  { %1323 = vmatpush1.msra.mxu0 %v1089_v27  ;;  %1386 = vmatprep.mubr.f32.mxu0 %v11579_v8 }
 0x2f4   :  { %1395 = vmatprep.subr.mxu0 %v1003_v31  ;;  %v1637_v31 = vsel %vm117_vm0, %v6793_v26, 0  ;;  %v9326_v26 = vpack.c.bf16 %v1801_v14, %v1798_v11  ;;  %v1768_v14 = vld [vmem:[%s11364_s11 + $0x50] sm:$0xff] }
 0x2f5   :  { %v1822_v25 = vand.u32 4294901760, %v1768_v14 }
 0x2f7   :  { %v9355_v34 = vpack.c.bf16 %v1825_v22, %v1822_v25 }
 0x2fa   :  { %1388 = vmatmul.mubr.f32.vlgmr.msra.gmra.mrb[8].mxu0 %v1070_v50 }
 0x2fb   :  { %1397 = vmatpush1.msra.mxu0 %v1005_v38  ;;  %1460 = vmatprep.mubr.f32.mxu0 %v11579_v8  ;;  %v1758_v38 = vld [vmem:[%s11364_s11] sm:$0xff] }
 0x2fc   :  { %1642 = vmatprep.subr.bf16.mxu0 %v8415_v40  ;;  %v1792_v3 = vand.u32 4294901760, %v1758_v38  ;;  %v11617_v40 = vld [vmem:[#allocation12_spill] sm:$0xff] }
 0x2fe   :  { %v9293_v36 = vsub.f32 %v1758_v38, %v1792_v3 }
 0x302   :  { %1462 = vmatmul.mubr.f32.vlgmr.msra.gmra.mrb[8].mxu0 %v1070_v50  ;;  %v11614_v50 = vld [vmem:[#allocation10_spill] sm:$0xff] }
 0x303   :  { %1643 = vmatpush1.bf16.msra.mxu0 %v8413_v29 }
 0x304   :  { %1644 = vmatprep.subr.bf16.mxu0 %v8418_v19  ;;  %v11618_v19 = vld [vmem:[#allocation14_spill] sm:$0xff] }
 0x307   :  { %1645 = vmatpush1.bf16.msra.mxu0 %v8416_v21 }
 0x308   :  { %1646 = vmatprep.subr.bf16.mxu0 %v8421_v53  ;;  %v11619_v53 = vld [vmem:[#allocation16_spill] sm:$0xff] }
 0x30b   :  { %1647 = vmatpush1.bf16.msra.mxu0 %v8419_v54 }
 0x30c   :  { %1648 = vmatprep.subr.bf16.mxu0 %v8424_v45 }
 0x30f   :  { %1649 = vmatpush1.bf16.msra.mxu0 %v8422_v55 }
 0x310   :  { %1650 = vmatprep.subr.bf16.mxu0 %v8427_v56 }
 0x313   :  { %1651 = vmatpush1.bf16.msra.mxu0 %v8425_v28 }
 0x314   :  { %1652 = vmatprep.subr.bf16.mxu0 %v8430_v60 }
 0x317   :  { %1653 = vmatpush1.bf16.msra.mxu0 %v8428_v61 }
 0x318   :  { %1654 = vmatprep.subr.bf16.mxu0 %v8433_v9 }
 0x31b   :  { %1655 = vmatpush1.bf16.msra.mxu0 %v8431_v62  ;;  %v9319_v62 = vpack.c.bf16 %v1795_v4, %v1792_v3  ;;  %v9334_v3 = vpack.c.bf16 %v1813_v47, %v1810_v35  ;;  %v1766_v4 = vld [vmem:[%s11364_s11 + $0x40] sm:$0xff]  ;;  %v1771_v47 = vld [vmem:[%s11364_s11 + $0x68] sm:$0xff] }
 0x31c   :  { %1656 = vmatprep.subr.bf16.mxu0 %v8436_v63  ;;  %v1816_v11 = vand.u32 4294901760, %v1766_v4  ;;  %v1770_v35 = vld [vmem:[%s11364_s11 + $0x60] sm:$0xff] }
 0x31e   :  { %v9345_v13 = vpack.c.bf16 %v1819_v12, %v1816_v11 }
 0x31f   :  { %1657 = vmatpush1.bf16.msra.mxu0 %v8434_v17  ;;  %v11620_v17 = vld [vmem:[#allocation13_spill] sm:$0xff] }
 0x320   :  { %1658 = vmatprep.subr.bf16.mxu0 %v8439_v1 }
 0x323   :  { %1659 = vmatpush1.bf16.msra.mxu0 %v8437_v2  ;;  %v11621_v2 = vld [vmem:[#allocation15_spill] sm:$0xff] }
 0x324   :  { %6795 = vmatprep.subr.msk.bf16.mxu0 %vm117_vm0, %v6794_v20 }
 0x327   :  { %1661 = vmatpush1.bf16.msra.mxu0 %v1637_v31 }
 0x328   :  { %7646 = vmatprep.subr.bf16.mxu0 %v11578_v59 }
 0x3d5   :  { %v1463_v57 = vpop.f32.mrb[8].mxu0 }
 0x3d6   :  { %v1471_v58 = vrot.slane %v1463_v57, %v11612_v49  ;;  %v1465_v6 = vpop.f32.mrb[9].mxu0  ;;  %v1487_v16 = vrot.slane %v1463_v57, %v11615_v0  ;;  %v1828_v57 = vand.u32 4294901760, %v1770_v35 }
 0x3d7   :  { %v1475_v52 = vrot.slane %v1465_v6, %v11612_v49  ;;  %v1491_v37 = vrot.slane %v1465_v6, %v11615_v0 }
 0x3d8   :  { %v1476_v27 = vmul.f32 %v1471_v58, %v11613_v39  ;;  %v1478_v24 = vmul.f32 %v1471_v58, %v11614_v50  ;;  %v1480_v1 = vmul.f32 %v1471_v58, %v11620_v17  ;;  %v1482_v10 = vmul.f32 %v1471_v58, %v11621_v2  ;;  %v1773_v50 = vld [vmem:[%s11364_s11 + $0x78] sm:$0xff] }
 0x3d9   :  { %v1477_v33 = vmul.f32 %v1475_v52, %v11616_v32  ;;  %v1479_v29 = vmul.f32 %v1475_v52, %v11617_v40  ;;  %v1481_v21 = vmul.f32 %v1475_v52, %v11618_v19  ;;  %v1483_v54 = vmul.f32 %v1475_v52, %v11619_v53  ;;  %v1774_v40 = vld [vmem:[%s11364_s11 + $0x80] sm:$0xff]  ;;  %v1781_v2 = vld [vmem:[%s11364_s11 + $0xb8] sm:$0xff] }
 0x3da   :  { %v1492_v45 = vadd.f32 %v1487_v16, %v1476_v27  ;;  %v1494_v55 = vadd.f32 %v1487_v16, %v1478_v24  ;;  %v1496_v31 = vadd.f32 %v1487_v16, %v1480_v1  ;;  %v1498_v38 = vadd.f32 %v1487_v16, %v1482_v10  ;;  %v1772_v27 = vld [vmem:[%s11364_s11 + $0x70] sm:$0xff] }
 0x3db   :  { %v1493_v56 = vadd.f32 %v1491_v37, %v1477_v33  ;;  %v1495_v28 = vadd.f32 %v1491_v37, %v1479_v29  ;;  %v1497_v60 = vadd.f32 %v1491_v37, %v1481_v21  ;;  %v1499_v61 = vadd.f32 %v1491_v37, %v1483_v54  ;;  %v1775_v29 = vld [vmem:[%s11364_s11 + $0x88] sm:$0xff]  ;;  %v1776_v54 = vld [vmem:[%s11364_s11 + $0x90] sm:$0xff] }
 0x3dc   :  { %v1500_v63 = vpack.c.bf16 %v1494_v55, %v1492_v45  ;;  %v1502_v48 = vpack.c.bf16 %v1498_v38, %v1496_v31  ;;  %v1831_v58 = vand.u32 4294901760, %v1771_v47  ;;  %v9367_v52 = vsub.f32 %v1766_v4, %v1816_v11  ;;  %v1777_v45 = vld [vmem:[%s11364_s11 + $0x98] sm:$0xff]  ;;  %v1780_v1 = vld [vmem:[%s11364_s11 + $0xb0] sm:$0xff]  ;;  %v1782_v38 = vld [vmem:[%s11364_s11 + $0xc0] sm:$0xff] }
 0x3dd   :  { %v1501_v9 = vpack.c.bf16 %v1495_v28, %v1493_v56  ;;  %v1503_v20 = vpack.c.bf16 %v1499_v61, %v1497_v60  ;;  %v9369_v39 = vsub.f32 %v1767_v5, %v1819_v12  ;;  %v1834_v24 = vand.u32 4294901760, %v1772_v27  ;;  %v1778_v60 = vld [vmem:[%s11364_s11 + $0xa0] sm:$0xff]  ;;  %v1779_v61 = vld [vmem:[%s11364_s11 + $0xa8] sm:$0xff] }
 0x3de   :  { %v9365_v6 = vpack.c.bf16 %v1831_v58, %v1828_v57  ;;  %v1837_v16 = vand.u32 4294901760, %v1773_v50  ;;  %v9378_v37 = vsub.f32 %v1768_v14, %v1822_v25  ;;  %v9380_v32 = vsub.f32 %v1769_v15, %v1825_v22  ;;  %v1784_v25 = vld [vmem:[%s11364_s11 + $0xd0] sm:$0xff] }
 0x3df   :  { %6796 = vmatprep.mubr.msk.bf16.mxu0 %vm197_vm3, %v1501_v9  ;;  %v1840_v19 = vand.u32 4294901760, %v1774_v40  ;;  %v1843_v21 = vand.u32 4294901760, %v1775_v29  ;;  %v1846_v55 = vand.u32 4294901760, %v1776_v54  ;;  %v1849_v56 = vand.u32 4294901760, %v1777_v45 }
 0x3e0   :  { %1675 = vmatmul.mubr.bf16.vlgmr.msra.gmra.mrb[12].mxu0 %v1500_v63  ;;  %11622 = vst [vmem:[#allocation11_spill] sm:$0xff] %v9365_v6  ;;  %v9383_v33 = vpack.c.bf16 %v1837_v16, %v1834_v24  ;;  %v1852_v9 = vand.u32 4294901760, %v1778_v60  ;;  %v1855_v63 = vand.u32 4294901760, %v1779_v61  ;;  %v1858_v10 = vand.u32 4294901760, %v1780_v1 }
 0x3e1   :  { %6797 = vmatprep.mubr.msk.bf16.mxu0 %vm197_vm3, %v1503_v20  ;;  %7648 = vmatpush1.bf16.msra.mxu0 %v9319_v62  ;;  %v9393_v53 = vpack.c.bf16 %v1843_v21, %v1840_v19  ;;  %v9403_v28 = vpack.c.bf16 %v1849_v56, %v1846_v55  ;;  %v1861_v20 = vand.u32 4294901760, %v1781_v2  ;;  %v1864_v4 = vand.u32 4294901760, %v1782_v38 }
 0x3e2   :  { %7649 = vmatprep.subr.bf16.mxu0 %v11578_v59  ;;  %11623 = vst [vmem:[#allocation10_spill] sm:$0xff] %v9383_v33  ;;  %v9413_v17 = vpack.c.bf16 %v1855_v63, %v1852_v9  ;;  %v9433_v11 = vsub.f32 %v1770_v35, %v1828_v57  ;;  %v9435_v12 = vsub.f32 %v1771_v47, %v1831_v58  ;;  %v1785_v35 = vld [vmem:[%s11364_s11 + $0xd8] sm:$0xff]  ;;  %v1786_v47 = vld [vmem:[%s11364_s11 + $0xe0] sm:$0xff] }
 0x3e3   :  { %11624 = vst [vmem:[#allocation9_spill] sm:$0xff] %v9393_v53  ;;  %11625 = vst [vmem:[#allocation12_spill] sm:$0xff] %v9403_v28  ;;  %v9423_v31 = vpack.c.bf16 %v1861_v20, %v1858_v10  ;;  %v9437_v14 = vsub.f32 %v1772_v27, %v1834_v24  ;;  %v9439_v15 = vsub.f32 %v1773_v50, %v1837_v16  ;;  %v1787_v24 = vld [vmem:[%s11364_s11 + $0xe8] sm:$0xff] }
 0x3e4   :  { %11626 = vst [vmem:[#allocation14_spill] sm:$0xff] %v9413_v17  ;;  %v9444_v22 = vsub.f32 %v1774_v40, %v1840_v19  ;;  %v9446_v7 = vsub.f32 %v1775_v29, %v1843_v21  ;;  %v9448_v8 = vsub.f32 %v1776_v54, %v1846_v55  ;;  %v9450_v41 = vsub.f32 %v1777_v45, %v1849_v56 }
 0x3e5   :  { %7651 = vmatpush1.bf16.msra.mxu0 %v9326_v26  ;;  %11627 = vst [vmem:[#allocation16_spill] sm:$0xff] %v9423_v31  ;;  %v9458_v57 = vsub.f32 %v1778_v60, %v1852_v9  ;;  %v9460_v58 = vsub.f32 %v1779_v61, %v1855_v63  ;;  %v9462_v27 = vsub.f32 %v1780_v1, %v1858_v10  ;;  %v1870_v19 = vand.u32 4294901760, %v1784_v25  ;;  %v1523_v1 = vld [vmem:[%s11361_s8] sm:$0x3] }
 0x3e6   :  { %7652 = vmatprep.subr.bf16.mxu0 %v11578_v59  ;;  %v9464_v50 = vsub.f32 %v1781_v2, %v1861_v20  ;;  %v9471_v40 = vsub.f32 %v1782_v38, %v1864_v4  ;;  %v1873_v21 = vand.u32 4294901760, %v1785_v35  ;;  %v1876_v54 = vand.u32 4294901760, %v1786_v47 }
 0x3e7   :  { %v9476_v45 = vsub.f32 %v1784_v25, %v1870_v19  ;;  %v1879_v55 = vand.u32 4294901760, %v1787_v24  ;;  %v1528_v2 = vrot.slane %v1523_v1, %v11612_v49  ;;  %v1532_v10 = vrot.slane %v1523_v1, %v11615_v0 }
 0x3e8   :  { %1685 = vmatmul.mubr.bf16.gmra.mrb[16].mxu0 %v1502_v48  ;;  %v1783_v48 = vld [vmem:[%s11364_s11 + $0xc8] sm:$0xff]  ;;  %v9479_v56 = vpack.c.bf16 %v1873_v21, %v1870_v19  ;;  %v9481_v60 = vsub.f32 %v1785_v35, %v1873_v21  ;;  %v9483_v61 = vsub.f32 %v1786_v47, %v1876_v54 }
 0x3e9   :  { %7654 = vmatpush1.bf16.msra.mxu0 %v9330_v43  ;;  %v1867_v5 = vand.u32 4294901760, %v1783_v48  ;;  %v9485_v9 = vsub.f32 %v1787_v24, %v1879_v55  ;;  %v9488_v63 = vpack.c.bf16 %v1879_v55, %v1876_v54 }
 0x3ea   :  { %7655 = vmatprep.subr.bf16.mxu0 %v11578_v59  ;;  %11629 = vst [vmem:[#allocation15_spill] sm:$0xff] %v9479_v56 }
 0x3eb   :  { %v9469_v16 = vpack.c.bf16 %v1867_v5, %v1864_v4  ;;  %v9473_v29 = vsub.f32 %v1783_v48, %v1867_v5  ;;  %11630 = vst [vmem:[#allocation17_spill] sm:$0xff] %v9488_v63 }
 0x3ed   :  { %7657 = vmatpush1.bf16.msra.mxu0 %v9334_v3  ;;  %11628 = vst [vmem:[#allocation13_spill] sm:$0xff] %v9469_v16 }
 0x3ee   :  { %7658 = vmatprep.subr.bf16.mxu0 %v11578_v59 }
 0x3f1   :  { %7660 = vmatpush1.bf16.msra.mxu0 %v9345_v13 }
 0x3f2   :  { %7661 = vmatprep.subr.bf16.mxu0 %v11578_v59 }
 0x3f5   :  { %7663 = vmatpush1.bf16.msra.mxu0 %v9355_v34 }
 0x3f6   :  { %7664 = vmatprep.subr.bf16.mxu0 %v11578_v59 }
 0x3f9   :  { %7666 = vmatpush1.bf16.msra.mxu0 %v9365_v6 }
 0x3fa   :  { %7667 = vmatprep.subr.bf16.mxu0 %v11578_v59 }
 0x3fd   :  { %7669 = vmatpush1.bf16.msra.mxu0 %v9383_v33 }
 0x3fe   :  { %7670 = vmatprep.subr.bf16.mxu0 %v11578_v59 }
 0x401   :  { %7672 = vmatpush1.bf16.msra.mxu0 %v9393_v53 }
 0x402   :  { %7673 = vmatprep.subr.bf16.mxu0 %v11578_v59 }
 0x405   :  { %7675 = vmatpush1.bf16.msra.mxu0 %v9403_v28 }
 0x406   :  { %7676 = vmatprep.subr.bf16.mxu0 %v11578_v59 }
 0x409   :  { %7678 = vmatpush1.bf16.msra.mxu0 %v9413_v17 }
 0x40a   :  { %7679 = vmatprep.subr.bf16.mxu0 %v11578_v59 }
 0x40d   :  { %7681 = vmatpush1.bf16.msra.mxu0 %v9423_v31 }
 0x40e   :  { %7682 = vmatprep.subr.bf16.mxu0 %v11578_v59 }
 0x411   :  { %7684 = vmatpush1.bf16.msra.mxu0 %v9469_v16 }
 0x412   :  { %7685 = vmatprep.subr.bf16.mxu0 %v11578_v59 }
 0x415   :  { %7687 = vmatpush1.bf16.msra.mxu0 %v9479_v56 }
 0x416   :  { %7688 = vmatprep.subr.bf16.mxu0 %v11578_v59 }
 0x419   :  { %7690 = vmatpush1.bf16.msra.mxu0 %v9488_v63 }
 0x41a   :  { %7691 = vmatprep.subr.bf16.mxu0 %v11578_v59 }
 0x4b3   :  { %v1676_v20 = vpop.f32.mrb[12].mxu0 }
 0x4b4   :  { %v1678_v38 = vpop.f32.mrb[13].mxu0  ;;  %v1677_v48 = vadd.f32 %v1676_v20, %v1528_v2 }
 0x4b5   :  { %v1679_v4 = vadd.f32 %v1678_v38, %v1532_v10  ;;  %v1680_v5 = vpop.f32.mrb[14].mxu0 }
 0x4b6   :  { %v1681_v25 = vadd.f32 %v1680_v5, %v1528_v2  ;;  %v1682_v35 = vpop.f32.mrb[15].mxu0  ;;  %v9502_v21 = vmax.f32 %v1677_v48, 0.0 }
 0x4b7   :  { %v9498_v47 = vmax.f32 %v1679_v4, 0.0  ;;  %v1683_v24 = vadd.f32 %v1682_v35, %v1532_v10 }
 0x4b8   :  { %v9500_v19 = vmax.f32 %v1681_v25, 0.0  ;;  %11633 = vst [vmem:[#allocation20_spill] sm:$0xff] %v9502_v21  ;;  %v1726_v25 = vmul.f32 %v9502_v21, %v9502_v21 }
 0x4b9   :  { %11631 = vst [vmem:[#allocation18_spill] sm:$0xff] %v9498_v47  ;;  %v9504_v54 = vmax.f32 %v1683_v24, 0.0  ;;  %v1727_v55 = vmul.f32 %v9498_v47, %v9498_v47  ;;  %v1713_v48 = vsel %vm1712_vm6, %v9498_v47, 0.0 }
 0x4ba   :  { %11632 = vst [vmem:[#allocation19_spill] sm:$0xff] %v9500_v19  ;;  %v1728_v1 = vmul.f32 %v9500_v19, %v9500_v19  ;;  %v1703_v49 = vadd.f32 %v9500_v19, %v9502_v21 }
 0x4bb   :  { %11634 = vst [vmem:[#allocation21_spill] sm:$0xff] %v9504_v54  ;;  %v1729_v20 = vmul.f32 %v9504_v54, %v9504_v54  ;;  %v1686_v38 = vpop.f32.mrb[16].mxu0  ;;  %v1714_v35 = vsel %vm1712_vm6, %v9504_v54, 0.0  ;;  %v1743_v31 = vsel %vm1712_vm6, %v1727_v55, 0.0 }
 0x4bc   :  { %v1687_v4 = vadd.f32 %v1686_v38, %v1528_v2  ;;  %v1688_v5 = vpop.f32.mrb[17].mxu0  ;;  %v1734_v17 = vadd.f32 %v1728_v1, %v1726_v25  ;;  %v1715_v53 = vadd.f32 %v1714_v35, %v1713_v48 }
 0x4bd   :  { %v1689_v24 = vadd.f32 %v1688_v5, %v1532_v10  ;;  %v1690_v0 = vpop.f32.mrb[18].mxu0  ;;  %v1744_v63 = vsel %vm1712_vm6, %v1729_v20, 0.0 }
 0x4be   :  { %v9521_v56 = vmax.f32 %v1687_v4, 0.0  ;;  %v1691_v38 = vadd.f32 %v1690_v0, %v1528_v2  ;;  %v1692_v16 = vpop.f32.mrb[19].mxu0  ;;  %v1745_v19 = vadd.f32 %v1744_v63, %v1743_v31 }
 0x4bf   :  { %v9524_v28 = vmax.f32 %v1689_v24, 0.0  ;;  %v1693_v47 = vadd.f32 %v1692_v16, %v1532_v10 }
 0x4c0   :  { %11635 = vst [vmem:[#allocation22_spill] sm:$0xff] %v9521_v56  ;;  %v1704_v54 = vadd.f32 %v1703_v49, %v9521_v56  ;;  %v1730_v5 = vmul.f32 %v9521_v56, %v9521_v56  ;;  %v9529_v33 = vmax.f32 %v1691_v38, 0.0 }
 0x4c1   :  { %11636 = vst [vmem:[#allocation23_spill] sm:$0xff] %v9524_v28  ;;  %v1716_v20 = vsel %vm1712_vm6, %v9524_v28, 0.0  ;;  %v1731_v0 = vmul.f32 %v9524_v28, %v9524_v28  ;;  %v9535_v2 = vmax.f32 %v1693_v47, 0.0 }
 0x4c2   :  { %11637 = vst [vmem:[#allocation24_spill] sm:$0xff] %v9529_v33  ;;  %v1735_v55 = vadd.f32 %v1734_v17, %v1730_v5  ;;  %v1717_v1 = vadd.f32 %v1716_v20, %v1715_v53  ;;  %v1705_v16 = vadd.f32 %v1704_v54, %v9529_v33  ;;  %v1732_v49 = vmul.f32 %v9529_v33, %v9529_v33 }
 0x4c3   :  { %11638 = vst [vmem:[#allocation25_spill] sm:$0xff] %v9535_v2  ;;  %v1746_v10 = vsel %vm1712_vm6, %v1731_v0, 0.0  ;;  %v1718_v31 = vsel %vm1712_vm6, %v9535_v2, 0.0  ;;  %v1733_v63 = vmul.f32 %v9535_v2, %v9535_v2 }
 0x4c4   :  { %v1747_v4 = vadd.f32 %v1746_v10, %v1745_v19  ;;  %v1706_v25 = vrot.slane %v1705_v16, 4  ;;  %v1736_v48 = vadd.f32 %v1735_v55, %v1732_v49  ;;  %v1719_v47 = vadd.f32 %v1718_v31, %v1717_v1 }
 0x4c5   :  { %v1748_v17 = vsel %vm1712_vm6, %v1733_v63, 0.0 }
 0x4c6   :  { %v1707_v53 = vadd.f32 %v1706_v25, %v1705_v16  ;;  %v1737_v35 = vrot.slane %v1736_v48, 4  ;;  %v1720_v54 = vrot.slane %v1719_v47, 4  ;;  %v1749_v24 = vadd.f32 %v1748_v17, %v1747_v4 }
 0x4c7   :  { %v1904_v4 = vand.u32 4294901760, %v9293_v36  ;;  %v1911_v25 = vand.u32 4294901760, %v9295_v44 }
 0x4c8   :  { %v1708_v38 = vrot.slane %v1707_v53, 2  ;;  %v1738_v5 = vadd.f32 %v1737_v35, %v1736_v48  ;;  %v1721_v20 = vadd.f32 %v1720_v54, %v1719_v47  ;;  %v1750_v0 = vrot.slane %v1749_v24, 4 }
 0x4c9   :  { %v11461_v54 = vand.u32 4294901760, %v9299_v42 }
 0x4ca   :  { %v1709_v33 = vadd.f32 %v1708_v38, %v1707_v53  ;;  %v1739_v56 = vrot.slane %v1738_v5, 2  ;;  %v1722_v28 = vrot.slane %v1721_v20, 2  ;;  %v1751_v21 = vadd.f32 %v1750_v0, %v1749_v24 }
 0x4cc   :  { %v1710_v6 = vrot.slane %v1709_v33, 1  ;;  %v1740_v2 = vadd.f32 %v1739_v56, %v1738_v5  ;;  %v1723_v19 = vadd.f32 %v1722_v28, %v1721_v20  ;;  %v1752_v10 = vrot.slane %v1751_v21, 2 }
 0x4cd   :  { %v1905_v28 = vsub.f32 %v9293_v36, %v1904_v4 }
 0x4ce   :  { %v1741_v55 = vrot.slane %v1740_v2, 1  ;;  %v1724_v1 = vrot.slane %v1723_v19, 1  ;;  %v1753_v49 = vadd.f32 %v1752_v10, %v1751_v21  ;;  %v1711_v31 = vadd.f32 %v1710_v6, %v1709_v33 }
 0x4cf   :  { %v1912_v21 = vsub.f32 %v9295_v44, %v1911_v25  ;;  %v1906_v5 = vand.u32 4294901760, %v1905_v28  ;;  %v1926_v10 = vsub.f32 %v9299_v42, %v11461_v54  ;;  %v11465_v54 = vand.u32 4294901760, %v9448_v8 }
 0x4d0   :  { %v1742_v16 = vadd.f32 %v1741_v55, %v1740_v2  ;;  %v1754_v63 = vrot.slane %v1753_v49, 1  ;;  %v1725_v47 = vadd.f32 %v1724_v1, %v1723_v19  ;;  %v1918_v2 = vand.u32 4294901760, %v9297_v30 }
 0x4d1   :  { %v1913_v20 = vand.u32 4294901760, %v1912_v21  ;;  %v11452_v55 = vand.u32 4294901760, %v9301_v51  ;;  %v11449_v1 = vand.u32 4294901760, %v9303_v18 }
 0x4d2   :  { %v1756_v48 = vsel %vm241_vm4, %v1711_v31, %v1742_v16  ;;  %v1755_v17 = vadd.f32 %v1754_v63, %v1753_v49  ;;  %v1919_v0 = vsub.f32 %v9297_v30, %v1918_v2 }
 0x4d3   :  { %v9549_v53 = vand.u32 4294901760, %v1756_v48  ;;  %v7692_v16 = vpack.c.bf16 %v1913_v20, %v1906_v5  ;;  %v1933_v28 = vsub.f32 %v9301_v51, %v11452_v55 }
 0x4d4   :  { %v1757_v56 = vsel %vm241_vm4, %v1725_v47, %v1755_v17  ;;  %v1920_v63 = vand.u32 4294901760, %v1919_v0  ;;  %v11451_v47 = vand.u32 4294901760, %v9307_v23  ;;  %v11460_v0 = vand.u32 4294901760, %v9367_v52 }
 0x4d5   :  { %v1789_v6 = vsel %vm1712_vm6, %v1757_v56, 0  ;;  %v9557_v33 = vsub.f32 %v1756_v48, %v9549_v53  ;;  %v11450_v48 = vand.u32 4294901760, %v9305_v46  ;;  %v1927_v56 = vand.u32 4294901760, %v1926_v10 }
 0x4d6   :  { %v9563_v35 = vand.u32 4294901760, %v1789_v6  ;;  %v1954_v20 = vsub.f32 %v9307_v23, %v11451_v47  ;;  %v11457_v10 = vand.u32 4294901760, %v9369_v39 }
 0x4d7   :  { %v1893_v24 = vand.u32 4294901760, %v9557_v33  ;;  %v1947_v5 = vsub.f32 %v9305_v46, %v11450_v48  ;;  %v1961_v48 = vsub.f32 %v9367_v52, %v11460_v0 }
 0x4d8   :  { %v9568_v38 = vsub.f32 %v1789_v6, %v9563_v35  ;;  %v1940_v6 = vsub.f32 %v9303_v18, %v11449_v1  ;;  %v1934_v1 = vand.u32 4294901760, %v1933_v28  ;;  %v1968_v47 = vsub.f32 %v9369_v39, %v11457_v10 }
 0x4d9   :  { %v1894_v49 = vsub.f32 %v9557_v33, %v1893_v24  ;;  %v1962_v28 = vand.u32 4294901760, %v1961_v48  ;;  %v11459_v48 = vand.u32 4294901760, %v9439_v15 }
 0x4da   :  { %v1887_v19 = vand.u32 4294901760, %v9568_v38 }
 0x4db   :  { %v1895_v21 = vand.u32 4294901760, %v1894_v49  ;;  %v1941_v49 = vand.u32 4294901760, %v1940_v6  ;;  %v1969_v6 = vand.u32 4294901760, %v1968_v47 }
 0x4dc   :  { %v1888_v31 = vsub.f32 %v9568_v38, %v1887_v19 }
 0x4dd   :  { %v7698_v55 = vpack.c.bf16 %v1941_v49, %v1934_v1  ;;  %v11454_v1 = vand.u32 4294901760, %v9433_v11  ;;  %v7704_v49 = vpack.c.bf16 %v1969_v6, %v1962_v28  ;;  %v11469_v6 = vand.u32 4294901760, %v9444_v22 }
 0x4de   :  { %v1889_v17 = vand.u32 4294901760, %v1888_v31  ;;  %v7695_v31 = vpack.c.bf16 %v1927_v56, %v1920_v63  ;;  %v11453_v63 = vand.u32 4294901760, %v9380_v32 }
 0x4e0   :  { %1890 = vmatprep.mubr.f32.mxu0 %v1889_v17  ;;  %v1948_v17 = vand.u32 4294901760, %v1947_v5 }
 0x4e1   :  { %1896 = vmatmul.mubr.f32.vlgmr.msra.gmra.mrb[10].mxu0 %v1895_v21  ;;  %v1955_v21 = vand.u32 4294901760, %v1954_v20  ;;  %v1982_v20 = vsub.f32 %v9380_v32, %v11453_v63 }
 0x4e2   :  { %7693 = vmatpush1.bf16.msra.mxu0 %v7692_v16  ;;  %2116 = vmatprep.mubr.f32.mxu0 %v9563_v35  ;;  %v11455_v16 = vand.u32 4294901760, %v9378_v37 }
 0x4e3   :  { %7694 = vmatprep.subr.bf16.mxu0 %v11578_v59  ;;  %v7701_v56 = vpack.c.bf16 %v1955_v21, %v1948_v17  ;;  %v11458_v17 = vand.u32 4294901760, %v9437_v14  ;;  %v1983_v47 = vand.u32 4294901760, %v1982_v20  ;;  %v1989_v21 = vsub.f32 %v9433_v11, %v11454_v1 }
 0x4e4   :  { %v1975_v5 = vsub.f32 %v9378_v37, %v11455_v16 }
 0x4e5   :  { %v2003_v28 = vsub.f32 %v9437_v14, %v11458_v17  ;;  %v1990_v1 = vand.u32 4294901760, %v1989_v21  ;;  %v2017_v17 = vsub.f32 %v9444_v22, %v11469_v6  ;;  %v2031_v21 = vsub.f32 %v9448_v8, %v11465_v54 }
 0x4e6   :  { %7696 = vmatpush1.bf16.msra.mxu0 %v7695_v31  ;;  %v11456_v31 = vand.u32 4294901760, %v9435_v12  ;;  %v2086_v6 = vand.u32 4294901760, %v9476_v45 }
 0x4e7   :  { %7697 = vmatprep.subr.bf16.mxu0 %v11578_v59 }
 0x4e8   :  { %v1996_v63 = vsub.f32 %v9435_v12, %v11456_v31  ;;  %v2004_v31 = vand.u32 4294901760, %v2003_v28 }
 0x4ea   :  { %7699 = vmatpush1.bf16.msra.mxu0 %v7698_v55  ;;  %v1976_v55 = vand.u32 4294901760, %v1975_v5  ;;  %v11468_v5 = vand.u32 4294901760, %v9446_v7  ;;  %v1997_v16 = vand.u32 4294901760, %v1996_v63 }
 0x4eb   :  { %7700 = vmatprep.subr.bf16.mxu0 %v11578_v59 }
 0x4ec   :  { %v7707_v20 = vpack.c.bf16 %v1983_v47, %v1976_v55  ;;  %v7710_v0 = vpack.c.bf16 %v1997_v16, %v1990_v1  ;;  %v2018_v55 = vand.u32 4294901760, %v2017_v17  ;;  %v11462_v16 = vand.u32 4294901760, %v9458_v57 }
 0x4ed   :  { %v11464_v1 = vand.u32 4294901760, %v9460_v58 }
 0x4ee   :  { %7702 = vmatpush1.bf16.msra.mxu0 %v7701_v56  ;;  %v2010_v56 = vsub.f32 %v9439_v15, %v11459_v48  ;;  %v2024_v48 = vsub.f32 %v9446_v7, %v11468_v5 }
 0x4ef   :  { %7703 = vmatprep.subr.bf16.mxu0 %v11578_v59 }
 0x4f0   :  { %v2011_v10 = vand.u32 4294901760, %v2010_v56  ;;  %v2025_v47 = vand.u32 4294901760, %v2024_v48  ;;  %v2045_v48 = vsub.f32 %v9458_v57, %v11462_v16 }
 0x4f2   :  { %7705 = vmatpush1.bf16.msra.mxu0 %v7704_v49  ;;  %v11463_v49 = vand.u32 4294901760, %v9450_v41  ;;  %v7713_v63 = vpack.c.bf16 %v2011_v10, %v2004_v31  ;;  %v7716_v56 = vpack.c.bf16 %v2025_v47, %v2018_v55  ;;  %v11466_v10 = vand.u32 4294901760, %v9462_v27 }
 0x4f3   :  { %7706 = vmatprep.subr.bf16.mxu0 %v11578_v59  ;;  %v11467_v31 = vand.u32 4294901760, %v9464_v50  ;;  %v2072_v47 = vand.u32 4294901760, %v9471_v40  ;;  %v2046_v16 = vand.u32 4294901760, %v2045_v48 }
 0x4f4   :  { %v2038_v28 = vsub.f32 %v9450_v41, %v11463_v49  ;;  %v2059_v55 = vsub.f32 %v9462_v27, %v11466_v10 }
 0x4f5   :  { %v2073_v10 = vsub.f32 %v9471_v40, %v2072_v47 }
 0x4f6   :  { %7708 = vmatpush1.bf16.msra.mxu0 %v7707_v20  ;;  %v2039_v17 = vand.u32 4294901760, %v2038_v28  ;;  %v2052_v20 = vsub.f32 %v9460_v58, %v11464_v1  ;;  %v2060_v1 = vand.u32 4294901760, %v2059_v55 }
 0x4f7   :  { %7709 = vmatprep.subr.bf16.mxu0 %v11578_v59 }
 0x4f8   :  { %v2053_v49 = vand.u32 4294901760, %v2052_v20  ;;  %v2087_v20 = vsub.f32 %v9476_v45, %v2086_v6 }
 0x4fa   :  { %7711 = vmatpush1.bf16.msra.mxu0 %v7710_v0  ;;  %v2032_v0 = vand.u32 4294901760, %v2031_v21  ;;  %v2079_v21 = vand.u32 4294901760, %v9473_v29  ;;  %v7722_v5 = vpack.c.bf16 %v2053_v49, %v2046_v16  ;;  %v2100_v49 = vand.u32 4294901760, %v9483_v61 }
 0x4fb   :  { %7712 = vmatprep.subr.bf16.mxu0 %v11578_v59  ;;  %v2107_v16 = vand.u32 4294901760, %v9485_v9 }
 0x4fc   :  { %v7719_v28 = vpack.c.bf16 %v2039_v17, %v2032_v0  ;;  %v2074_v17 = vand.u32 4294901760, %v2073_v10 }
 0x4fd   :  { %v2108_v10 = vsub.f32 %v9485_v9, %v2107_v16 }
 0x4fe   :  { %7714 = vmatpush1.bf16.msra.mxu0 %v7713_v63  ;;  %v2066_v63 = vsub.f32 %v9464_v50, %v11467_v31  ;;  %v2080_v31 = vsub.f32 %v9473_v29, %v2079_v21 }
 0x4ff   :  { %7715 = vmatprep.subr.bf16.mxu0 %v11578_v59 }
 0x500   :  { %v2067_v54 = vand.u32 4294901760, %v2066_v63  ;;  %v2081_v48 = vand.u32 4294901760, %v2080_v31 }
 0x502   :  { %7717 = vmatpush1.bf16.msra.mxu0 %v7716_v56  ;;  %v11470_v56 = vand.u32 4294901760, %v9481_v60  ;;  %v7725_v0 = vpack.c.bf16 %v2067_v54, %v2060_v1  ;;  %v7728_v63 = vpack.c.bf16 %v2081_v48, %v2074_v17  ;;  %v2088_v54 = vand.u32 4294901760, %v2087_v20 }
 0x503   :  { %7718 = vmatprep.subr.bf16.mxu0 %v11578_v59  ;;  %v7737_v17 = vpack.c.bf16 %v9295_v44, %v9293_v36  ;;  %v7740_v48 = vpack.c.bf16 %v9299_v42, %v9297_v30  ;;  %v7746_v20 = vpack.c.bf16 %v9307_v23, %v9305_v46  ;;  %v11649_v36 = vand.u32 4294901760, %v9301_v51 }
 0x504   :  { %v2094_v55 = vsub.f32 %v9481_v60, %v11470_v56  ;;  %v2109_v56 = vand.u32 4294901760, %v2108_v10  ;;  %v7764_v10 = vpack.c.bf16 %v9450_v41, %v9448_v8  ;;  %v11650_v44 = vand.u32 4294901760, %v9303_v18 }
 0x505   :  { %v11653_v30 = vand.u32 4294901760, %v9367_v52 }
 0x506   :  { %7720 = vmatpush1.bf16.msra.mxu0 %v7719_v28  ;;  %v2095_v1 = vand.u32 4294901760, %v2094_v55  ;;  %v7749_v55 = vpack.c.bf16 %v9369_v39, %v9367_v52  ;;  %v11659_v52 = vand.u32 4294901760, %v9437_v14 }
 0x507   :  { %7721 = vmatprep.subr.bf16.mxu0 %v11578_v59 }
 0x508   :  { %v7731_v31 = vpack.c.bf16 %v2095_v1, %v2088_v54  ;;  %v7755_v54 = vpack.c.bf16 %v9435_v12, %v9433_v11  ;;  %v7758_v1 = vpack.c.bf16 %v9439_v15, %v9437_v14  ;;  %v11665_v14 = vand.u32 4294901760, %v9458_v57 }
 0x50a   :  { %7723 = vmatpush1.bf16.msra.mxu0 %v7722_v5  ;;  %v2101_v5 = vsub.f32 %v9483_v61, %v2100_v49 }
 0x50b   :  { %7724 = vmatprep.subr.bf16.mxu0 %v11578_v59 }
 0x50c   :  { %v2102_v28 = vand.u32 4294901760, %v2101_v5  ;;  %v7761_v5 = vpack.c.bf16 %v9446_v7, %v9444_v22 }
 0x50e   :  { %7726 = vmatpush1.bf16.msra.mxu0 %v7725_v0  ;;  %v7734_v0 = vpack.c.bf16 %v2109_v56, %v2102_v28  ;;  %v7743_v56 = vpack.c.bf16 %v9303_v18, %v9301_v51  ;;  %v7770_v28 = vpack.c.bf16 %v9464_v50, %v9462_v27  ;;  %v11655_v51 = vand.u32 4294901760, %v9378_v37 }
 0x50f   :  { %7727 = vmatprep.subr.bf16.mxu0 %v11578_v59  ;;  %v11656_v18 = vand.u32 4294901760, %v9380_v32 }
 0x512   :  { %7729 = vmatpush1.bf16.msra.mxu0 %v7728_v63  ;;  %v7752_v63 = vpack.c.bf16 %v9380_v32, %v9378_v37  ;;  %v11661_v37 = vand.u32 4294901760, %v9444_v22  ;;  %v11662_v32 = vand.u32 4294901760, %v9446_v7  ;;  %v11667_v7 = vand.u32 4294901760, %v9462_v27 }
 0x513   :  { %7730 = vmatprep.subr.bf16.mxu0 %v11578_v59  ;;  %v11668_v22 = vand.u32 4294901760, %v9464_v50 }
 0x516   :  { %7732 = vmatpush1.bf16.msra.mxu0 %v7731_v31  ;;  %v7767_v31 = vpack.c.bf16 %v9460_v58, %v9458_v57 }
 0x517   :  { %7733 = vmatprep.subr.bf16.mxu0 %v11578_v59 }
 0x51a   :  { %7735 = vmatpush1.bf16.msra.mxu0 %v7734_v0  ;;  %v7773_v0 = vpack.c.bf16 %v9473_v29, %v9471_v40 }
 0x51b   :  { %7736 = vmatprep.subr.bf16.mxu0 %v11578_v59 }
 0x51d   :  { %2118 = vmatmul.mubr.f32.vlgmr.msra.gmra.mrb[10].mxu0 %v9549_v53 }
 0x51e   :  { %7738 = vmatpush1.bf16.msra.mxu0 %v7737_v17  ;;  %2249 = vmatprep.mubr.f32.mxu0 %v9568_v38  ;;  %v7776_v17 = vpack.c.bf16 %v9481_v60, %v9476_v45  ;;  %v11639_v38 = vld [vmem:[#allocation11_spill] sm:$0xff] }
 0x51f   :  { %7739 = vmatprep.subr.bf16.mxu0 %v11578_v59 }
 0x522   :  { %7741 = vmatpush1.bf16.msra.mxu0 %v7740_v48  ;;  %v7779_v48 = vpack.c.bf16 %v9485_v9, %v9483_v61 }
 0x523   :  { %7742 = vmatprep.subr.bf16.mxu0 %v11578_v59 }
 0x526   :  { %7744 = vmatpush1.bf16.msra.mxu0 %v7743_v56  ;;  %v11641_v56 = vld [vmem:[#allocation9_spill] sm:$0xff] }
 0x527   :  { %7745 = vmatprep.subr.bf16.mxu0 %v11578_v59 }
 0x52a   :  { %7747 = vmatpush1.bf16.msra.mxu0 %v7746_v20  ;;  %v11642_v20 = vld [vmem:[#allocation12_spill] sm:$0xff] }
 0x52b   :  { %7748 = vmatprep.subr.bf16.mxu0 %v11578_v59 }
 0x52e   :  { %7750 = vmatpush1.bf16.msra.mxu0 %v7749_v55  ;;  %v11643_v55 = vld [vmem:[#allocation14_spill] sm:$0xff] }
 0x52f   :  { %7751 = vmatprep.subr.bf16.mxu0 %v11578_v59 }
 0x532   :  { %7753 = vmatpush1.bf16.msra.mxu0 %v7752_v63  ;;  %v11644_v63 = vld [vmem:[#allocation16_spill] sm:$0xff] }
 0x533   :  { %7754 = vmatprep.subr.bf16.mxu0 %v11578_v59 }
 0x536   :  { %7756 = vmatpush1.bf16.msra.mxu0 %v7755_v54  ;;  %v11645_v54 = vld [vmem:[#allocation13_spill] sm:$0xff] }
 0x537   :  { %7757 = vmatprep.subr.bf16.mxu0 %v11578_v59 }
 0x53a   :  { %7759 = vmatpush1.bf16.msra.mxu0 %v7758_v1  ;;  %v11646_v1 = vld [vmem:[#allocation15_spill] sm:$0xff] }
 0x53b   :  { %7760 = vmatprep.subr.bf16.mxu0 %v11578_v59 }
 0x53e   :  { %7762 = vmatpush1.bf16.msra.mxu0 %v7761_v5  ;;  %v11647_v5 = vld [vmem:[#allocation17_spill] sm:$0xff] }
 0x53f   :  { %7763 = vmatprep.subr.bf16.mxu0 %v11578_v59 }
 0x542   :  { %7765 = vmatpush1.bf16.msra.mxu0 %v7764_v10  ;;  %v7827_v10 = vpack.c.bf16 %v1911_v25, %v1904_v4  ;;  %v7833_v4 = vpack.c.bf16 %v11650_v44, %v11649_v36  ;;  %v11651_v25 = vand.u32 4294901760, %v9305_v46  ;;  %v11657_v46 = vand.u32 4294901760, %v9433_v11 }
 0x543   :  { %7766 = vmatprep.subr.bf16.mxu0 %v11578_v59  ;;  %v11663_v11 = vand.u32 4294901760, %v9448_v8  ;;  %v7860_v36 = vpack.c.bf16 %v11668_v22, %v11667_v7  ;;  %v7863_v8 = vpack.c.bf16 %v2079_v21, %v2072_v47 }
 0x546   :  { %7768 = vmatpush1.bf16.msra.mxu0 %v7767_v31  ;;  %v11648_v31 = vand.u32 4294901760, %v9299_v42  ;;  %v11654_v42 = vand.u32 4294901760, %v9369_v39  ;;  %v11660_v39 = vand.u32 4294901760, %v9439_v15  ;;  %v11666_v15 = vand.u32 4294901760, %v9460_v58 }
 0x547   :  { %7769 = vmatprep.subr.bf16.mxu0 %v11578_v59  ;;  %v7869_v58 = vpack.c.bf16 %v2107_v16, %v2100_v49 }
 0x54a   :  { %7771 = vmatpush1.bf16.msra.mxu0 %v7770_v28  ;;  %v7830_v28 = vpack.c.bf16 %v11648_v31, %v1918_v2  ;;  %v7839_v2 = vpack.c.bf16 %v11654_v42, %v11653_v30 }
 0x54b   :  { %7772 = vmatprep.subr.bf16.mxu0 %v11578_v59 }
 0x54e   :  { %7774 = vmatpush1.bf16.msra.mxu0 %v7773_v0  ;;  %v7842_v0 = vpack.c.bf16 %v11656_v18, %v11655_v51 }
 0x54f   :  { %7775 = vmatprep.subr.bf16.mxu0 %v11578_v59 }
 0x552   :  { %7777 = vmatpush1.bf16.msra.mxu0 %v7776_v17 }
 0x553   :  { %7778 = vmatprep.subr.bf16.mxu0 %v11578_v59 }
 0x556   :  { %7780 = vmatpush1.bf16.msra.mxu0 %v7779_v48  ;;  %v7848_v48 = vpack.c.bf16 %v11660_v39, %v11659_v52  ;;  %v2636_v52 = vld [vmem:[%s11362_s9] sm:$0x1] }
 0x557   :  { %7781 = vmatprep.subr.bf16.mxu0 %v11578_v59 }
 0x559   :  { %2252 = vmatmul.mubr.f32.vlgmr.msra.gmra.mrb[10].mxu0 %v9557_v33  ;;  %v11652_v33 = vand.u32 4294901760, %v9307_v23  ;;  %v11658_v23 = vand.u32 4294901760, %v9435_v12  ;;  %v11664_v12 = vand.u32 4294901760, %v9450_v41  ;;  %v11669_v41 = vand.u32 4294901760, %v9481_v60 }
 0x55a   :  { %7783 = vmatpush1.bf16.msra.mxu0 %v9319_v62  ;;  %2354 = vmatprep.mubr.f32.mxu0 %v1887_v19  ;;  %v11640_v19 = vld [vmem:[#allocation10_spill] sm:$0xff] }
 0x55b   :  { %7784 = vmatprep.subr.bf16.mxu0 %v11578_v59  ;;  %v7845_v17 = vpack.c.bf16 %v11658_v23, %v11657_v46  ;;  %v7854_v31 = vpack.c.bf16 %v11664_v12, %v11663_v11  ;;  %v7866_v57 = vpack.c.bf16 %v11669_v41, %v2086_v6  ;;  %v11670_v46 = vld [vmem:[#allocation5_spill] sm:$0xff]  ;;  %v11671_v11 = vld [vmem:[#allocation7_spill] sm:$0xff] }
 0x55c   :  { %v8444_v41 = vld [vmem:[%s11366_s13 + $0x4] ss:$12 sps:$4 sm:$0xff]  }
 0x55e   :  { %7786 = vmatpush1.bf16.msra.mxu0 %v9326_v26 }
 0x55f   :  { %7787 = vmatprep.subr.bf16.mxu0 %v11578_v59 }
 0x562   :  { %7789 = vmatpush1.bf16.msra.mxu0 %v9330_v43 }
 0x563   :  { %7790 = vmatprep.subr.bf16.mxu0 %v11578_v59 }
 0x566   :  { %7792 = vmatpush1.bf16.msra.mxu0 %v9334_v3 }
 0x567   :  { %7793 = vmatprep.subr.bf16.mxu0 %v11578_v59 }
 0x56a   :  { %7795 = vmatpush1.bf16.msra.mxu0 %v9345_v13 }
 0x56b   :  { %7796 = vmatprep.subr.bf16.mxu0 %v11578_v59 }
 0x56e   :  { %7798 = vmatpush1.bf16.msra.mxu0 %v9355_v34 }
 0x56f   :  { %7799 = vmatprep.subr.bf16.mxu0 %v11578_v59 }
 0x572   :  { %7801 = vmatpush1.bf16.msra.mxu0 %v11639_v38 }
 0x573   :  { %7802 = vmatprep.subr.bf16.mxu0 %v11578_v59 }
 0x576   :  { %7804 = vmatpush1.bf16.msra.mxu0 %v11640_v19 }
 0x577   :  { %7805 = vmatprep.subr.bf16.mxu0 %v11578_v59 }
 0x57a   :  { %7807 = vmatpush1.bf16.msra.mxu0 %v11641_v56 }
 0x57b   :  { %7808 = vmatprep.subr.bf16.mxu0 %v11578_v59 }
 0x57e   :  { %7810 = vmatpush1.bf16.msra.mxu0 %v11642_v20 }
 0x57f   :  { %7811 = vmatprep.subr.bf16.mxu0 %v11578_v59 }
 0x582   :  { %7813 = vmatpush1.bf16.msra.mxu0 %v11643_v55 }
 0x583   :  { %7814 = vmatprep.subr.bf16.mxu0 %v11578_v59 }
 0x586   :  { %7816 = vmatpush1.bf16.msra.mxu0 %v11644_v63 }
 0x587   :  { %7817 = vmatprep.subr.bf16.mxu0 %v11578_v59 }
 0x58a   :  { %7819 = vmatpush1.bf16.msra.mxu0 %v11645_v54 }
 0x58b   :  { %7820 = vmatprep.subr.bf16.mxu0 %v11578_v59 }
 0x58e   :  { %7822 = vmatpush1.bf16.msra.mxu0 %v11646_v1 }
 0x58f   :  { %7823 = vmatprep.subr.bf16.mxu0 %v11578_v59 }
 0x592   :  { %7825 = vmatpush1.bf16.msra.mxu0 %v11647_v5 }
 0x593   :  { %7826 = vmatprep.subr.bf16.mxu0 %v11578_v59 }
 0x595   :  { %2358 = vmatmul.mubr.f32.vlgmr.msra.gmra.mrb[10].mxu0 %v1893_v24  ;;  %v7836_v24 = vpack.c.bf16 %v11652_v33, %v11651_v25 }
 0x596   :  { %7828 = vmatpush1.bf16.msra.mxu0 %v7827_v10  ;;  %2518 = vmatprep.mubr.f32.mxu0 %v9563_v35  ;;  %v7851_v10 = vpack.c.bf16 %v11662_v32, %v11661_v37  ;;  %v2655_v37 = vld [vmem:[%s11363_s10] sm:$0x1] }
 0x597   :  { %7829 = vmatprep.subr.bf16.mxu0 %v11578_v59 }
 0x59a   :  { %7831 = vmatpush1.bf16.msra.mxu0 %v7830_v28  ;;  %v7857_v28 = vpack.c.bf16 %v11666_v15, %v11665_v14 }
 0x59b   :  { %7832 = vmatprep.subr.bf16.mxu0 %v11578_v59 }
 0x59e   :  { %7834 = vmatpush1.bf16.msra.mxu0 %v7833_v4 }
 0x59f   :  { %7835 = vmatprep.subr.bf16.mxu0 %v11578_v59 }
 0x5a2   :  { %7837 = vmatpush1.bf16.msra.mxu0 %v7836_v24 }
 0x5a3   :  { %7838 = vmatprep.subr.bf16.mxu0 %v11578_v59 }
 0x5a6   :  { %7840 = vmatpush1.bf16.msra.mxu0 %v7839_v2 }
 0x5a7   :  { %7841 = vmatprep.subr.bf16.mxu0 %v11578_v59 }
 0x5aa   :  { %7843 = vmatpush1.bf16.msra.mxu0 %v7842_v0 }
 0x5ab   :  { %7844 = vmatprep.subr.bf16.mxu0 %v11578_v59 }
 0x5ae   :  { %7846 = vmatpush1.bf16.msra.mxu0 %v7845_v17 }
 0x5af   :  { %7847 = vmatprep.subr.bf16.mxu0 %v11578_v59 }
 0x5b2   :  { %7849 = vmatpush1.bf16.msra.mxu0 %v7848_v48 }
 0x5b3   :  { %7850 = vmatprep.subr.bf16.mxu0 %v11578_v59 }
 0x5b6   :  { %7852 = vmatpush1.bf16.msra.mxu0 %v7851_v10 }
 0x5b7   :  { %7853 = vmatprep.subr.bf16.mxu0 %v11578_v59 }
 0x5ba   :  { %7855 = vmatpush1.bf16.msra.mxu0 %v7854_v31 }
 0x5bb   :  { %7856 = vmatprep.subr.bf16.mxu0 %v11578_v59 }
 0x5be   :  { %7858 = vmatpush1.bf16.msra.mxu0 %v7857_v28 }
 0x5bf   :  { %7859 = vmatprep.subr.bf16.mxu0 %v11578_v59 }
 0x5c2   :  { %7861 = vmatpush1.bf16.msra.mxu0 %v7860_v36 }
 0x5c3   :  { %7862 = vmatprep.subr.bf16.mxu0 %v11578_v59 }
 0x5c6   :  { %7864 = vmatpush1.bf16.msra.mxu0 %v7863_v8  ;;  %v11672_v8 = vmov 0.0  }
 0x5c7   :  { %7865 = vmatprep.subr.bf16.mxu0 %v11578_v59 }
 0x5ca   :  { %7867 = vmatpush1.bf16.msra.mxu0 %v7866_v57  ;;  %v8442_v57 = vld [vmem:[%s11366_s13] ss:$12 sps:$4 sm:$0xff]  }
 0x5cb   :  { %7868 = vmatprep.subr.bf16.mxu0 %v11578_v59 }
 0x5ce   :  { %7870 = vmatpush1.bf16.msra.mxu0 %v7869_v58  ;;  %v8447_v58 = vld [vmem:[%s11366_s13 + $0x1c] ss:$12 sps:$4 sm:$0xff]  }
 0x5cf   :  { %7871 = vmatprep.subr.bf16.mxu0 %v11578_v59 }
 0x5d1   :  { %2520 = vmatmul.mubr.f32.vlgmr.msra.gmra.mrb[10].mxu0 %v9549_v53 }
 0x5d2   :  { %7873 = vmatpush1.bf16.msra.mxu0 %v9319_v62  ;;  %2620 = vmatprep.mubr.f32.mxu0 %v9563_v35  ;;  %v2666_v62 = vld [vmem:[%s11365_s12 + $0x8] sm:$0xff] }
 0x5d3   :  { %7874 = vmatprep.subr.bf16.mxu0 %v11578_v59 }
 0x5d6   :  { %7876 = vmatpush1.bf16.msra.mxu0 %v9326_v26  ;;  %v2668_v26 = vld [vmem:[%s11365_s12 + $0x18] sm:$0xff] }
 0x5d7   :  { %7877 = vmatprep.subr.bf16.mxu0 %v11578_v59 }
 0x5da   :  { %7879 = vmatpush1.bf16.msra.mxu0 %v9330_v43  ;;  %v2665_v43 = vld [vmem:[%s11365_s12] sm:$0xff] }
 0x5db   :  { %7880 = vmatprep.subr.bf16.mxu0 %v11578_v59  ;;  %v2675_v27 = vand.u32 4294901760, %v2665_v43 }
 0x5dd   :  { %v2760_v60 = vsub.f32 %v2665_v43, %v2675_v27  ;;  %v8448_v43 = vld [vmem:[%s11366_s13 + $0x30] ss:$12 sps:$4 sm:$0xff]  }
 0x5de   :  { %7882 = vmatpush1.bf16.msra.mxu0 %v9334_v3  ;;  %v2673_v3 = vand.u32 4294901760, %v2666_v62 }
 0x5df   :  { %7883 = vmatprep.subr.bf16.mxu0 %v11578_v59  ;;  %v2761_v6 = vand.u32 4294901760, %v2760_v60 }
 0x5e0   :  { %v2754_v29 = vsub.f32 %v2666_v62, %v2673_v3  ;;  %v8445_v62 = vld [vmem:[%s11366_s13 + $0x18] ss:$12 sps:$4 sm:$0xff]  }
 0x5e1   :  { %v2762_v16 = vsub.f32 %v2760_v60, %v2761_v6 }
 0x5e2   :  { %7885 = vmatpush1.bf16.msra.mxu0 %v9345_v13  ;;  %v2677_v13 = vand.u32 4294901760, %v2668_v26 }
 0x5e3   :  { %7886 = vmatprep.subr.bf16.mxu0 %v11578_v59 }
 0x5e4   :  { %v9905_v40 = vpack.c.bf16 %v2677_v13, %v2673_v3  ;;  %v2766_v45 = vsub.f32 %v2668_v26, %v2677_v13  ;;  %v8450_v26 = vld [vmem:[%s11366_s13 + $0x34] ss:$12 sps:$4 sm:$0xff]   ;;  %v8453_v3 = vld [vmem:[%s11366_s13 + $0x4c] ss:$12 sps:$4 sm:$0xff]  }
 0x5e5   :  { %v8451_v13 = vld [vmem:[%s11366_s13 + $0x48] ss:$12 sps:$4 sm:$0xff]  }
 0x5e6   :  { %7888 = vmatpush1.bf16.msra.mxu0 %v9355_v34  ;;  %v2667_v34 = vld [vmem:[%s11365_s12 + $0x10] sm:$0xff]  ;;  %7917 = vmatprep.subr.bf16.mxu1 %v9905_v40  ;;  %v2767_v35 = vand.u32 4294901760, %v2766_v45 }
 0x5e7   :  { %7889 = vmatprep.subr.bf16.mxu0 %v11578_v59  ;;  %v2679_v50 = vand.u32 4294901760, %v2667_v34 }
 0x5e8   :  { %v2768_v49 = vsub.f32 %v2766_v45, %v2767_v35 }
 0x5e9   :  { %v9907_v61 = vpack.c.bf16 %v2679_v50, %v2675_v27  ;;  %v2772_v9 = vsub.f32 %v2667_v34, %v2679_v50  ;;  %v8456_v34 = vld [vmem:[%s11366_s13 + $0x64] ss:$12 sps:$4 sm:$0xff]   ;;  %v8454_v27 = vld [vmem:[%s11366_s13 + $0x60] ss:$12 sps:$4 sm:$0xff]   ;;  %v8459_v50 = vld [vmem:[%s11366_s13 + $0x7c] ss:$12 sps:$4 sm:$0xff]  }
 0x5ea   :  { %7891 = vmatpush1.bf16.msra.mxu0 %v11639_v38 }
 0x5eb   :  { %7892 = vmatprep.subr.bf16.mxu0 %v11578_v59  ;;  %7919 = vmatpush1.bf16.msra.mxu1 %v9907_v61  ;;  %v2773_v47 = vand.u32 4294901760, %v2772_v9 }
 0x5ed   :  { %v2774_v38 = vsub.f32 %v2772_v9, %v2773_v47  ;;  %v7934_v4 = vpack.c.bf16 %v2773_v47, %v2761_v6  ;;  %v8469_v6 = vld [vmem:[%s11366_s13 + $0xd8] ss:$12 sps:$4 sm:$0xff]   ;;  %v8474_v47 = vld [vmem:[%s11366_s13 + $0xf4] ss:$12 sps:$4 sm:$0xff]  }
 0x5ee   :  { %7894 = vmatpush1.bf16.msra.mxu0 %v11640_v19 }
 0x5ef   :  { %7895 = vmatprep.subr.bf16.mxu0 %v11578_v59 }
 0x5f2   :  { %7897 = vmatpush1.bf16.msra.mxu0 %v11641_v56  ;;  %v2769_v56 = vand.u32 4294901760, %v2768_v49  ;;  %v8477_v49 = vld [vmem:[%s11366_s13 + $0x10c] ss:$12 sps:$4 sm:$0xff]  }
 0x5f3   :  { %7898 = vmatprep.subr.bf16.mxu0 %v11578_v59 }
 0x5f6   :  { %7900 = vmatpush1.bf16.msra.mxu0 %v11642_v20  ;;  %v2763_v20 = vand.u32 4294901760, %v2762_v16  ;;  %v8475_v16 = vld [vmem:[%s11366_s13 + $0x108] ss:$12 sps:$4 sm:$0xff]  }
 0x5f7   :  { %7901 = vmatprep.subr.bf16.mxu0 %v11578_v59 }
 0x5fa   :  { %7903 = vmatpush1.bf16.msra.mxu0 %v11643_v55  ;;  %v2775_v55 = vand.u32 4294901760, %v2774_v38  ;;  %v8480_v38 = vld [vmem:[%s11366_s13 + $0x124] ss:$12 sps:$4 sm:$0xff]  }
 0x5fb   :  { %7904 = vmatprep.subr.bf16.mxu0 %v11578_v59 }
 0x5fe   :  { %7906 = vmatpush1.bf16.msra.mxu0 %v11644_v63 }
 0x5ff   :  { %7907 = vmatprep.subr.bf16.mxu0 %v11578_v59 }
 0x602   :  { %7909 = vmatpush1.bf16.msra.mxu0 %v11645_v54  ;;  %v7922_v54 = vpack.c.bf16 %v2775_v55, %v2763_v20  ;;  %v8481_v20 = vld [vmem:[%s11366_s13 + $0x138] ss:$12 sps:$4 sm:$0xff]   ;;  %v8484_v55 = vld [vmem:[%s11366_s13 + $0x150] ss:$12 sps:$4 sm:$0xff]  }
 0x603   :  { %7910 = vmatprep.subr.bf16.mxu0 %v11578_v59 }
 0x606   :  { %7912 = vmatpush1.bf16.msra.mxu0 %v11646_v1  ;;  %v7924_v1 = vpack.c.bf16 %v2766_v45, %v2754_v29  ;;  %v8460_v45 = vld [vmem:[%s11366_s13 + $0x90] ss:$12 sps:$4 sm:$0xff]  }
 0x607   :  { %7913 = vmatprep.subr.bf16.mxu0 %v11578_v59 }
 0x60a   :  { %7915 = vmatpush1.bf16.msra.mxu0 %v11647_v5  ;;  %v7926_v5 = vpack.c.bf16 %v2772_v9, %v2760_v60  ;;  %v8465_v60 = vld [vmem:[%s11366_s13 + $0xac] ss:$12 sps:$4 sm:$0xff]   ;;  %v8468_v9 = vld [vmem:[%s11366_s13 + $0xc4] ss:$12 sps:$4 sm:$0xff]  }
 0x60d   :  { %2622 = vmatmul.mubr.f32.vlgmr.msra.gmra.mrb[10].mxu0 %v9549_v53  ;;  %v2755_v53 = vand.u32 4294901760, %v2754_v29 }
 0x60f   :  { %v2756_v21 = vsub.f32 %v2754_v29, %v2755_v53  ;;  %v7932_v44 = vpack.c.bf16 %v2767_v35, %v2755_v53  ;;  %v8462_v29 = vld [vmem:[%s11366_s13 + $0x94] ss:$12 sps:$4 sm:$0xff]   ;;  %v8471_v35 = vld [vmem:[%s11366_s13 + $0xdc] ss:$12 sps:$4 sm:$0xff]  }
 0x610   :  { %v8466_v53 = vld [vmem:[%s11366_s13 + $0xc0] ss:$12 sps:$4 sm:$0xff]  }
 0x611   :  { %v2757_v19 = vand.u32 4294901760, %v2756_v21  ;;  %v8472_v21 = vld [vmem:[%s11366_s13 + $0xf0] ss:$12 sps:$4 sm:$0xff]  }
 0x613   :  { %v7920_v63 = vpack.c.bf16 %v2769_v56, %v2757_v19  ;;  %v8478_v19 = vld [vmem:[%s11366_s13 + $0x120] ss:$12 sps:$4 sm:$0xff]   ;;  %v8483_v56 = vld [vmem:[%s11366_s13 + $0x13c] ss:$12 sps:$4 sm:$0xff]  }
 0x615   :  { %7921 = vmatprep.subr.bf16.mxu1 %v7920_v63  ;;  %v8486_v63 = vld [vmem:[%s11366_s13 + $0x154] ss:$12 sps:$4 sm:$0xff]  }
 0x6e0   :  { %v2623_v25 = vpop.f32.mrb[10].mxu0 }
 0x6e1   :  { %v2627_v33 = vmul.f32 0.0020833334, %v2623_v25  ;;  %v2625_v24 = vpop.f32.mrb[11].mxu0  ;;  %v11674_v25 = vld [vmem:[#allocation20_spill] sm:$0xff] }
 0x6e2   :  { %v11675_v24 = vld [vmem:[#allocation19_spill] sm:$0xff] }
 0x6e3   :  { %v2628_v30 = vmul.f32 %v2627_v33, %v2627_v33 }
 0x6e5   :  { %v2630_v42 = vrot.slane %v2628_v30, 7 }
 0x6e7   :  { %v2632_v2 = vsub.f32 %v2627_v33, %v2630_v42  ;;  %v11676_v42 = vld [vmem:[#allocation8_spill] sm:$0xff] }
 0x6e9   :  { %v2633_v51 = vmax.f32 %v2632_v2, 0.0 }
 0x6eb   :  { %v2634_v18 = vadd.f32 1e-05, %v2633_v51 }
 0x6ed   :  { %8526 = vrsqrt.f32 %v2634_v18  ;;  %v11677_v18 = vld [vmem:[#allocation18_spill] sm:$0xff] }
 0x6f7   :  { %v8527_v0 = vpop.eup %8526 }
 0x6f8   :  { %v2644_v23 = vrot.slane %v8527_v0, %v11670_v46 }
 0x6fa   :  { %v2645_v17 = vcombine.high %v2644_v23, %v2644_v23  ;;  %v11678_v23 = vld [vmem:[#allocation21_spill] sm:$0xff] }
 0x6fc   :  { %v2652_v39 = vrot.slane %v2645_v17, %v11670_v46 }
 0x6fe   :  { %v2654_v48 = vmul.f32 %v2652_v39, %v2636_v52  ;;  %v11679_v52 = vld [vmem:[#allocation23_spill] sm:$0xff] }
 0x700   :  { %v2656_v32 = vmul.f32 %v2654_v48, %v2627_v33 }
 0x702   :  { %v2657_v10 = vsub.f32 %v2655_v37, %v2656_v32 }
 0x704   :  { %v2662_v12 = vrot.slane %v2657_v10, %v11671_v11 }
 0x706   :  { %v2664_v31 = vsel %vm241_vm4, %v2654_v48, %v2662_v12  ;;  %v11680_v48 = vld [vmem:[#allocation25_spill] sm:$0xff] }
 0x707   :  { %v2671_v14 = vsel %vm2669_vm7, %v2664_v31, 0 }
 0x708   :  { %v2742_v15 = vand.u32 4294901760, %v2671_v14 }
 0x70a   :  { %v2743_v28 = vsub.f32 %v2671_v14, %v2742_v15 }
 0x70c   :  { %v2744_v7 = vand.u32 4294901760, %v2743_v28 }
 0x70e   :  { %v2745_v22 = vsub.f32 %v2743_v28, %v2744_v7 }
 0x710   :  { %v2746_v36 = vand.u32 4294901760, %v2745_v22 }
 0x712   :  { %2747 = vmatmul.mubr.f32.vlgmr.msra.gmra.mrb[2].mxu1 %v2746_v36  ;;  %v11681_v36 = vld [vmem:[#allocation22_spill] sm:$0xff] }
 0x713   :  { %7923 = vmatpush1.bf16.msra.mxu1 %v7922_v54  ;;  %2837 = vmatprep.mubr.f32.mxu1 %v11672_v8  ;;  %v11673_v54 = vmov 0  }
 0x714   :  { %7925 = vmatprep.subr.bf16.mxu1 %v7924_v1 }
 0x71a   :  { %2839 = vmatmul.mubr.f32.vlgmr.msra.gmra.mrb[2].mxu1 %v2742_v15 }
 0x71b   :  { %7927 = vmatpush1.bf16.msra.mxu1 %v7926_v5  ;;  %2917 = vmatprep.mubr.f32.mxu1 %v11672_v8 }
 0x71c   :  { %7929 = vmatprep.subr.bf16.mxu1 %v9905_v40 }
 0x722   :  { %2920 = vmatmul.mubr.f32.vlgmr.msra.gmra.mrb[2].mxu1 %v2743_v28 }
 0x723   :  { %7931 = vmatpush1.bf16.msra.mxu1 %v9907_v61  ;;  %2994 = vmatprep.mubr.f32.mxu1 %v11672_v8 }
 0x724   :  { %7933 = vmatprep.subr.bf16.mxu1 %v7932_v44 }
 0x72a   :  { %2998 = vmatmul.mubr.f32.vlgmr.msra.gmra.mrb[2].mxu1 %v2744_v7  ;;  %v8487_v7 = vld [vmem:[%s11366_s13 + $0x8] ss:$12 sps:$4 sm:$0xff]  }
 0x72b   :  { %7935 = vmatpush1.bf16.msra.mxu1 %v7934_v4  ;;  %3080 = vmatprep.mubr.f32.mxu1 %v11672_v8 }
 0x72c   :  { %7937 = vmatprep.subr.bf16.mxu1 %v9905_v40  ;;  %v8457_v40 = vld [vmem:[%s11366_s13 + $0x78] ss:$12 sps:$4 sm:$0xff]  }
 0x732   :  { %3082 = vmatmul.mubr.f32.vlgmr.msra.gmra.mrb[2].mxu1 %v2742_v15 }
 0x733   :  { %7939 = vmatpush1.bf16.msra.mxu1 %v9907_v61  ;;  %3156 = vmatprep.mubr.f32.mxu1 %v11672_v8  ;;  %v8463_v61 = vld [vmem:[%s11366_s13 + $0xa8] ss:$12 sps:$4 sm:$0xff]  }
 0x734   :  { %3523 = vmatprep.subr.bf16.mxu1 %v8444_v41 }
 0x73a   :  { %3158 = vmatmul.mubr.f32.vlgmr.msra.gmra.mrb[2].mxu1 %v2742_v15 }
 0x73b   :  { %3524 = vmatpush1.bf16.msra.mxu1 %v8442_v57  ;;  %v11682_v57 = vld [vmem:[#allocation24_spill] sm:$0xff] }
 0x73c   :  { %3525 = vmatprep.subr.bf16.mxu1 %v8447_v58 }
 0x73f   :  { %3526 = vmatpush1.bf16.msra.mxu1 %v8445_v62 }
 0x740   :  { %3527 = vmatprep.subr.bf16.mxu1 %v8450_v26  ;;  %v8488_v26 = vld [vmem:[%s11366_s13 + $0x20] ss:$12 sps:$4 sm:$0xff]  }
 0x743   :  { %3528 = vmatpush1.bf16.msra.mxu1 %v8448_v43 }
 0x744   :  { %3529 = vmatprep.subr.bf16.mxu1 %v8453_v3 }
 0x747   :  { %3530 = vmatpush1.bf16.msra.mxu1 %v8451_v13  ;;  %v8489_v13 = vld [vmem:[%s11366_s13 + $0x38] ss:$12 sps:$4 sm:$0xff]  }
 0x748   :  { %3531 = vmatprep.subr.bf16.mxu1 %v8456_v34 }
 0x74b   :  { %3532 = vmatpush1.bf16.msra.mxu1 %v8454_v27  ;;  %v8490_v27 = vld [vmem:[%s11366_s13 + $0x50] ss:$12 sps:$4 sm:$0xff]  }
 0x74c   :  { %3533 = vmatprep.subr.bf16.mxu1 %v8459_v50  ;;  %v8491_v50 = vld [vmem:[%s11366_s13 + $0x68] ss:$12 sps:$4 sm:$0xff]  }
 0x74f   :  { %3534 = vmatpush1.bf16.msra.mxu1 %v8457_v40  ;;  %v8492_v40 = vld [vmem:[%s11366_s13 + $0x80] ss:$12 sps:$4 sm:$0xff]  }
 0x750   :  { %3535 = vmatprep.subr.bf16.mxu1 %v8462_v29  ;;  %v8493_v29 = vld [vmem:[%s11366_s13 + $0x98] ss:$12 sps:$4 sm:$0xff]  }
 0x753   :  { %3536 = vmatpush1.bf16.msra.mxu1 %v8460_v45  ;;  %v8494_v45 = vld [vmem:[%s11366_s13 + $0xb0] ss:$12 sps:$4 sm:$0xff]  }
 0x754   :  { %3537 = vmatprep.subr.bf16.mxu1 %v8465_v60  ;;  %v8495_v60 = vld [vmem:[%s11366_s13 + $0xc8] ss:$12 sps:$4 sm:$0xff]  }
 0x757   :  { %3538 = vmatpush1.bf16.msra.mxu1 %v8463_v61  ;;  %v8496_v61 = vld [vmem:[%s11366_s13 + $0xe0] ss:$12 sps:$4 sm:$0xff]  }
 0x758   :  { %3539 = vmatprep.subr.bf16.mxu1 %v8468_v9  ;;  %v8497_v9 = vld [vmem:[%s11366_s13 + $0xf8] ss:$12 sps:$4 sm:$0xff]  }
 0x75b   :  { %3540 = vmatpush1.bf16.msra.mxu1 %v8466_v53  ;;  %v8498_v53 = vld [vmem:[%s11366_s13 + $0x110] ss:$12 sps:$4 sm:$0xff]  }
 0x75c   :  { %3541 = vmatprep.subr.bf16.mxu1 %v8471_v35  ;;  %v8499_v35 = vld [vmem:[%s11366_s13 + $0x128] ss:$12 sps:$4 sm:$0xff]  }
 0x75f   :  { %3542 = vmatpush1.bf16.msra.mxu1 %v8469_v6  ;;  %v8500_v6 = vld [vmem:[%s11366_s13 + $0x140] ss:$12 sps:$4 sm:$0xff]  }
 0x760   :  { %3543 = vmatprep.subr.bf16.mxu1 %v8474_v47  ;;  %v8501_v47 = vld [vmem:[%s11366_s13 + $0x158] ss:$12 sps:$4 sm:$0xff]  }
 0x763   :  { %3544 = vmatpush1.bf16.msra.mxu1 %v8472_v21  ;;  %v10099_v21 = vld [vmem:[%s11370_s17 + $0x80] sm:$0xff] }
 0x764   :  { %3545 = vmatprep.subr.bf16.mxu1 %v8477_v49  ;;  %v10104_v49 = vld [vmem:[%s11370_s17 + $0x88] sm:$0xff] }
 0x767   :  { %3546 = vmatpush1.bf16.msra.mxu1 %v8475_v16  ;;  %v3811_v16 = vand.u32 4294901760, %v10099_v21 }
 0x768   :  { %3547 = vmatprep.subr.bf16.mxu1 %v8480_v38  ;;  %v3814_v38 = vand.u32 4294901760, %v10104_v49 }
 0x76b   :  { %3548 = vmatpush1.bf16.msra.mxu1 %v8478_v19  ;;  %v3715_v19 = vld [vmem:[%s11370_s17] sm:$0xff] }
 0x76c   :  { %3549 = vmatprep.subr.bf16.mxu1 %v8483_v56  ;;  %v3716_v56 = vld [vmem:[%s11370_s17 + $0x8] sm:$0xff] }
 0x76f   :  { %3550 = vmatpush1.bf16.msra.mxu1 %v8481_v20  ;;  %v3763_v20 = vand.u32 4294901760, %v3715_v19 }
 0x770   :  { %3551 = vmatprep.subr.bf16.mxu1 %v8486_v63  ;;  %v10118_v63 = vpack.c.bf16 %v3814_v38, %v3811_v16 }
 0x772   :  { %8037 = vmatprep.subr.bf16.mxu0 %v10118_v63 }
 0x773   :  { %3552 = vmatpush1.bf16.msra.mxu1 %v8484_v55  ;;  %v3766_v55 = vand.u32 4294901760, %v3716_v56 }
 0x774   :  { %3576 = vmatprep.subr.bf16.mxu1 %v11673_v54 }
 0x80d   :  { %v3159_v1 = vpop.f32.mrb[2].mxu1 }
 0x80e   :  { %v3167_v5 = vrot.slane %v3159_v1, %v11671_v11  ;;  %v3161_v44 = vpop.f32.mrb[3].mxu1  ;;  %v3183_v2 = vrot.slane %v3159_v1, %v11676_v42  ;;  %v10125_v1 = vld [vmem:[%s11370_s17 + $0x90] sm:$0xff] }
 0x80f   :  { %v3171_v4 = vrot.slane %v3161_v44, %v11671_v11  ;;  %v3187_v51 = vrot.slane %v3161_v44, %v11676_v42  ;;  %v3817_v44 = vand.u32 4294901760, %v10125_v1 }
 0x810   :  { %v3172_v33 = vmul.f32 %v3167_v5, %v11674_v25  ;;  %v3174_v30 = vmul.f32 %v3167_v5, %v11675_v24  ;;  %v3176_v41 = vmul.f32 %v3167_v5, %v11681_v36  ;;  %v3178_v58 = vmul.f32 %v3167_v5, %v11682_v57  ;;  %v10130_v5 = vld [vmem:[%s11370_s17 + $0x98] sm:$0xff]  ;;  %v10139_v25 = vld [vmem:[%s11370_s17 + $0x10] sm:$0xff] }
 0x811   :  { %v3173_v0 = vmul.f32 %v3171_v4, %v11677_v18  ;;  %v3175_v17 = vmul.f32 %v3171_v4, %v11678_v23  ;;  %v3177_v39 = vmul.f32 %v3171_v4, %v11679_v52  ;;  %v3179_v37 = vmul.f32 %v3171_v4, %v11680_v48  ;;  %v10165_v18 = vld [vmem:[%s11370_s17 + $0xa0] sm:$0xff]  ;;  %v3722_v36 = vld [vmem:[%s11370_s17 + $0x38] sm:$0xff] }
 0x812   :  { %v3188_v32 = vadd.f32 %v3183_v2, %v3172_v33  ;;  %v3190_v10 = vadd.f32 %v3183_v2, %v3174_v30  ;;  %v3192_v43 = vadd.f32 %v3183_v2, %v3176_v41  ;;  %v3194_v3 = vadd.f32 %v3183_v2, %v3178_v58  ;;  %v10144_v33 = vld [vmem:[%s11370_s17 + $0x18] sm:$0xff]  ;;  %v10179_v52 = vld [vmem:[%s11370_s17 + $0x20] sm:$0xff] }
 0x813   :  { %v3189_v12 = vadd.f32 %v3187_v51, %v3173_v0  ;;  %v3191_v31 = vadd.f32 %v3187_v51, %v3175_v17  ;;  %v3193_v14 = vadd.f32 %v3187_v51, %v3177_v39  ;;  %v3195_v15 = vadd.f32 %v3187_v51, %v3179_v37  ;;  %v10170_v0 = vld [vmem:[%s11370_s17 + $0xa8] sm:$0xff] }
 0x814   :  { %v3196_v22 = vpack.c.bf16 %v3190_v10, %v3188_v32  ;;  %v3198_v34 = vpack.c.bf16 %v3194_v3, %v3192_v43  ;;  %v3820_v4 = vand.u32 4294901760, %v10130_v5  ;;  %v11476_v24 = vand.u32 4294901760, %v10139_v25  ;;  %v10184_v39 = vld [vmem:[%s11370_s17 + $0x28] sm:$0xff] }
 0x815   :  { %v3197_v28 = vpack.c.bf16 %v3191_v31, %v3189_v12  ;;  %v3199_v62 = vpack.c.bf16 %v3195_v15, %v3193_v14  ;;  %v11475_v30 = vand.u32 4294901760, %v10144_v33  ;;  %v11474_v23 = vand.u32 4294901760, %v10165_v18  ;;  %v10209_v14 = vld [vmem:[%s11370_s17 + $0xb0] sm:$0xff]  ;;  %v10214_v15 = vld [vmem:[%s11370_s17 + $0xb8] sm:$0xff]  ;;  %v3740_v43 = vld [vmem:[%s11370_s17 + $0xc8] sm:$0xff] }
 0x816   :  { %v10154_v2 = vpack.c.bf16 %v3820_v4, %v3817_v44  ;;  %v11473_v17 = vand.u32 4294901760, %v10170_v0  ;;  %v11472_v48 = vand.u32 4294901760, %v10179_v52  ;;  %v11471_v37 = vand.u32 4294901760, %v10184_v39 }
 0x817   :  { %6843 = vmatprep.mubr.msk.bf16.mxu1 %vm1712_vm6, %v3197_v28  ;;  %v10160_v51 = vpack.c.bf16 %v11475_v30, %v11476_v24  ;;  %v10196_v10 = vsub.f32 %v3715_v19, %v3763_v20  ;;  %v10198_v12 = vsub.f32 %v3716_v56, %v3766_v55  ;;  %v3784_v57 = vand.u32 4294901760, %v3722_v36  ;;  %v3728_v30 = vld [vmem:[%s11370_s17 + $0x68] sm:$0xff] }
 0x818   :  { %3556 = vmatmul.mubr.bf16.vlgmr.msra.gmra.mrb[4].mxu1 %v3196_v22  ;;  %v10194_v32 = vpack.c.bf16 %v11473_v17, %v11474_v23  ;;  %v10204_v31 = vpack.c.bf16 %v11471_v37, %v11472_v48  ;;  %v3744_v37 = vld [vmem:[%s11370_s17 + $0xe8] sm:$0xff]  ;;  %v10281_v48 = vsub.f32 %v10099_v21, %v3811_v16  ;;  %v10286_v17 = vsub.f32 %v10104_v49, %v3814_v38  ;;  %v3727_v23 = vld [vmem:[%s11370_s17 + $0x60] sm:$0xff] }
 0x819   :  { %3577 = vmatpush1.bf16.msra.mxu1 %v8487_v7  ;;  %6844 = vmatprep.mubr.msk.bf16.mxu1 %vm1712_vm6, %v3199_v62  ;;  %v3832_v7 = vand.u32 4294901760, %v10214_v15  ;;  %v3850_v16 = vand.u32 4294901760, %v3744_v37  ;;  %v3799_v49 = vand.u32 4294901760, %v3727_v23  ;;  %v3802_v38 = vand.u32 4294901760, %v3728_v30 }
 0x81a   :  { %3578 = vmatprep.subr.bf16.mxu1 %v11673_v54  ;;  %v10301_v24 = vsub.f32 %v10125_v1, %v3817_v44  ;;  %v10306_v46 = vsub.f32 %v10130_v5, %v3820_v4  ;;  %v11687_v59 = vand.u32 4294901760, %v10139_v25  ;;  %v11690_v44 = vand.u32 4294901760, %v10170_v0 }
 0x81b   :  { %v11691_v4 = vand.u32 4294901760, %v10179_v52 }
 0x81c   :  { %v10311_v8 = vsub.f32 %v10139_v25, %v11687_v59  ;;  %v10326_v5 = vsub.f32 %v10170_v0, %v11690_v44  ;;  %v11692_v25 = vand.u32 4294901760, %v10184_v39  ;;  %v10346_v0 = vsub.f32 %v3722_v36, %v3784_v57  ;;  %v3729_v36 = vld [vmem:[%s11370_s17 + $0x70] sm:$0xff] }
 0x81d   :  { %3579 = vmatpush1.bf16.msra.mxu1 %v8488_v26  ;;  %v3739_v26 = vld [vmem:[%s11370_s17 + $0xc0] sm:$0xff]  ;;  %v10331_v59 = vsub.f32 %v10179_v52, %v11691_v4 }
 0x81e   :  { %3580 = vmatprep.subr.bf16.mxu1 %v11673_v54  ;;  %v3835_v3 = vand.u32 4294901760, %v3739_v26 }
 0x820   :  { %3566 = vmatmul.mubr.bf16.gmra.mrb[8].mxu1 %v3198_v34  ;;  %v10348_v44 = vsub.f32 %v3739_v26, %v3835_v3 }
 0x821   :  { %3581 = vmatpush1.bf16.msra.mxu1 %v8489_v13  ;;  %6845 = vmatprep.mubr.msk.bf16.mxu1 %vm1712_vm6, %v3197_v28  ;;  %v3829_v28 = vand.u32 4294901760, %v10209_v14  ;;  %v3838_v13 = vand.u32 4294901760, %v3740_v43 }
 0x822   :  { %3582 = vmatprep.subr.bf16.mxu1 %v11673_v54 }
 0x823   :  { %v10228_v58 = vpack.c.bf16 %v3832_v7, %v3829_v28 }
 0x825   :  { %3583 = vmatpush1.bf16.msra.mxu1 %v8490_v27  ;;  %v3724_v27 = vld [vmem:[%s11370_s17 + $0x48] sm:$0xff] }
 0x826   :  { %3584 = vmatprep.subr.bf16.mxu1 %v11673_v54 }
 0x829   :  { %3585 = vmatpush1.bf16.msra.mxu1 %v8491_v50 }
 0x82a   :  { %3586 = vmatprep.subr.bf16.mxu1 %v11673_v54 }
 0x82d   :  { %3587 = vmatpush1.bf16.msra.mxu1 %v8492_v40  ;;  %v3790_v40 = vand.u32 4294901760, %v3724_v27 }
 0x82e   :  { %3588 = vmatprep.subr.bf16.mxu1 %v11673_v54 }
 0x82f   :  { %v10354_v4 = vsub.f32 %v3724_v27, %v3790_v40 }
 0x831   :  { %3589 = vmatpush1.bf16.msra.mxu1 %v8493_v29  ;;  %v10248_v29 = vpack.c.bf16 %v3838_v13, %v3835_v3  ;;  %v10382_v3 = vpack.c.bf16 %v3802_v38, %v3799_v49 }
 0x832   :  { %3590 = vmatprep.subr.bf16.mxu1 %v11673_v54 }
 0x833   :  { %11683 = vst [vmem:[#allocation11_spill] sm:$0xff] %v10248_v29  ;;  %11701 = vst [vmem:[#allocation21_spill] sm:$0xff] %v10382_v3 }
 0x835   :  { %3591 = vmatpush1.bf16.msra.mxu1 %v8494_v45 }
 0x836   :  { %3592 = vmatprep.subr.bf16.mxu1 %v11673_v54 }
 0x839   :  { %3593 = vmatpush1.bf16.msra.mxu1 %v8495_v60  ;;  %v3741_v60 = vld [vmem:[%s11370_s17 + $0xd0] sm:$0xff] }
 0x83a   :  { %3594 = vmatprep.subr.bf16.mxu1 %v11673_v54 }
 0x83d   :  { %3595 = vmatpush1.bf16.msra.mxu1 %v8496_v61  ;;  %v3742_v61 = vld [vmem:[%s11370_s17 + $0xd8] sm:$0xff] }
 0x83e   :  { %3596 = vmatprep.subr.bf16.mxu1 %v11673_v54 }
 0x841   :  { %3597 = vmatpush1.bf16.msra.mxu1 %v8497_v9  ;;  %v3841_v9 = vand.u32 4294901760, %v3741_v60 }
 0x842   :  { %3598 = vmatprep.subr.bf16.mxu1 %v11673_v54 }
 0x845   :  { %3599 = vmatpush1.bf16.msra.mxu1 %v8498_v53  ;;  %v3844_v53 = vand.u32 4294901760, %v3742_v61 }
 0x846   :  { %3600 = vmatprep.subr.bf16.mxu1 %v11673_v54 }
 0x847   :  { %v10268_v56 = vpack.c.bf16 %v3844_v53, %v3841_v9 }
 0x849   :  { %3601 = vmatpush1.bf16.msra.mxu1 %v8499_v35  ;;  %v3725_v35 = vld [vmem:[%s11370_s17 + $0x50] sm:$0xff]  ;;  %11685 = vst [vmem:[#allocation9_spill] sm:$0xff] %v10268_v56 }
 0x84a   :  { %3602 = vmatprep.subr.bf16.mxu1 %v11673_v54 }
 0x84d   :  { %3603 = vmatpush1.bf16.msra.mxu1 %v8500_v6  ;;  %v3726_v6 = vld [vmem:[%s11370_s17 + $0x58] sm:$0xff] }
 0x84e   :  { %3604 = vmatprep.subr.bf16.mxu1 %v11673_v54  ;;  %v10120_v54 = vpack.c.bf16 %v3766_v55, %v3763_v20  ;;  %v3796_v19 = vand.u32 4294901760, %v3726_v6  ;;  %v3743_v55 = vld [vmem:[%s11370_s17 + $0xe0] sm:$0xff] }
 0x84f   :  { %v3847_v21 = vand.u32 4294901760, %v3743_v55 }
 0x850   :  { %8039 = vmatpush3.bf16.msra.mxu0 %v10120_v54 }
 0x851   :  { %3605 = vmatpush1.bf16.msra.mxu1 %v8501_v47  ;;  %8041 = vmatprep.subr.bf16.mxu0 %v10154_v2  ;;  %v3793_v47 = vand.u32 4294901760, %v3725_v35  ;;  %v10378_v26 = vsub.f32 %v3743_v55, %v3847_v21 }
 0x852   :  { %7941 = vmatprep.subr.bf16.mxu1 %v10118_v63 }
 0x853   :  { %v10270_v20 = vpack.c.bf16 %v3796_v19, %v3793_v47  ;;  %11699 = vst [vmem:[#allocation19_spill] sm:$0xff] %v10378_v26 }
 0x854   :  { %3609 = vmatmul.mubr.bf16.vlgmr.msra.gmra.mrb[12].mxu1 %v3196_v22  ;;  %8043 = vmatpush3.bf16.msra.mxu0 %v10160_v51  ;;  %v3721_v22 = vld [vmem:[%s11370_s17 + $0x30] sm:$0xff] }
 0x855   :  { %6846 = vmatprep.mubr.msk.bf16.mxu1 %vm1712_vm6, %v3199_v62  ;;  %7943 = vmatpush3.bf16.msra.mxu1 %v10120_v54  ;;  %v3781_v41 = vand.u32 4294901760, %v3721_v22  ;;  %11686 = vst [vmem:[#allocation12_spill] sm:$0xff] %v10270_v20 }
 0x856   :  { %7945 = vmatprep.subr.bf16.mxu1 %v10154_v2  ;;  %8045 = vmatprep.subr.bf16.mxu0 %v10194_v32 }
 0x857   :  { %v10230_v62 = vpack.c.bf16 %v3784_v57, %v3781_v41  ;;  %v10376_v57 = vpack.c.bf16 %v3850_v16, %v3847_v21 }
 0x858   :  { %8047 = vmatpush3.bf16.msra.mxu0 %v10204_v31 }
 0x859   :  { %7947 = vmatpush3.bf16.msra.mxu1 %v10160_v51  ;;  %8049 = vmatprep.subr.bf16.mxu0 %v10228_v58  ;;  %11698 = vst [vmem:[#allocation20_spill] sm:$0xff] %v10376_v57 }
 0x85a   :  { %7949 = vmatprep.subr.bf16.mxu1 %v10194_v32 }
 0x85c   :  { %3617 = vmatmul.mubr.bf16.gmra.mrb[16].mxu1 %v3198_v34  ;;  %v3723_v34 = vld [vmem:[%s11370_s17 + $0x40] sm:$0xff]  ;;  %8051 = vmatpush3.bf16.msra.mxu0 %v10230_v62 }
 0x85d   :  { %7951 = vmatpush3.bf16.msra.mxu1 %v10204_v31  ;;  %v3787_v50 = vand.u32 4294901760, %v3723_v34  ;;  %8053 = vmatprep.subr.bf16.mxu0 %v10248_v29 }
 0x85e   :  { %7953 = vmatprep.subr.bf16.mxu1 %v10228_v58 }
 0x85f   :  { %v10250_v45 = vpack.c.bf16 %v3790_v40, %v3787_v50  ;;  %v10352_v52 = vsub.f32 %v3723_v34, %v3787_v50  ;;  %v10386_v34 = vsub.f32 %v3728_v30, %v3802_v38  ;;  %v3805_v40 = vand.u32 4294901760, %v3729_v36 }
 0x861   :  { %7955 = vmatpush3.bf16.msra.mxu1 %v10230_v62  ;;  %11684 = vst [vmem:[#allocation10_spill] sm:$0xff] %v10250_v45  ;;  %8055 = vmatpush3.bf16.msra.mxu0 %v10250_v45  ;;  %11693 = vst [vmem:[#allocation14_spill] sm:$0xff] %v10352_v52 }
 0x862   :  { %7957 = vmatprep.subr.bf16.mxu1 %v10248_v29  ;;  %8057 = vmatprep.subr.bf16.mxu0 %v10268_v56  ;;  %v10350_v29 = vsub.f32 %v3740_v43, %v3838_v13  ;;  %v10380_v43 = vsub.f32 %v3744_v37, %v3850_v16  ;;  %v10384_v13 = vsub.f32 %v3727_v23, %v3799_v49  ;;  %v11484_v16 = vand.u32 4294901760, %v10198_v12 }
 0x863   :  { %11703 = vst [vmem:[#allocation25_spill] sm:$0xff] %v10386_v34  ;;  %v11486_v49 = vand.u32 4294901760, %v10301_v24 }
 0x864   :  { %11700 = vst [vmem:[#allocation18_spill] sm:$0xff] %v10380_v43  ;;  %11702 = vst [vmem:[#allocation23_spill] sm:$0xff] %v10384_v13 }
 0x865   :  { %7959 = vmatpush3.bf16.msra.mxu1 %v10250_v45  ;;  %8059 = vmatpush3.bf16.msra.mxu0 %v10270_v20  ;;  %v11689_v45 = vand.u32 4294901760, %v10165_v18 }
 0x866   :  { %7961 = vmatprep.subr.bf16.mxu1 %v10268_v56  ;;  %v11688_v56 = vand.u32 4294901760, %v10144_v33  ;;  %8061 = vmatprep.subr.bf16.mxu0 %v10376_v57 }
 0x867   :  { %v10321_v1 = vsub.f32 %v10165_v18, %v11689_v45  ;;  %v10342_v18 = vsub.f32 %v10214_v15, %v3832_v7  ;;  %v10344_v45 = vsub.f32 %v3721_v22, %v3781_v41  ;;  %v10362_v15 = vsub.f32 %v3741_v60, %v3841_v9  ;;  %v3730_v41 = vld [vmem:[%s11370_s17 + $0x78] sm:$0xff] }
 0x868   :  { %v10366_v7 = vsub.f32 %v3725_v35, %v3793_v47  ;;  %v10368_v22 = vsub.f32 %v3726_v6, %v3796_v19  ;;  %v3808_v60 = vand.u32 4294901760, %v3730_v41  ;;  %v11487_v9 = vand.u32 4294901760, %v10286_v17 }
 0x869   :  { %7963 = vmatpush3.bf16.msra.mxu1 %v10270_v20  ;;  %v10316_v20 = vsub.f32 %v10144_v33, %v11688_v56  ;;  %v10336_v33 = vsub.f32 %v10184_v39, %v11692_v25  ;;  %v10339_v56 = vsub.f32 %v10209_v14, %v3829_v28  ;;  %v3745_v39 = vld [vmem:[%s11370_s17 + $0xf0] sm:$0xff]  ;;  %v3746_v14 = vld [vmem:[%s11370_s17 + $0xf8] sm:$0xff]  ;;  %11694 = vst [vmem:[#allocation16_spill] sm:$0xff] %v10362_v15  ;;  %v11489_v25 = vand.u32 4294901760, %v10306_v46 }
 0x86a   :  { %v10364_v28 = vsub.f32 %v3742_v61, %v3844_v53  ;;  %11696 = vst [vmem:[#allocation15_spill] sm:$0xff] %v10366_v7  ;;  %11697 = vst [vmem:[#allocation17_spill] sm:$0xff] %v10368_v22  ;;  %v3853_v27 = vand.u32 4294901760, %v3745_v39  ;;  %v3856_v50 = vand.u32 4294901760, %v3746_v14  ;;  %7965 = vmatprep.subr.bf16.mxu1 %v10376_v57  ;;  %v11488_v61 = vand.u32 4294901760, %v10281_v48  ;;  %8063 = vmatpush3.bf16.msra.mxu0 %v10382_v3 }
 0x86b   :  { %v11485_v53 = vand.u32 4294901760, %v10196_v10  ;;  %v10401_v35 = vpack.c.bf16 %v3808_v60, %v3805_v40  ;;  %v10403_v6 = vsub.f32 %v3729_v36, %v3805_v40  ;;  %v10405_v47 = vsub.f32 %v3730_v41, %v3808_v60 }
 0x86c   :  { %11695 = vst [vmem:[#allocation13_spill] sm:$0xff] %v10364_v28  ;;  %v10393_v37 = vpack.c.bf16 %v3856_v50, %v3853_v27  ;;  %v10395_v23 = vsub.f32 %v3745_v39, %v3853_v27  ;;  %v10397_v30 = vsub.f32 %v3746_v14, %v3856_v50  ;;  %v3990_v19 = vsub.f32 %v10281_v48, %v11488_v61 }
 0x86d   :  { %7967 = vmatpush3.bf16.msra.mxu1 %v10382_v3  ;;  %11707 = vst [vmem:[#allocation27_spill] sm:$0xff] %v10401_v35  ;;  %11708 = vst [vmem:[#allocation28_spill] sm:$0xff] %v10403_v6  ;;  %v3997_v55 = vsub.f32 %v10286_v17, %v11487_v9  ;;  %v3878_v21 = vsub.f32 %v10196_v10, %v11485_v53  ;;  %v11490_v39 = vand.u32 4294901760, %v10311_v8  ;;  %v11497_v14 = vand.u32 4294901760, %v10316_v20 }
 0x86e   :  { %11704 = vst [vmem:[#allocation22_spill] sm:$0xff] %v10393_v37  ;;  %11705 = vst [vmem:[#allocation24_spill] sm:$0xff] %v10395_v23  ;;  %8065 = vmatprep.subr.bf16.mxu0 %v10393_v37  ;;  %7969 = vmatprep.subr.bf16.mxu1 %v10393_v37  ;;  %v3991_v38 = vand.u32 4294901760, %v3990_v19  ;;  %v3885_v27 = vsub.f32 %v10198_v12, %v11484_v16  ;;  %v4004_v50 = vsub.f32 %v10301_v24, %v11486_v49 }
 0x86f   :  { %11706 = vst [vmem:[#allocation26_spill] sm:$0xff] %v10397_v30  ;;  %11709 = vst [vmem:[#allocation29_spill] sm:$0xff] %v10405_v47  ;;  %8067 = vmatpush3.bf16.msra.mxu0 %v10401_v35  ;;  %v3998_v36 = vand.u32 4294901760, %v3997_v55  ;;  %v3879_v41 = vand.u32 4294901760, %v3878_v21  ;;  %v4011_v40 = vsub.f32 %v10306_v46, %v11489_v25  ;;  %v3892_v60 = vsub.f32 %v10311_v8, %v11490_v39 }
 0x870   :  { %8101 = vmatprep.subr.bf16.mxu0 %v10118_v63  ;;  %v3899_v19 = vsub.f32 %v10316_v20, %v11497_v14  ;;  %v3886_v21 = vand.u32 4294901760, %v3885_v27  ;;  %v4005_v16 = vand.u32 4294901760, %v4004_v50  ;;  %v11495_v53 = vand.u32 4294901760, %v10321_v1 }
 0x871   :  { %7971 = vmatpush3.bf16.msra.mxu1 %v10401_v35  ;;  %v7972_v55 = vpack.c.bf16 %v3998_v36, %v3991_v38  ;;  %v4012_v49 = vand.u32 4294901760, %v4011_v40  ;;  %v3893_v9 = vand.u32 4294901760, %v3892_v60  ;;  %v11494_v61 = vand.u32 4294901760, %v10326_v5 }
 0x872   :  { %v3900_v63 = vand.u32 4294901760, %v3899_v19  ;;  %v10443_v25 = vpack.c.bf16 %v3886_v21, %v3879_v41  ;;  %v4018_v39 = vsub.f32 %v10321_v1, %v11495_v53  ;;  %v11492_v35 = vand.u32 4294901760, %v10331_v59 }
 0x873   :  { %7973 = vmatprep.subr.bf16.mxu1 %v7972_v55  ;;  %v11493_v38 = vand.u32 4294901760, %v10336_v33  ;;  %v10450_v36 = vpack.c.bf16 %v4012_v49, %v4005_v16  ;;  %v4025_v50 = vsub.f32 %v10326_v5, %v11494_v61  ;;  %v11496_v19 = vand.u32 4294901760, %v10339_v56 }
 0x874   :  { %v10452_v27 = vpack.c.bf16 %v3900_v63, %v3893_v9  ;;  %v4019_v40 = vand.u32 4294901760, %v4018_v39  ;;  %v3906_v41 = vsub.f32 %v10331_v59, %v11492_v35  ;;  %v11498_v16 = vand.u32 4294901760, %v10342_v18 }
 0x875   :  { %v3913_v60 = vsub.f32 %v10336_v33, %v11493_v38  ;;  %v4026_v55 = vand.u32 4294901760, %v4025_v50  ;;  %v11499_v9 = vand.u32 4294901760, %v10344_v45  ;;  %v11500_v49 = vand.u32 4294901760, %v10346_v0 }
 0x876   :  { %v3907_v21 = vand.u32 4294901760, %v3906_v41  ;;  %v4032_v39 = vsub.f32 %v10339_v56, %v11496_v19  ;;  %v4039_v38 = vsub.f32 %v10342_v18, %v11498_v16  ;;  %v11501_v53 = vand.u32 4294901760, %v10348_v44 }
 0x877   :  { %v3914_v63 = vand.u32 4294901760, %v3913_v60  ;;  %v10470_v35 = vpack.c.bf16 %v4026_v55, %v4019_v40  ;;  %v3920_v50 = vsub.f32 %v10344_v45, %v11499_v9  ;;  %v3927_v61 = vsub.f32 %v10346_v0, %v11500_v49 }
 0x878   :  { %v4033_v60 = vand.u32 4294901760, %v4032_v39  ;;  %v11504_v40 = vand.u32 4294901760, %v10350_v29  ;;  %v4040_v55 = vand.u32 4294901760, %v4039_v38  ;;  %v11506_v16 = vand.u32 4294901760, %v10352_v52 }
 0x879   :  { %v10481_v41 = vpack.c.bf16 %v3914_v63, %v3907_v21  ;;  %v3921_v19 = vand.u32 4294901760, %v3920_v50  ;;  %v3928_v14 = vand.u32 4294901760, %v3927_v61  ;;  %v4046_v9 = vsub.f32 %v10348_v44, %v11501_v53 }
 0x87a   :  { %v4053_v49 = vsub.f32 %v10350_v29, %v11504_v40  ;;  %v11505_v21 = vand.u32 4294901760, %v10354_v4  ;;  %v10493_v63 = vpack.c.bf16 %v4040_v55, %v4033_v60  ;;  %v3934_v61 = vsub.f32 %v10352_v52, %v11506_v16 }
 0x87b   :  { %v10495_v39 = vpack.c.bf16 %v3928_v14, %v3921_v19  ;;  %v4047_v38 = vand.u32 4294901760, %v4046_v9  ;;  %v11507_v37 = vand.u32 4294901760, %v10362_v15  ;;  %v11509_v40 = vand.u32 4294901760, %v10364_v28 }
 0x87c   :  { %v4054_v50 = vand.u32 4294901760, %v4053_v49  ;;  %v3941_v53 = vsub.f32 %v10354_v4, %v11505_v21  ;;  %v3935_v3 = vand.u32 4294901760, %v3934_v61  ;;  %v11510_v60 = vand.u32 4294901760, %v10366_v7 }
 0x87d   :  { %11710 = vst [vmem:[#allocation30_spill] sm:$0xff] %v10495_v39  ;;  %v4060_v19 = vsub.f32 %v10362_v15, %v11507_v37  ;;  %v11511_v9 = vand.u32 4294901760, %v10368_v22  ;;  %v4067_v49 = vsub.f32 %v10364_v28, %v11509_v40  ;;  %v11513_v57 = vand.u32 4294901760, %v10380_v43 }
 0x87e   :  { %v10506_v55 = vpack.c.bf16 %v4054_v50, %v4047_v38  ;;  %v3942_v14 = vand.u32 4294901760, %v3941_v53  ;;  %v3948_v61 = vsub.f32 %v10366_v7, %v11510_v60  ;;  %v11512_v38 = vand.u32 4294901760, %v10378_v26 }
 0x87f   :  { %v4061_v16 = vand.u32 4294901760, %v4060_v19  ;;  %v3955_v53 = vsub.f32 %v10368_v22, %v11511_v9  ;;  %v4068_v50 = vand.u32 4294901760, %v4067_v49  ;;  %v4081_v19 = vsub.f32 %v10380_v43, %v11513_v57 }
 0x880   :  { %11711 = vst [vmem:[#allocation31_spill] sm:$0xff] %v10506_v55  ;;  %v10518_v21 = vpack.c.bf16 %v3942_v14, %v3935_v3  ;;  %v3949_v37 = vand.u32 4294901760, %v3948_v61  ;;  %v11514_v55 = vand.u32 4294901760, %v10384_v13  ;;  %v4074_v60 = vsub.f32 %v10378_v26, %v11512_v38 }
 0x881   :  { %v3956_v40 = vand.u32 4294901760, %v3955_v53  ;;  %v11515_v3 = vand.u32 4294901760, %v10386_v34  ;;  %v10530_v14 = vpack.c.bf16 %v4068_v50, %v4061_v16  ;;  %v11516_v38 = vand.u32 4294901760, %v10395_v23 }
 0x882   :  { %11712 = vst [vmem:[#allocation32_spill] sm:$0xff] %v10518_v21  ;;  %v3962_v49 = vsub.f32 %v10384_v13, %v11514_v55  ;;  %v4075_v9 = vand.u32 4294901760, %v4074_v60  ;;  %v4082_v21 = vand.u32 4294901760, %v4081_v19  ;;  %v11517_v50 = vand.u32 4294901760, %v10397_v30 }
 0x883   :  { %11713 = vst [vmem:[#allocation33_spill] sm:$0xff] %v10530_v14  ;;  %v10538_v61 = vpack.c.bf16 %v3956_v40, %v3949_v37  ;;  %v3969_v53 = vsub.f32 %v10386_v34, %v11515_v3  ;;  %v11518_v14 = vand.u32 4294901760, %v10403_v6  ;;  %v4088_v55 = vsub.f32 %v10395_v23, %v11516_v38 }
 0x884   :  { %v3963_v16 = vand.u32 4294901760, %v3962_v49  ;;  %v11519_v37 = vand.u32 4294901760, %v10405_v47  ;;  %v10550_v40 = vpack.c.bf16 %v4082_v21, %v4075_v9  ;;  %v4095_v60 = vsub.f32 %v10397_v30, %v11517_v50 }
 0x885   :  { %11714 = vst [vmem:[#allocation34_spill] sm:$0xff] %v10538_v61  ;;  %v3970_v57 = vand.u32 4294901760, %v3969_v53  ;;  %v3976_v19 = vsub.f32 %v10403_v6, %v11518_v14  ;;  %v4089_v3 = vand.u32 4294901760, %v4088_v55 }
 0x886   :  { %v3983_v53 = vsub.f32 %v10405_v47, %v11519_v37  ;;  %v4096_v38 = vand.u32 4294901760, %v4095_v60  ;;  %v10602_v60 = vld [vmem:[%s11367_s14] sm:$0x7] }
 0x887   :  { %v10558_v49 = vpack.c.bf16 %v3970_v57, %v3963_v16  ;;  %v3977_v61 = vand.u32 4294901760, %v3976_v19  ;;  %v3269_v37 = vrot.slane %v10602_v60, %v11676_v42 }
 0x888   :  { %v3984_v39 = vand.u32 4294901760, %v3983_v53  ;;  %v10563_v21 = vpack.c.bf16 %v4096_v38, %v4089_v3  ;;  %v3265_v53 = vrot.slane %v10602_v60, %v11671_v11 }
 0x88a   :  { %v10565_v9 = vpack.c.bf16 %v3984_v39, %v3977_v61 }
 0x8eb   :  { %v3557_v19 = vpop.f32.mrb[4].mxu1 }
 0x8ec   :  { %v3559_v38 = vpop.f32.mrb[5].mxu1  ;;  %v3558_v16 = vadd.f32 %v3557_v19, %v3265_v53 }
 0x8ed   :  { %v3561_v39 = vpop.f32.mrb[6].mxu1  ;;  %v3560_v57 = vadd.f32 %v3559_v38, %v3269_v37 }
 0x8ee   :  { %v3562_v55 = vadd.f32 %v3561_v39, %v3265_v53  ;;  %v3563_v3 = vpop.f32.mrb[7].mxu1  ;;  %v10612_v6 = vmax.f32 %v3558_v16, 0.0 }
 0x8ef   :  { %v3564_v14 = vadd.f32 %v3563_v3, %v3269_v37  ;;  %v10614_v47 = vmax.f32 %v3560_v57, 0.0 }
 0x8f0   :  { %v10608_v61 = vmax.f32 %v3562_v55, 0.0  ;;  %11717 = vst [vmem:[#allocation37_spill] sm:$0xff] %v10612_v6  ;;  %v3669_v55 = vmul.f32 %v10612_v6, %v10612_v6 }
 0x8f1   :  { %v10610_v50 = vmax.f32 %v3564_v14, 0.0  ;;  %11718 = vst [vmem:[#allocation38_spill] sm:$0xff] %v10614_v47  ;;  %v3670_v13 = vmul.f32 %v10614_v47, %v10614_v47 }
 0x8f2   :  { %11715 = vst [vmem:[#allocation35_spill] sm:$0xff] %v10608_v61  ;;  %v3672_v23 = vmul.f32 %v10608_v61, %v10608_v61  ;;  %v3637_v14 = vadd.f32 %v10608_v61, %v10612_v6 }
 0x8f3   :  { %11716 = vst [vmem:[#allocation36_spill] sm:$0xff] %v10610_v50  ;;  %v3567_v11 = vpop.f32.mrb[8].mxu1  ;;  %v3673_v39 = vmul.f32 %v10610_v50, %v10610_v50 }
 0x8f4   :  { %v3568_v42 = vadd.f32 %v3567_v11, %v3265_v53  ;;  %v3569_v30 = vpop.f32.mrb[9].mxu1  ;;  %v3646_v11 = vadd.f32 %v10610_v50, %v10614_v47  ;;  %v3681_v26 = vadd.f32 %v3672_v23, %v3669_v55 }
 0x8f5   :  { %v3570_v19 = vadd.f32 %v3569_v30, %v3269_v37  ;;  %v3571_v38 = vpop.f32.mrb[10].mxu1 }
 0x8f6   :  { %v10624_v16 = vmax.f32 %v3568_v42, 0.0  ;;  %v3572_v57 = vadd.f32 %v3571_v38, %v3265_v53  ;;  %v3573_v3 = vpop.f32.mrb[11].mxu1  ;;  %v3690_v42 = vadd.f32 %v3673_v39, %v3670_v13 }
 0x8f7   :  { %v10630_v34 = vmax.f32 %v3570_v19, 0.0  ;;  %v3574_v30 = vadd.f32 %v3573_v3, %v3269_v37 }
 0x8f8   :  { %11719 = vst [vmem:[#allocation39_spill] sm:$0xff] %v10624_v16  ;;  %v3638_v43 = vadd.f32 %v3637_v14, %v10624_v16  ;;  %v3675_v7 = vmul.f32 %v10624_v16, %v10624_v16  ;;  %v10635_v61 = vmax.f32 %v3572_v57, 0.0 }
 0x8f9   :  { %11720 = vst [vmem:[#allocation40_spill] sm:$0xff] %v10630_v34  ;;  %v3647_v53 = vadd.f32 %v3646_v11, %v10630_v34  ;;  %v3676_v38 = vmul.f32 %v10630_v34, %v10630_v34  ;;  %v10640_v6 = vmax.f32 %v3574_v30, 0.0 }
 0x8fa   :  { %11721 = vst [vmem:[#allocation41_spill] sm:$0xff] %v10635_v61  ;;  %v3682_v50 = vadd.f32 %v3681_v26, %v3675_v7  ;;  %v3639_v19 = vadd.f32 %v3638_v43, %v10635_v61  ;;  %v3678_v23 = vmul.f32 %v10635_v61, %v10635_v61 }
 0x8fb   :  { %11722 = vst [vmem:[#allocation42_spill] sm:$0xff] %v10640_v6  ;;  %v3691_v37 = vadd.f32 %v3690_v42, %v3676_v38  ;;  %v3648_v55 = vadd.f32 %v3647_v53, %v10640_v6  ;;  %v3679_v14 = vmul.f32 %v10640_v6, %v10640_v6 }
 0x8fc   :  { %v3640_v13 = vrot.slane %v3639_v19, 4  ;;  %v3683_v39 = vadd.f32 %v3682_v50, %v3678_v23 }
 0x8fd   :  { %v3649_v57 = vrot.slane %v3648_v55, 4  ;;  %v3692_v3 = vadd.f32 %v3691_v37, %v3679_v14 }
 0x8fe   :  { %v3641_v11 = vadd.f32 %v3640_v13, %v3639_v19  ;;  %v3684_v16 = vrot.slane %v3683_v39, 4 }
 0x8ff   :  { %v3650_v30 = vadd.f32 %v3649_v57, %v3648_v55  ;;  %v3693_v34 = vrot.slane %v3692_v3, 4 }
 0x900   :  { %v3642_v7 = vrot.slane %v3641_v11, 2  ;;  %v3685_v26 = vadd.f32 %v3684_v16, %v3683_v39 }
 0x901   :  { %v3651_v43 = vrot.slane %v3650_v30, 2  ;;  %v3694_v47 = vadd.f32 %v3693_v34, %v3692_v3  ;;  %v11733_v3 = vld [vmem:[#allocation21_spill] sm:$0xff] }
 0x902   :  { %v3643_v22 = vadd.f32 %v3642_v7, %v3641_v11  ;;  %v3686_v61 = vrot.slane %v3685_v26, 2  ;;  %v11734_v11 = vld [vmem:[#allocation22_spill] sm:$0xff] }
 0x903   :  { %v3652_v42 = vadd.f32 %v3651_v43, %v3650_v30  ;;  %v3695_v38 = vrot.slane %v3694_v47, 2 }
 0x904   :  { %v3644_v53 = vrot.slane %v3643_v22, 1  ;;  %v3687_v15 = vadd.f32 %v3686_v61, %v3685_v26  ;;  %v11735_v26 = vld [vmem:[#allocation27_spill] sm:$0xff] }
 0x905   :  { %v3653_v28 = vrot.slane %v3652_v42, 1  ;;  %v3696_v6 = vadd.f32 %v3695_v38, %v3694_v47  ;;  %v11736_v38 = vmov 0.0  }
 0x906   :  { %v3688_v52 = vrot.slane %v3687_v15, 1  ;;  %v3645_v23 = vadd.f32 %v3644_v53, %v3643_v22  ;;  %v11741_v53 = vpack.c.bf16 %v10326_v5, %v10321_v1 }
 0x907   :  { %v3697_v50 = vrot.slane %v3696_v6, 1  ;;  %v3654_v19 = vadd.f32 %v3653_v28, %v3652_v42 }
 0x908   :  { %v3689_v37 = vadd.f32 %v3688_v52, %v3687_v15 }
 0x909   :  { %v3698_v14 = vadd.f32 %v3697_v50, %v3696_v6  ;;  %v11727_v6 = vld [vmem:[#allocation9_spill] sm:$0xff]  ;;  %v11742_v50 = vld [vmem:[#allocation6_spill] sm:$0xff] }
 0x90a   :  { %v3712_v55 = vsel %vm241_vm4, %v3645_v23, %v3689_v37  ;;  %v3272_v23 = vsub.s32 2, %v11742_v50  ;;  %v11743_v37 = vpack.c.bf16 %v10336_v33, %v10331_v59 }
 0x90b   :  { %v3713_v16 = vsel %vm241_vm4, %v3654_v19, %v3698_v14  ;;  %v10650_v13 = vand.u32 4294901760, %v3712_v55  ;;  %v11744_v19 = vpack.c.bf16 %v10342_v18, %v10339_v56 }
 0x90c   :  { %v10652_v34 = vand.u32 4294901760, %v3713_v16  ;;  %v3273_v14 = vrot.slane %v10602_v60, %v3272_v23 }
 0x90d   :  { %v10655_v39 = vsub.f32 %v3712_v55, %v10650_v13  ;;  %v11745_v55 = vpack.c.bf16 %v10346_v0, %v10344_v45 }
 0x90e   :  { %v3859_v61 = vsub.f32 %v3713_v16, %v10652_v34  ;;  %v11746_v16 = vpack.c.bf16 %v10350_v29, %v10348_v44 }
 0x90f   :  { %v3866_v47 = vand.u32 4294901760, %v10655_v39 }
 0x910   :  { %v3860_v57 = vand.u32 4294901760, %v3859_v61 }
 0x911   :  { %v3867_v52 = vsub.f32 %v10655_v39, %v3866_v47 }
 0x912   :  { %4343 = vmatprep.mubr.f32.mxu0 %v3860_v57  ;;  %v3861_v15 = vsub.f32 %v3859_v61, %v3860_v57 }
 0x913   :  { %4347 = vmatmul.mubr.f32.vlgmr.msra.gmra.mrb[20].mxu0 %v3866_v47  ;;  %v3868_v22 = vand.u32 4294901760, %v3867_v52  ;;  %v11747_v52 = vld [vmem:[#allocation14_spill] sm:$0xff] }
 0x914   :  { %8103 = vmatpush3.bf16.msra.mxu0 %v10120_v54  ;;  %4617 = vmatprep.mubr.f32.mxu0 %v10652_v34  ;;  %v3862_v28 = vand.u32 4294901760, %v3861_v15  ;;  %v11723_v54 = vld [vmem:[#allocation11_spill] sm:$0xff]  ;;  %v11748_v15 = vpack.c.bf16 %v10354_v4, %v11747_v52 }
 0x915   :  { %8105 = vmatprep.subr.bf16.mxu0 %v10154_v2  ;;  %v11724_v2 = vld [vmem:[#allocation30_spill] sm:$0xff] }
 0x916   :  { %3863 = vmatprep.mubr.f32.mxu1 %v3862_v28  ;;  %v11749_v28 = vld [vmem:[#allocation13_spill] sm:$0xff] }
 0x917   :  { %3869 = vmatmul.mubr.f32.vlgmr.msra.gmra.mrb[20].mxu1 %v3868_v22  ;;  %v11750_v22 = vld [vmem:[#allocation16_spill] sm:$0xff] }
 0x918   :  { %7975 = vmatpush3.bf16.msra.mxu1 %v10443_v25  ;;  %8107 = vmatpush3.bf16.msra.mxu0 %v10160_v51  ;;  %v11725_v51 = vld [vmem:[#allocation10_spill] sm:$0xff]  ;;  %v11728_v25 = vld [vmem:[#allocation32_spill] sm:$0xff] }
 0x919   :  { %4099 = vmatprep.mubr.f32.mxu1 %v10652_v34  ;;  %7977 = vmatprep.subr.bf16.mxu1 %v10450_v36 }
 0x91a   :  { %8109 = vmatprep.subr.bf16.mxu0 %v10194_v32  ;;  %v11726_v32 = vld [vmem:[#allocation31_spill] sm:$0xff] }
 0x91c   :  { %7979 = vmatpush3.bf16.msra.mxu1 %v10452_v27  ;;  %8111 = vmatpush3.bf16.msra.mxu0 %v10204_v31  ;;  %v11731_v27 = vld [vmem:[#allocation20_spill] sm:$0xff] }
 0x91d   :  { %7981 = vmatprep.subr.bf16.mxu1 %v10470_v35  ;;  %8113 = vmatprep.subr.bf16.mxu0 %v10228_v58  ;;  %v11729_v58 = vld [vmem:[#allocation12_spill] sm:$0xff] }
 0x920   :  { %7983 = vmatpush3.bf16.msra.mxu1 %v10481_v41  ;;  %8115 = vmatpush3.bf16.msra.mxu0 %v10230_v62  ;;  %v11730_v62 = vld [vmem:[#allocation33_spill] sm:$0xff] }
 0x921   :  { %7985 = vmatprep.subr.bf16.mxu1 %v10493_v63  ;;  %8117 = vmatprep.subr.bf16.mxu0 %v11723_v54  ;;  %v11732_v63 = vld [vmem:[#allocation34_spill] sm:$0xff]  ;;  %v11751_v54 = vpack.c.bf16 %v11749_v28, %v11750_v22 }
 0x924   :  { %7987 = vmatpush3.bf16.msra.mxu1 %v11724_v2  ;;  %8119 = vmatpush3.bf16.msra.mxu0 %v11725_v51 }
 0x925   :  { %7989 = vmatprep.subr.bf16.mxu1 %v11726_v32  ;;  %8121 = vmatprep.subr.bf16.mxu0 %v11727_v6  ;;  %v11752_v6 = vld [vmem:[#allocation17_spill] sm:$0xff] }
 0x927   :  { %v3610_v31 = vpop.f32.mrb[12].mxu1 }
 0x928   :  { %v3612_v35 = vpop.f32.mrb[13].mxu1  ;;  %7991 = vmatpush3.bf16.msra.mxu1 %v11728_v25  ;;  %8123 = vmatpush3.bf16.msra.mxu0 %v11729_v58  ;;  %v3611_v47 = vadd.f32 %v3610_v31, %v3273_v14  ;;  %v11755_v31 = vld [vmem:[#allocation18_spill] sm:$0xff]  ;;  %v11756_v58 = vld [vmem:[#allocation19_spill] sm:$0xff] }
 0x929   :  { %v3613_v36 = vpop.f32.mrb[14].mxu1  ;;  %7993 = vmatprep.subr.bf16.mxu1 %v11730_v62  ;;  %8125 = vmatprep.subr.bf16.mxu0 %v11731_v27  ;;  %v11753_v35 = vld [vmem:[#allocation15_spill] sm:$0xff] }
 0x92a   :  { %v3615_v41 = vpop.f32.mrb[15].mxu1  ;;  %v10732_v2 = vmax.f32 %v3611_v47, 0.0  ;;  %v11754_v25 = vpack.c.bf16 %v11752_v6, %v11753_v35 }
 0x92c   :  { %7995 = vmatpush3.bf16.msra.mxu1 %v11732_v63  ;;  %8127 = vmatpush3.bf16.msra.mxu0 %v11733_v3  ;;  %v3671_v27 = vmul.f32 %v10732_v2, %v10732_v2  ;;  %v11758_v3 = vld [vmem:[#allocation25_spill] sm:$0xff]  ;;  %v3656_v47 = vsel %vm3655_vm8, %v10732_v2, 0.0 }
 0x92d   :  { %7997 = vmatprep.subr.bf16.mxu1 %v10550_v40  ;;  %8129 = vmatprep.subr.bf16.mxu0 %v11734_v11  ;;  %v11737_v40 = vpack.c.bf16 %v10286_v17, %v10281_v48  ;;  %v11759_v11 = vld [vmem:[#allocation23_spill] sm:$0xff] }
 0x92e   :  { %v3699_v23 = vsel %vm3655_vm8, %v3671_v27, 0.0  ;;  %v11776_v27 = vand.u32 4294901760, %v10326_v5  ;;  %v11781_v5 = vand.u32 4294901760, %v10344_v45  ;;  %v11787_v45 = vand.u32 4294901760, %v11750_v22 }
 0x92f   :  { %v3618_v30 = vpop.f32.mrb[16].mxu1  ;;  %v11793_v22 = vand.u32 4294901760, %v11759_v11 }
 0x930   :  { %v3620_v7 = vpop.f32.mrb[17].mxu1  ;;  %7999 = vmatpush3.bf16.msra.mxu1 %v10558_v49  ;;  %8131 = vmatpush3.bf16.msra.mxu0 %v11735_v26  ;;  %v11738_v49 = vpack.c.bf16 %v10198_v12, %v10196_v10  ;;  %v3619_v57 = vadd.f32 %v3618_v30, %v3273_v14  ;;  %v11760_v30 = vpack.c.bf16 %v11758_v3, %v11759_v11  ;;  %v11762_v26 = vld [vmem:[#allocation24_spill] sm:$0xff] }
 0x931   :  { %v3621_v43 = vpop.f32.mrb[18].mxu1  ;;  %8001 = vmatprep.subr.bf16.mxu1 %v10563_v21  ;;  %v11739_v21 = vpack.c.bf16 %v10306_v46, %v10301_v24  ;;  %v11761_v7 = vld [vmem:[#allocation26_spill] sm:$0xff] }
 0x932   :  { %v3623_v42 = vpop.f32.mrb[19].mxu1  ;;  %v10734_v51 = vmax.f32 %v3619_v57, 0.0  ;;  %v3622_v32 = vadd.f32 %v3621_v43, %v3273_v14  ;;  %v11763_v43 = vpack.c.bf16 %v11761_v7, %v11762_v26 }
 0x933   :  { %4619 = vmatmul.mubr.f32.vlgmr.msra.gmra.mrb[22].mxu0 %v10650_v13  ;;  %v11764_v42 = vand.u32 4294901760, %v10281_v48 }
 0x934   :  { %8003 = vmatpush3.bf16.msra.mxu1 %v10565_v9  ;;  %5339 = vmatprep.mubr.f32.mxu0 %v11736_v38  ;;  %v11740_v9 = vpack.c.bf16 %v10316_v20, %v10311_v8  ;;  %v3677_v41 = vmul.f32 %v10734_v51, %v10734_v51  ;;  %v10748_v63 = vmax.f32 %v3622_v32, 0.0  ;;  %v3659_v57 = vsel %vm3655_vm8, %v10734_v51, 0.0 }
 0x935   :  { %8005 = vmatprep.subr.bf16.mxu1 %v11737_v40  ;;  %v11765_v40 = vand.u32 4294901760, %v10286_v17  ;;  %v11769_v17 = vld [vmem:[#allocation28_spill] sm:$0xff] }
 0x936   :  { %v3680_v48 = vmul.f32 %v10748_v63, %v10748_v63 }
 0x937   :  { %4101 = vmatmul.mubr.f32.vlgmr.msra.gmra.mrb[22].mxu1 %v10650_v13 }
 0x938   :  { %8007 = vmatpush3.bf16.msra.mxu1 %v11738_v49  ;;  %4236 = vmatprep.mubr.f32.mxu1 %v3859_v61  ;;  %v3614_v61 = vadd.f32 %v3613_v36, %v3273_v14  ;;  %v11757_v36 = vpack.c.bf16 %v11755_v31, %v11756_v58  ;;  %v8068_v49 = vpack.c.bf16 %v11765_v40, %v11764_v42  ;;  %v11768_v14 = vld [vmem:[#allocation29_spill] sm:$0xff]  ;;  %v3704_v32 = vsel %vm3655_vm8, %v3680_v48, 0.0 }
 0x939   :  { %8009 = vmatprep.subr.bf16.mxu1 %v11739_v21  ;;  %v11780_v40 = vand.u32 4294901760, %v10342_v18  ;;  %v11786_v18 = vand.u32 4294901760, %v10354_v4  ;;  %v11792_v4 = vand.u32 4294901760, %v11755_v31  ;;  %v3748_v31 = vld [vmem:[%s11370_s17 + $0x108] sm:$0xff]  ;;  %v11798_v11 = vand.u32 4294901760, %v11768_v14 }
 0x93a   :  { %v10730_v60 = vmax.f32 %v3614_v61, 0.0 }
 0x93c   :  { %8011 = vmatpush3.bf16.msra.mxu1 %v11740_v9  ;;  %v3674_v62 = vmul.f32 %v10730_v60, %v10730_v60  ;;  %v11766_v9 = vand.u32 4294901760, %v10196_v10  ;;  %v11771_v10 = vand.u32 4294901760, %v10301_v24  ;;  %v11773_v24 = vand.u32 4294901760, %v10311_v8 }
 0x93d   :  { %8013 = vmatprep.subr.bf16.mxu1 %v11741_v53  ;;  %v11767_v53 = vand.u32 4294901760, %v10198_v12  ;;  %v11772_v12 = vand.u32 4294901760, %v10306_v46  ;;  %v11774_v46 = vand.u32 4294901760, %v10316_v20  ;;  %v11779_v20 = vand.u32 4294901760, %v10339_v56 }
 0x93e   :  { %v3700_v21 = vsel %vm3655_vm8, %v3674_v62, 0.0  ;;  %v11775_v62 = vand.u32 4294901760, %v10321_v1  ;;  %v11785_v56 = vand.u32 4294901760, %v11747_v52  ;;  %v11791_v52 = vand.u32 4294901760, %v11756_v58  ;;  %v3747_v58 = vld [vmem:[%s11370_s17 + $0x100] sm:$0xff] }
 0x93f   :  { %v8070_v50 = vpack.c.bf16 %v11767_v53, %v11766_v9  ;;  %v8072_v61 = vpack.c.bf16 %v11772_v12, %v11771_v10  ;;  %v8080_v1 = vpack.c.bf16 %v11780_v40, %v11779_v20  ;;  %v3753_v20 = vld [vmem:[%s11370_s17 + $0x130] sm:$0xff] }
 0x940   :  { %8015 = vmatpush3.bf16.msra.mxu1 %v11743_v37  ;;  %v3657_v37 = vsel %vm3655_vm8, %v10730_v60, 0.0  ;;  %v8092_v12 = vpack.c.bf16 %v11792_v4, %v11791_v52 }
 0x941   :  { %8017 = vmatprep.subr.bf16.mxu1 %v11744_v19  ;;  %v3702_v19 = vsel %vm3655_vm8, %v3677_v41, 0.0  ;;  %v8076_v41 = vpack.c.bf16 %v11776_v27, %v11775_v62 }
 0x944   :  { %8019 = vmatpush3.bf16.msra.mxu1 %v11745_v55  ;;  %v11770_v55 = vpack.c.bf16 %v11768_v14, %v11769_v17 }
 0x945   :  { %8021 = vmatprep.subr.bf16.mxu1 %v11746_v16  ;;  %v3701_v16 = vadd.f32 %v3700_v21, %v3699_v23  ;;  %v11782_v21 = vand.u32 4294901760, %v10346_v0  ;;  %v11788_v0 = vand.u32 4294901760, %v11749_v28  ;;  %v11794_v28 = vand.u32 4294901760, %v11758_v3 }
 0x946   :  { %v11797_v3 = vand.u32 4294901760, %v11769_v17 }
 0x947   :  { %v8082_v9 = vpack.c.bf16 %v11782_v21, %v11781_v5  ;;  %v8088_v48 = vpack.c.bf16 %v11788_v0, %v11787_v45  ;;  %v4643_v21 = vand.u32 4294901760, %v3753_v20  ;;  %v3758_v45 = vld [vmem:[%s11370_s17 + $0x158] sm:$0xff] }
 0x948   :  { %8023 = vmatpush3.bf16.msra.mxu1 %v11748_v15  ;;  %v3658_v15 = vadd.f32 %v3657_v37, %v3656_v47  ;;  %v8086_v37 = vpack.c.bf16 %v11786_v18, %v11785_v56  ;;  %v8094_v47 = vpack.c.bf16 %v11794_v28, %v11793_v22  ;;  %v4658_v52 = vand.u32 4294901760, %v3758_v45 }
 0x949   :  { %8025 = vmatprep.subr.bf16.mxu1 %v11751_v54  ;;  %v3703_v54 = vadd.f32 %v3702_v19, %v3701_v16 }
 0x94c   :  { %8027 = vmatpush3.bf16.msra.mxu1 %v11754_v25  ;;  %v8074_v25 = vpack.c.bf16 %v11774_v46, %v11773_v24  ;;  %v4625_v24 = vand.u32 4294901760, %v3747_v58 }
 0x94d   :  { %8029 = vmatprep.subr.bf16.mxu1 %v11757_v36  ;;  %v3660_v36 = vadd.f32 %v3659_v57, %v3658_v15 }
 0x950   :  { %8031 = vmatpush3.bf16.msra.mxu1 %v11760_v30  ;;  %v3705_v30 = vadd.f32 %v3704_v32, %v3703_v54  ;;  %v8098_v32 = vpack.c.bf16 %v11798_v11, %v11797_v3 }
 0x951   :  { %8033 = vmatprep.subr.bf16.mxu1 %v11763_v43  ;;  %v11777_v43 = vand.u32 4294901760, %v10331_v59  ;;  %v11783_v59 = vand.u32 4294901760, %v10348_v44  ;;  %v11789_v44 = vand.u32 4294901760, %v11753_v35  ;;  %v11795_v35 = vand.u32 4294901760, %v11762_v26 }
 0x952   :  { %v4628_v26 = vand.u32 4294901760, %v3748_v31 }
 0x954   :  { %8035 = vmatpush3.bf16.msra.mxu1 %v11770_v55  ;;  %v10851_v62 = vpack.c.bf16 %v4628_v26, %v4625_v24 }
 0x955   :  { %8069 = vmatprep.subr.bf16.mxu1 %v8068_v49  ;;  %v3706_v49 = vrot.slane %v3705_v30, 4 }
 0x957   :  { %4239 = vmatmul.mubr.f32.vlgmr.msra.gmra.mrb[24].mxu1 %v10655_v39  ;;  %v3661_v39 = vsel %vm3655_vm8, %v10748_v63, 0.0  ;;  %v3707_v23 = vadd.f32 %v3706_v49, %v3705_v30  ;;  %v3752_v30 = vld [vmem:[%s11370_s17 + $0x128] sm:$0xff]  ;;  %v10877_v49 = vsub.f32 %v3748_v31, %v4628_v26 }
 0x958   :  { %8071 = vmatpush3.bf16.msra.mxu1 %v8070_v50  ;;  %4513 = vmatprep.mubr.f32.mxu1 %v10652_v34  ;;  %v11778_v34 = vand.u32 4294901760, %v10336_v33  ;;  %v3662_v42 = vadd.f32 %v3661_v39, %v3660_v36  ;;  %v11784_v33 = vand.u32 4294901760, %v10350_v29  ;;  %v11790_v29 = vand.u32 4294901760, %v11752_v6  ;;  %v3751_v39 = vld [vmem:[%s11370_s17 + $0x120] sm:$0xff] }
 0x959   :  { %8073 = vmatprep.subr.bf16.mxu1 %v8072_v61  ;;  %v3708_v55 = vrot.slane %v3707_v23, 2  ;;  %v11796_v6 = vand.u32 4294901760, %v11761_v7  ;;  %v3749_v7 = vld [vmem:[%s11370_s17 + $0x110] sm:$0xff] }
 0x95a   :  { %v8078_v8 = vpack.c.bf16 %v11778_v34, %v11777_v43  ;;  %v3663_v53 = vrot.slane %v3662_v42, 4  ;;  %v8084_v50 = vpack.c.bf16 %v11784_v33, %v11783_v59  ;;  %v8090_v16 = vpack.c.bf16 %v11790_v29, %v11789_v44  ;;  %v3756_v59 = vld [vmem:[%s11370_s17 + $0x148] sm:$0xff] }
 0x95b   :  { %v3709_v61 = vadd.f32 %v3708_v55, %v3707_v23  ;;  %v8096_v15 = vpack.c.bf16 %v11796_v6, %v11795_v35  ;;  %v4631_v17 = vand.u32 4294901760, %v3749_v7  ;;  %v4652_v56 = vand.u32 4294901760, %v3756_v59 }
 0x95c   :  { %8075 = vmatpush3.bf16.msra.mxu1 %v8074_v25  ;;  %v3664_v19 = vadd.f32 %v3663_v53, %v3662_v42  ;;  %v3750_v25 = vld [vmem:[%s11370_s17 + $0x118] sm:$0xff]  ;;  %v4640_v42 = vand.u32 4294901760, %v3752_v30  ;;  %v3755_v53 = vld [vmem:[%s11370_s17 + $0x140] sm:$0xff] }
 0x95d   :  { %8077 = vmatprep.subr.bf16.mxu1 %v8076_v41  ;;  %v3710_v54 = vrot.slane %v3709_v61, 1  ;;  %v4634_v27 = vand.u32 4294901760, %v3750_v25  ;;  %v11799_v41 = vmov 0.0|0.0   ;;  %v4649_v23 = vand.u32 4294901760, %v3755_v53 }
 0x95e   :  { %v3665_v10 = vrot.slane %v3664_v19, 2  ;;  %v10912_v29 = vsub.f32 %v3752_v30, %v4640_v42 }
 0x95f   :  { %v3711_v36 = vadd.f32 %v3710_v54, %v3709_v61  ;;  %v10863_v34 = vpack.c.bf16 %v4634_v27, %v4631_v17  ;;  %v10893_v18 = vsub.f32 %v3750_v25, %v4634_v27  ;;  %v10956_v25 = vsub.f32 %v3756_v59, %v4652_v56 }
 0x960   :  { %8079 = vmatpush3.bf16.msra.mxu1 %v8078_v8  ;;  %v3666_v57 = vadd.f32 %v3665_v10, %v3664_v19  ;;  %v4637_v8 = vand.u32 4294901760, %v3751_v39  ;;  %v3757_v19 = vld [vmem:[%s11370_s17 + $0x150] sm:$0xff] }
 0x961   :  { %8081 = vmatprep.subr.bf16.mxu1 %v8080_v1  ;;  %v10875_v1 = vsub.f32 %v3747_v58, %v4625_v24  ;;  %v4655_v10 = vand.u32 4294901760, %v3757_v19  ;;  %v4735_v22 = vand.u32 4294901760, %v10893_v18 }
 0x962   :  { %v3667_v46 = vrot.slane %v3666_v57, 1  ;;  %v10880_v5 = vpack.c.bf16 %v4640_v42, %v4637_v8  ;;  %v10910_v44 = vsub.f32 %v3751_v39, %v4637_v8 }
 0x963   :  { %v4714_v0 = vand.u32 4294901760, %v10875_v1  ;;  %v10931_v35 = vpack.c.bf16 %v4658_v52, %v4655_v10  ;;  %v4736_v3 = vsub.f32 %v10893_v18, %v4735_v22  ;;  %v10960_v39 = vsub.f32 %v3757_v19, %v4655_v10 }
 0x964   :  { %8083 = vmatpush3.bf16.msra.mxu1 %v8082_v9  ;;  %v3668_v14 = vadd.f32 %v3667_v46, %v3666_v57  ;;  %v4742_v6 = vand.u32 4294901760, %v10910_v44 }
 0x965   :  { %8085 = vmatprep.subr.bf16.mxu1 %v8084_v50  ;;  %v10891_v50 = vsub.f32 %v3749_v7, %v4631_v17  ;;  %v4715_v4 = vsub.f32 %v10875_v1, %v4714_v0  ;;  %v4737_v27 = vand.u32 4294901760, %v4736_v3  ;;  %v4784_v19 = vand.u32 4294901760, %v10960_v39 }
 0x966   :  { %v3714_v43 = vsel %vm241_vm4, %v3668_v14, %v3711_v36  ;;  %v4743_v24 = vsub.f32 %v10910_v44, %v4742_v6 }
 0x967   :  { %v3760_v40 = vsel %vm3655_vm8, %v3714_v43, 0  ;;  %v4728_v61 = vand.u32 4294901760, %v10891_v50  ;;  %v4716_v58 = vand.u32 4294901760, %v4715_v4 }
 0x968   :  { %8087 = vmatpush3.bf16.msra.mxu1 %v8086_v37  ;;  %v10889_v33 = vand.u32 4294901760, %v3760_v40  ;;  %v4744_v30 = vand.u32 4294901760, %v4743_v24  ;;  %v8169_v24 = vpack.c.bf16 %v10877_v49, %v10875_v1 }
 0x969   :  { %8089 = vmatprep.subr.bf16.mxu1 %v8088_v48  ;;  %v4721_v48 = vand.u32 4294901760, %v10877_v49  ;;  %v4729_v54 = vsub.f32 %v10891_v50, %v4728_v61 }
 0x96a   :  { %v10908_v55 = vsub.f32 %v3760_v40, %v10889_v33 }
 0x96b   :  { %v4730_v17 = vand.u32 4294901760, %v4729_v54 }
 0x96c   :  { %8091 = vmatpush3.bf16.msra.mxu1 %v8090_v16  ;;  %v10914_v16 = vpack.c.bf16 %v4652_v56, %v4649_v23  ;;  %v4703_v28 = vand.u32 4294901760, %v10908_v55 }
 0x96d   :  { %8093 = vmatprep.subr.bf16.mxu1 %v8092_v12  ;;  %v4722_v12 = vsub.f32 %v10877_v49, %v4721_v48 }
 0x96e   :  { %v4704_v11 = vsub.f32 %v10908_v55, %v4703_v28 }
 0x96f   :  { %v4723_v31 = vand.u32 4294901760, %v4722_v12  ;;  %v4785_v12 = vsub.f32 %v10960_v39, %v4784_v19 }
 0x970   :  { %8095 = vmatpush3.bf16.msra.mxu1 %v8094_v47  ;;  %v10927_v47 = vsub.f32 %v3753_v20, %v4643_v21  ;;  %v4705_v14 = vand.u32 4294901760, %v4704_v11  ;;  %v10968_v20 = vsub.f32 %v3758_v45, %v4658_v52 }
 0x971   :  { %8097 = vmatprep.subr.bf16.mxu1 %v8096_v15  ;;  %v4749_v15 = vand.u32 4294901760, %v10912_v29  ;;  %v8151_v36 = vpack.c.bf16 %v4723_v31, %v4716_v58  ;;  %v4786_v54 = vand.u32 4294901760, %v4785_v12 }
 0x972   :  { %v4756_v46 = vand.u32 4294901760, %v10927_v47  ;;  %v4791_v45 = vand.u32 4294901760, %v10968_v20 }
 0x973   :  { %v4750_v26 = vsub.f32 %v10912_v29, %v4749_v15  ;;  %v8211_v1 = vpack.c.bf16 %v4749_v15, %v4742_v6 }
 0x974   :  { %8099 = vmatpush3.bf16.msra.mxu1 %v8098_v32  ;;  %v10946_v32 = vsub.f32 %v3755_v53, %v4649_v23  ;;  %v4757_v8 = vsub.f32 %v10927_v47, %v4756_v46  ;;  %v4792_v58 = vsub.f32 %v10968_v20, %v4791_v45 }
 0x975   :  { %8132 = vmatprep.subr.bf16.mxu1 %v11799_v41  ;;  %v4751_v43 = vand.u32 4294901760, %v4750_v26  ;;  %v8172_v26 = vpack.c.bf16 %v10893_v18, %v10891_v50 }
 0x976   :  { %v4770_v40 = vand.u32 4294901760, %v10946_v32  ;;  %v4758_v53 = vand.u32 4294901760, %v4757_v8  ;;  %v4793_v3 = vand.u32 4294901760, %v4792_v58  ;;  %v5257_v58 = vld [vmem:[%s11371_s18 + $0x30] sm:$0xff] }
 0x977   :  { %4515 = vmatmul.mubr.f32.vlgmr.msra.gmra.mrb[26].mxu1 %v10650_v13  ;;  %v3754_v13 = vld [vmem:[%s11370_s17 + $0x138] sm:$0xff] }
 0x978   :  { %8134 = vmatpush3.bf16.msra.mxu1 %v10851_v62  ;;  %7256 = vmatprep.mubr.msk.f32.mxu1 %vm8559_vm9, %v11736_v38  ;;  %v4646_v9 = vand.u32 4294901760, %v3754_v13  ;;  %v4771_v23 = vsub.f32 %v10946_v32, %v4770_v40  ;;  %v8166_v11 = vpack.c.bf16 %v4793_v3, %v4786_v54 }
 0x979   :  { %8135 = vmatprep.subr.bf16.mxu1 %v11799_v41 }
 0x97a   :  { %v10896_v37 = vpack.c.bf16 %v4646_v9, %v4643_v21  ;;  %v10929_v57 = vsub.f32 %v3754_v13, %v4646_v9  ;;  %v8154_v13 = vpack.c.bf16 %v4737_v27, %v4730_v17  ;;  %v4777_v21 = vand.u32 4294901760, %v10956_v25 }
 0x97b   :  { %v8157_v9 = vpack.c.bf16 %v4751_v43, %v4744_v30  ;;  %v4772_v52 = vand.u32 4294901760, %v4771_v23  ;;  %v8181_v27 = vpack.c.bf16 %v10956_v25, %v10946_v32  ;;  %v8205_v30 = vpack.c.bf16 %v4721_v48, %v4714_v0 }
 0x97c   :  { %8137 = vmatpush3.bf16.msra.mxu1 %v10863_v34  ;;  %v4763_v7 = vand.u32 4294901760, %v10929_v57  ;;  %v4778_v56 = vsub.f32 %v10956_v25, %v4777_v21  ;;  %v8178_v17 = vpack.c.bf16 %v10929_v57, %v10927_v47  ;;  %v8208_v43 = vpack.c.bf16 %v4735_v22, %v4728_v61 }
 0x97d   :  { %8138 = vmatprep.subr.bf16.mxu1 %v11799_v41  ;;  %v8217_v50 = vpack.c.bf16 %v4777_v21, %v4770_v40  ;;  %v5254_v40 = vld [vmem:[%s11371_s18 + $0x18] sm:$0xff] }
 0x97e   :  { %v4764_v42 = vsub.f32 %v10929_v57, %v4763_v7  ;;  %v4779_v4 = vand.u32 4294901760, %v4778_v56  ;;  %v8214_v49 = vpack.c.bf16 %v4763_v7, %v4756_v46 }
 0x980   :  { %8140 = vmatpush3.bf16.msra.mxu1 %v10880_v5  ;;  %v4765_v59 = vand.u32 4294901760, %v4764_v42  ;;  %v8163_v31 = vpack.c.bf16 %v4779_v4, %v4772_v52  ;;  %v5261_v52 = vld [vmem:[%s11371_s18 + $0x50] sm:$0xff] }
 0x981   :  { %8141 = vmatprep.subr.bf16.mxu1 %v11799_v41  ;;  %v5279_v12 = vand.u32 4294901760, %v5261_v52 }
 0x982   :  { %v8160_v10 = vpack.c.bf16 %v4765_v59, %v4758_v53 }
 0x984   :  { %8143 = vmatpush3.bf16.msra.mxu1 %v10896_v37 }
 0x985   :  { %8144 = vmatprep.subr.bf16.mxu1 %v11799_v41 }
 0x988   :  { %8146 = vmatpush3.bf16.msra.mxu1 %v10914_v16 }
 0x989   :  { %8147 = vmatprep.subr.bf16.mxu1 %v11799_v41 }
 0x98c   :  { %8149 = vmatpush3.bf16.msra.mxu1 %v10931_v35 }
 0x98d   :  { %8150 = vmatprep.subr.bf16.mxu1 %v11799_v41 }
 0x98f   :  { %7257 = vmatmul.mubr.f32.vlgmr.msra.gmra.mrb[28].mxu1 %v4705_v14  ;;  %v8184_v14 = vpack.c.bf16 %v10968_v20, %v10960_v39 }
 0x990   :  { %8152 = vmatpush3.bf16.msra.mxu1 %v8151_v36  ;;  %7283 = vmatprep.mubr.msk.f32.mxu1 %vm8559_vm9, %v11736_v38  ;;  %v8175_v36 = vpack.c.bf16 %v10912_v29, %v10910_v44 }
 0x991   :  { %8153 = vmatprep.subr.bf16.mxu1 %v11799_v41 }
 0x994   :  { %8155 = vmatpush3.bf16.msra.mxu1 %v8154_v13  ;;  %v5251_v13 = vld [vmem:[%s11371_s18] sm:$0xff] }
 0x995   :  { %8156 = vmatprep.subr.bf16.mxu1 %v11799_v41  ;;  %v5269_v21 = vand.u32 4294901760, %v5251_v13 }
 0x998   :  { %8158 = vmatpush3.bf16.msra.mxu1 %v8157_v9  ;;  %v5273_v9 = vand.u32 4294901760, %v5254_v40 }
 0x999   :  { %8159 = vmatprep.subr.bf16.mxu1 %v11799_v41 }
 0x99a   :  { %v11099_v56 = vpack.c.bf16 %v5273_v9, %v5269_v21 }
 0x99c   :  { %8161 = vmatpush3.bf16.msra.mxu1 %v8160_v10  ;;  %v5258_v10 = vld [vmem:[%s11371_s18 + $0x38] sm:$0xff] }
 0x99d   :  { %8162 = vmatprep.subr.bf16.mxu1 %v11799_v41  ;;  %v5275_v4 = vand.u32 4294901760, %v5258_v10 }
 0x9a0   :  { %8164 = vmatpush3.bf16.msra.mxu1 %v8163_v31  ;;  %v5260_v31 = vld [vmem:[%s11371_s18 + $0x48] sm:$0xff] }
 0x9a1   :  { %8165 = vmatprep.subr.bf16.mxu1 %v11799_v41 }
 0x9a4   :  { %8167 = vmatpush3.bf16.msra.mxu1 %v8166_v11  ;;  %v5277_v11 = vand.u32 4294901760, %v5257_v58 }
 0x9a5   :  { %8168 = vmatprep.subr.bf16.mxu1 %v11799_v41 }
 0x9a7   :  { %7284 = vmatmul.mubr.f32.vlgmr.msra.gmra.mrb[28].mxu1 %v10889_v33 }
 0x9a8   :  { %8170 = vmatpush3.bf16.msra.mxu1 %v8169_v24  ;;  %7310 = vmatprep.mubr.msk.f32.mxu1 %vm8559_vm9, %v11736_v38  ;;  %v5281_v24 = vand.u32 4294901760, %v5260_v31 }
 0x9a9   :  { %8171 = vmatprep.subr.bf16.mxu1 %v11799_v41 }
 0x9ac   :  { %8173 = vmatpush3.bf16.msra.mxu1 %v8172_v26 }
 0x9ad   :  { %8174 = vmatprep.subr.bf16.mxu1 %v11799_v41 }
 0x9b0   :  { %8176 = vmatpush3.bf16.msra.mxu1 %v8175_v36 }
 0x9b1   :  { %8177 = vmatprep.subr.bf16.mxu1 %v11799_v41 }
 0x9b4   :  { %8179 = vmatpush3.bf16.msra.mxu1 %v8178_v17  ;;  %v11123_v17 = vpack.c.bf16 %v5279_v12, %v5275_v4 }
 0x9b5   :  { %8180 = vmatprep.subr.bf16.mxu1 %v11799_v41 }
 0x9b8   :  { %8182 = vmatpush3.bf16.msra.mxu1 %v8181_v27  ;;  %v11125_v27 = vsub.f32 %v5258_v10, %v5275_v4 }
 0x9b9   :  { %8183 = vmatprep.subr.bf16.mxu1 %v11799_v41 }
 0x9bc   :  { %8185 = vmatpush3.bf16.msra.mxu1 %v8184_v14  ;;  %v11127_v14 = vsub.f32 %v5261_v52, %v5279_v12 }
 0x9bd   :  { %8186 = vmatprep.subr.bf16.mxu1 %v11799_v41 }
 0x9bf   :  { %7311 = vmatmul.mubr.f32.vlgmr.msra.gmra.mrb[28].mxu1 %v10908_v55  ;;  %v8220_v55 = vpack.c.bf16 %v4791_v45, %v4784_v19  ;;  %v11101_v19 = vsub.f32 %v5251_v13, %v5269_v21  ;;  %v11103_v45 = vsub.f32 %v5254_v40, %v5273_v9 }
 0x9c0   :  { %8188 = vmatpush3.bf16.msra.mxu1 %v10851_v62  ;;  %7337 = vmatprep.mubr.msk.f32.mxu1 %vm8559_vm9, %v11736_v38 }
 0x9c1   :  { %8189 = vmatprep.subr.bf16.mxu1 %v11799_v41  ;;  %v5359_v26 = vand.u32 4294901760, %v11101_v19  ;;  %v5371_v36 = vand.u32 4294901760, %v11103_v45 }
 0x9c3   :  { %v8274_v13 = vpack.c.bf16 %v5371_v36, %v5359_v26 }
 0x9c4   :  { %8191 = vmatpush3.bf16.msra.mxu1 %v10863_v34 }
 0x9c5   :  { %8192 = vmatprep.subr.bf16.mxu1 %v11799_v41 }
 0x9c8   :  { %8194 = vmatpush3.bf16.msra.mxu1 %v10880_v5 }
 0x9c9   :  { %8195 = vmatprep.subr.bf16.mxu1 %v11799_v41 }
 0x9cc   :  { %8197 = vmatpush3.bf16.msra.mxu1 %v10896_v37 }
 0x9cd   :  { %8198 = vmatprep.subr.bf16.mxu1 %v11799_v41 }
 0x9d0   :  { %8200 = vmatpush3.bf16.msra.mxu1 %v10914_v16 }
 0x9d1   :  { %8201 = vmatprep.subr.bf16.mxu1 %v11799_v41 }
 0x9d4   :  { %8203 = vmatpush3.bf16.msra.mxu1 %v10931_v35 }
 0x9d5   :  { %8204 = vmatprep.subr.bf16.mxu1 %v11799_v41 }
 0x9d7   :  { %7338 = vmatmul.mubr.f32.vlgmr.msra.gmra.mrb[28].mxu1 %v4703_v28 }
 0x9d8   :  { %8206 = vmatpush3.bf16.msra.mxu1 %v8205_v30  ;;  %7364 = vmatprep.mubr.msk.f32.mxu1 %vm8559_vm9, %v11736_v38 }
 0x9d9   :  { %8207 = vmatprep.subr.bf16.mxu1 %v11799_v41 }
 0x9dc   :  { %8209 = vmatpush3.bf16.msra.mxu1 %v8208_v43  ;;  %v11130_v43 = vpack.c.bf16 %v5281_v24, %v5277_v11 }
 0x9dd   :  { %8210 = vmatprep.subr.bf16.mxu1 %v11799_v41 }
 0x9e0   :  { %8212 = vmatpush3.bf16.msra.mxu1 %v8211_v1  ;;  %v11132_v1 = vsub.f32 %v5257_v58, %v5277_v11 }
 0x9e1   :  { %8213 = vmatprep.subr.bf16.mxu1 %v11799_v41 }
 0x9e4   :  { %8215 = vmatpush3.bf16.msra.mxu1 %v8214_v49  ;;  %v11134_v49 = vsub.f32 %v5260_v31, %v5281_v24  ;;  %v11800_v31 = vld [vmem:[#allocation5_spill] sm:$0xff] }
 0x9e5   :  { %8216 = vmatprep.subr.bf16.mxu1 %v11799_v41 }
 0x9e6   :  { %v7011_v18 = vpop.f32.mrb[20].mxu0 }
 0x9e7   :  { %v7012_v0 = vpop.f32.mrb[21].mxu0 }
 0x9e8   :  { %v7013_v48 = vadd.f32 %v7012_v0, %v7011_v18  ;;  %8218 = vmatpush3.bf16.msra.mxu1 %v8217_v50  ;;  %v5360_v0 = vsub.f32 %v11101_v19, %v5359_v26 }
 0x9e9   :  { %8219 = vmatprep.subr.bf16.mxu1 %v11799_v41 }
 0x9ea   :  { %v6906_v44 = vpop.f32.mrb[20].mxu1 }
 0x9eb   :  { %v6907_v29 = vpop.f32.mrb[21].mxu1 }
 0x9ec   :  { %v6908_v61 = vadd.f32 %v6907_v29, %v6906_v44  ;;  %8221 = vmatpush3.bf16.msra.mxu1 %v8220_v55  ;;  %v5377_v44 = vand.u32 4294901760, %v11125_v27  ;;  %v5389_v29 = vand.u32 4294901760, %v11127_v14 }
 0x9ed   :  { %8222 = vmatprep.subr.bf16.mxu1 %v11799_v41 }
 0x9ee   :  { %v8276_v40 = vpack.c.bf16 %v5389_v29, %v5377_v44 }
 0x9ef   :  { %7365 = vmatmul.mubr.f32.vlgmr.msra.gmra.mrb[28].mxu1 %v10889_v33 }
 0x9f0   :  { %8224 = vmatpush3.bf16.msra.mxu1 %v10851_v62  ;;  %7391 = vmatprep.mubr.msk.f32.mxu1 %vm8559_vm9, %v11736_v38 }
 0x9f1   :  { %8225 = vmatprep.subr.bf16.mxu1 %v11799_v41 }
 0x9f4   :  { %8227 = vmatpush3.bf16.msra.mxu1 %v10863_v34 }
 0x9f5   :  { %8228 = vmatprep.subr.bf16.mxu1 %v11799_v41 }
 0x9f8   :  { %8230 = vmatpush3.bf16.msra.mxu1 %v10880_v5 }
 0x9f9   :  { %8231 = vmatprep.subr.bf16.mxu1 %v11799_v41 }
 0x9fc   :  { %8233 = vmatpush3.bf16.msra.mxu1 %v10896_v37 }
 0x9fd   :  { %8234 = vmatprep.subr.bf16.mxu1 %v11799_v41 }
 0xa00   :  { %8236 = vmatpush3.bf16.msra.mxu1 %v10914_v16 }
 0xa01   :  { %8237 = vmatprep.subr.bf16.mxu1 %v11799_v41 }
 0xa04   :  { %8239 = vmatpush3.bf16.msra.mxu1 %v10931_v35  ;;  %v5255_v35 = vld [vmem:[%s11371_s18 + $0x20] sm:$0xff] }
 0xa05   :  { %v5271_v20 = vand.u32 4294901760, %v5255_v35 }
 0xa06   :  { %v7081_v62 = vpop.f32.mrb[22].mxu0 }
 0xa07   :  { %v7082_v22 = vpop.f32.mrb[23].mxu0  ;;  %7392 = vmatmul.mubr.f32.vlgmr.msra.gmra.mrb[28].mxu1 %v10889_v33  ;;  %v5252_v33 = vld [vmem:[%s11371_s18 + $0x8] sm:$0xff]  ;;  %v11097_v23 = vsub.f32 %v5255_v35, %v5271_v20  ;;  %v8260_v35 = vpack.c.bf16 %v11127_v14, %v11125_v27 }
 0xa08   :  { %v7083_v34 = vadd.f32 %v7082_v22, %v7081_v62  ;;  %v5267_v42 = vand.u32 4294901760, %v5252_v33  ;;  %v5383_v22 = vand.u32 4294901760, %v11132_v1 }
 0xa09   :  { %v5365_v3 = vand.u32 4294901760, %v11097_v23 }
 0xa0a   :  { %v6941_v28 = vpop.f32.mrb[22].mxu1  ;;  %v11093_v53 = vpack.c.bf16 %v5271_v20, %v5267_v42  ;;  %v11095_v59 = vsub.f32 %v5252_v33, %v5267_v42  ;;  %v8258_v33 = vpack.c.bf16 %v11103_v45, %v11101_v19  ;;  %v8262_v42 = vpack.c.bf16 %v11134_v49, %v11132_v1 }
 0xa0b   :  { %v6942_v47 = vpop.f32.mrb[23].mxu1  ;;  %v5366_v50 = vsub.f32 %v11097_v23, %v5365_v3 }
 0xa0c   :  { %v6943_v5 = vadd.f32 %v6942_v47, %v6941_v28  ;;  %8241 = vmatprep.subr.bf16.mxu0 %v11093_v53  ;;  %v5353_v54 = vand.u32 4294901760, %v11095_v59  ;;  %v5378_v47 = vsub.f32 %v11125_v27, %v5377_v44  ;;  %v5253_v44 = vld [vmem:[%s11371_s18 + $0x10] sm:$0xff] }
 0xa0d   :  { %8243 = vmatpush1.bf16.msra.mxu0 %v11099_v56  ;;  %v5367_v55 = vand.u32 4294901760, %v5366_v50 }
 0xa0e   :  { %v4103_v57 = vadd.f32 %v6943_v5, %v6908_v61  ;;  %v5354_v30 = vsub.f32 %v11095_v59, %v5353_v54  ;;  %8245 = vmatprep.subr.bf16.mxu0 %v11123_v17  ;;  %v5361_v61 = vand.u32 4294901760, %v5360_v0  ;;  %v5390_v5 = vsub.f32 %v11127_v14, %v5389_v29  ;;  %v11801_v14 = vld [vmem:[#allocation7_spill] sm:$0xff]  ;;  %v5256_v29 = vld [vmem:[%s11371_s18 + $0x28] sm:$0xff] }
 0xa0f   :  { %v8272_v20 = vpack.c.bf16 %v5365_v3, %v5353_v54  ;;  %v5222_v54 = vld [vmem:[%s11368_s15] sm:$0x1] }
 0xa10   :  { %v5355_v18 = vand.u32 4294901760, %v5354_v30 }
 0xa11   :  { %8247 = vmatpush1.bf16.msra.mxu0 %v11130_v43 }
 0xa12   :  { %v8248_v28 = vpack.c.bf16 %v5367_v55, %v5355_v18 }
 0xa14   :  { %8249 = vmatprep.subr.bf16.mxu0 %v8248_v28 }
 0xa2a   :  { %v6976_v6 = vpop.f32.mrb[24].mxu1 }
 0xa2b   :  { %v6977_v15 = vpop.f32.mrb[25].mxu1 }
 0xa2c   :  { %v6978_v37 = vadd.f32 %v6977_v15, %v6976_v6  ;;  %v5384_v6 = vsub.f32 %v11132_v1, %v5383_v22 }
 0xa2e   :  { %v4241_v32 = vadd.f32 %v6978_v37, %v4103_v57  ;;  %v5379_v37 = vand.u32 4294901760, %v5378_v47 }
 0xa30   :  { %v4349_v46 = vadd.f32 %v7013_v48, %v4241_v32  ;;  %v5372_v48 = vsub.f32 %v11103_v45, %v5371_v36  ;;  %v5391_v32 = vand.u32 4294901760, %v5390_v5 }
 0xa32   :  { %v5373_v62 = vand.u32 4294901760, %v5372_v48 }
 0xa34   :  { %v8250_v57 = vpack.c.bf16 %v5373_v62, %v5361_v61  ;;  %v5811_v61 = vand.u32 4294901760, %v5253_v44  ;;  %v5814_v62 = vand.u32 4294901760, %v5256_v29 }
 0xa36   :  { %v5891_v28 = vsub.f32 %v5253_v44, %v5811_v61  ;;  %v5898_v47 = vsub.f32 %v5256_v29, %v5814_v62  ;;  %v11805_v29 = vld [vmem:[#allocation38_spill] sm:$0xff] }
 0xa4a   :  { %v7046_v7 = vpop.f32.mrb[26].mxu1 }
 0xa4b   :  { %v7047_v16 = vpop.f32.mrb[27].mxu1 }
 0xa4c   :  { %v7048_v25 = vadd.f32 %v7047_v16, %v7046_v7  ;;  %v8252_v16 = vpack.c.bf16 %v5391_v32, %v5379_v37  ;;  %v5892_v37 = vand.u32 4294901760, %v5891_v28  ;;  %v5899_v32 = vand.u32 4294901760, %v5898_v47 }
 0xa4e   :  { %v4517_v39 = vadd.f32 %v7048_v25, %v4349_v46  ;;  %v5385_v46 = vand.u32 4294901760, %v5384_v6 }
 0xa50   :  { %v11079_v8 = vadd.f32 %v7083_v34, %v4517_v39  ;;  %v5395_v34 = vand.u32 4294901760, %v11134_v49  ;;  %v8256_v39 = vpack.c.bf16 %v11097_v23, %v11095_v59 }
 0xa52   :  { %v5396_v15 = vsub.f32 %v11134_v49, %v5395_v34  ;;  %v8278_v21 = vpack.c.bf16 %v5395_v34, %v5383_v22  ;;  %v5259_v22 = vld [vmem:[%s11371_s18 + $0x40] sm:$0xff]  ;;  %v5262_v34 = vld [vmem:[%s11371_s18 + $0x58] sm:$0xff] }
 0xa53   :  { %v5817_v5 = vand.u32 4294901760, %v5259_v22 }
 0xa54   :  { %v5397_v7 = vand.u32 4294901760, %v5396_v15 }
 0xa55   :  { %v5905_v6 = vsub.f32 %v5259_v22, %v5817_v5 }
 0xa56   :  { %v8254_v25 = vpack.c.bf16 %v5397_v7, %v5385_v46  ;;  %v8289_v46 = vpack.c.bf16 %v5814_v62, %v5811_v61  ;;  %v5893_v7 = vsub.f32 %v5891_v28, %v5892_v37  ;;  %v11806_v62 = vld [vmem:[#allocation36_spill] sm:$0xff] }
 0xada   :  { %v5209_v9 = vpop.f32.mrb[28].mxu1 }
 0xadb   :  { %v8324_v10 = vadd.f32 %v5209_v9, %v11079_v8  ;;  %v7393_v52 = vpop.f32.mrb[29].mxu1  ;;  %v5241_v8 = vld [vmem:[%s11369_s16] sm:$0x1]  ;;  %v8313_v9 = vpack.c.bf16 %v5899_v32, %v5892_v37 }
 0xadc   :  { %v8502_v52 = vld [vmem:[%s11372_s19 + $0x40] sm:$0xff]  }
 0xadd   :  { %v5213_v4 = vmul.f32 0.0028409092, %v8324_v10 }
 0xadf   :  { %v5214_v12 = vmul.f32 %v5213_v4, %v5213_v4 }
 0xae1   :  { %v5216_v59 = vrot.slane %v5214_v12, 7  ;;  %v8504_v12 = vld [vmem:[%s11372_s19 + $0x48] sm:$0xff]  }
 0xae3   :  { %v5218_v23 = vsub.f32 %v5213_v4, %v5216_v59  ;;  %v8507_v59 = vld [vmem:[%s11372_s19 + $0x10] sm:$0xff]  }
 0xae5   :  { %v5219_v58 = vmax.f32 %v5218_v23, 0.0  ;;  %v8508_v23 = vld [vmem:[%s11372_s19 + $0x58] sm:$0xff]  }
 0xae7   :  { %v5220_v19 = vadd.f32 1e-05, %v5219_v58  ;;  %v8509_v58 = vld [vmem:[%s11372_s19 + $0x18] sm:$0xff]  }
 0xae9   :  { %8528 = vrsqrt.f32 %v5220_v19  ;;  %v8510_v19 = vld [vmem:[%s11372_s19 + $0x60] sm:$0xff]  }
 0xaf3   :  { %v8529_v45 = vpop.eup %8528 }
 0xaf4   :  { %v5230_v11 = vrot.slane %v8529_v45, %v11800_v31  ;;  %v8511_v45 = vld [vmem:[%s11372_s19 + $0x20] sm:$0xff]  }
 0xaf6   :  { %v5231_v24 = vcombine.high %v5230_v11, %v5230_v11  ;;  %v8513_v11 = vld [vmem:[%s11372_s19 + $0x28] sm:$0xff]  }
 0xaf8   :  { %v5238_v3 = vrot.slane %v5231_v24, %v11800_v31  ;;  %v8512_v31 = vld [vmem:[%s11372_s19 + $0x68] sm:$0xff]   ;;  %v8514_v24 = vld [vmem:[%s11372_s19 + $0x70] sm:$0xff]  }
 0xafa   :  { %v5240_v26 = vmul.f32 %v5238_v3, %v5222_v54  ;;  %v8515_v54 = vld [vmem:[%s11372_s19 + $0x30] sm:$0xff]   ;;  %v8516_v3 = vld [vmem:[%s11372_s19 + $0x78] sm:$0xff]  }
 0xafc   :  { %v5242_v36 = vmul.f32 %v5240_v26, %v5213_v4  ;;  %v8503_v4 = vld [vmem:[%s11372_s19] sm:$0xff]  }
 0xafe   :  { %v5243_v27 = vsub.f32 %v5241_v8, %v5242_v36  ;;  %v8518_v8 = vld [vmem:[%s11372_s19 + $0x80] sm:$0xff]  }
 0xb00   :  { %v5248_v30 = vrot.slane %v5243_v27, %v11801_v14 }
 0xb02   :  { %v5250_v1 = vsel %vm241_vm4, %v5240_v26, %v5248_v30  ;;  %v8517_v26 = vld [vmem:[%s11372_s19 + $0x38] sm:$0xff]  }
 0xb03   :  { %v5265_v49 = vsel %vm5263_vm10, %v5250_v1, 0 }
 0xb04   :  { %v11169_v50 = vand.u32 4294901760, %v5265_v49 }
 0xb06   :  { %v11172_v18 = vsub.f32 %v5265_v49, %v11169_v50  ;;  %v11802_v49 = vld [vmem:[#allocation37_spill] sm:$0xff] }
 0xb08   :  { %v11175_v0 = vand.u32 4294901760, %v11172_v18 }
 0xb0a   :  { %v5343_v48 = vsub.f32 %v11172_v18, %v11175_v0 }
 0xb0c   :  { %v11179_v55 = vand.u32 4294901760, %v5343_v48  ;;  %v11804_v48 = vld [vmem:[#allocation8_spill] sm:$0xff] }
 0xb0e   :  { %5345 = vmatmul.mubr.f32.vlgmr.msra.gmra.mrb[24].mxu0 %v11179_v55 }
 0xb0f   :  { %8251 = vmatpush1.bf16.msra.mxu0 %v8250_v57  ;;  %5455 = vmatprep.mubr.f32.mxu0 %v11736_v38  ;;  %v5820_v57 = vand.u32 4294901760, %v5262_v34 }
 0xb10   :  { %8253 = vmatprep.subr.bf16.mxu0 %v8252_v16  ;;  %v5900_v16 = vsub.f32 %v5898_v47, %v5899_v32 }
 0xb11   :  { %v5912_v15 = vsub.f32 %v5262_v34, %v5820_v57  ;;  %v11807_v34 = vld [vmem:[#allocation40_spill] sm:$0xff] }
 0xb13   :  { %8255 = vmatpush1.bf16.msra.mxu0 %v8254_v25  ;;  %v5906_v25 = vand.u32 4294901760, %v5905_v6 }
 0xb14   :  { %8257 = vmatprep.subr.bf16.mxu0 %v8256_v39  ;;  %v5913_v39 = vand.u32 4294901760, %v5912_v15 }
 0xb16   :  { %5457 = vmatmul.mubr.f32.vlgmr.msra.gmra.mrb[24].mxu0 %v11169_v50  ;;  %v8316_v10 = vpack.c.bf16 %v5913_v39, %v5906_v25 }
 0xb17   :  { %8259 = vmatpush1.bf16.msra.mxu0 %v8258_v33  ;;  %5543 = vmatprep.mubr.f32.mxu0 %v11736_v38  ;;  %v5901_v33 = vand.u32 4294901760, %v5900_v16 }
 0xb18   :  { %8261 = vmatprep.subr.bf16.mxu0 %v8260_v35  ;;  %v5907_v35 = vsub.f32 %v5905_v6, %v5906_v25  ;;  %v11809_v25 = vld [vmem:[#allocation39_spill] sm:$0xff] }
 0xb1b   :  { %8263 = vmatpush1.bf16.msra.mxu0 %v8262_v42  ;;  %v5908_v42 = vand.u32 4294901760, %v5907_v35 }
 0xb1c   :  { %8265 = vmatprep.subr.bf16.mxu0 %v11093_v53 }
 0xb1e   :  { %5546 = vmatmul.mubr.f32.vlgmr.msra.gmra.mrb[24].mxu0 %v11172_v18 }
 0xb1f   :  { %8267 = vmatpush1.bf16.msra.mxu0 %v11099_v56  ;;  %5624 = vmatprep.mubr.f32.mxu0 %v11736_v38 }
 0xb20   :  { %8269 = vmatprep.subr.bf16.mxu0 %v11123_v17 }
 0xb23   :  { %8271 = vmatpush1.bf16.msra.mxu0 %v11130_v43 }
 0xb24   :  { %8273 = vmatprep.subr.bf16.mxu0 %v8272_v20 }
 0xb26   :  { %5628 = vmatmul.mubr.f32.vlgmr.msra.gmra.mrb[24].mxu0 %v11175_v0 }
 0xb27   :  { %8275 = vmatpush1.bf16.msra.mxu0 %v8274_v13  ;;  %5722 = vmatprep.mubr.f32.mxu0 %v11736_v38 }
 0xb28   :  { %8277 = vmatprep.subr.bf16.mxu0 %v8276_v40  ;;  %v8301_v40 = vpack.c.bf16 %v5898_v47, %v5891_v28  ;;  %v11808_v47 = vld [vmem:[#allocation42_spill] sm:$0xff] }
 0xb2b   :  { %8279 = vmatpush1.bf16.msra.mxu0 %v8278_v21  ;;  %v8304_v21 = vpack.c.bf16 %v5912_v15, %v5905_v6 }
 0xb2c   :  { %8281 = vmatprep.subr.bf16.mxu0 %v11093_v53  ;;  %v8292_v53 = vpack.c.bf16 %v5820_v57, %v5817_v5 }
 0xb2e   :  { %5724 = vmatmul.mubr.f32.vlgmr.msra.gmra.mrb[24].mxu0 %v11169_v50 }
 0xb2f   :  { %8283 = vmatpush1.bf16.msra.mxu0 %v11099_v56  ;;  %5802 = vmatprep.mubr.f32.mxu0 %v11736_v38  ;;  %v5894_v56 = vand.u32 4294901760, %v5893_v7 }
 0xb30   :  { %8285 = vmatprep.subr.bf16.mxu0 %v11123_v17  ;;  %v5914_v17 = vsub.f32 %v5912_v15, %v5913_v39 }
 0xb32   :  { %v5915_v20 = vand.u32 4294901760, %v5914_v17 }
 0xb33   :  { %8287 = vmatpush1.bf16.msra.mxu0 %v11130_v43  ;;  %v8295_v43 = vpack.c.bf16 %v5901_v33, %v5894_v56  ;;  %v8519_v33 = vld [vmem:[%s11372_s19 + $0x88] sm:$0xff]  }
 0xb34   :  { %8288 = vmatprep.subr.bf16.mxu0 %v11799_v41  ;;  %v8298_v13 = vpack.c.bf16 %v5915_v20, %v5908_v42  ;;  %v8520_v42 = vld [vmem:[%s11372_s19 + $0x90] sm:$0xff]  }
 0xb36   :  { %5804 = vmatmul.mubr.f32.vlgmr.msra.gmra.mrb[24].mxu0 %v11169_v50 }
 0xb37   :  { %8290 = vmatpush3.bf16.msra.mxu0 %v8289_v46  ;;  %7402 = vmatprep.mubr.msk.f32.mxu0 %vm8559_vm9, %v11736_v38 }
 0xb38   :  { %8291 = vmatprep.subr.bf16.mxu0 %v11799_v41 }
 0xb3b   :  { %8293 = vmatpush3.bf16.msra.mxu0 %v8292_v53 }
 0xb3c   :  { %8294 = vmatprep.subr.bf16.mxu0 %v11799_v41 }
 0xb3e   :  { %7403 = vmatmul.mubr.f32.vlgmr.msra.gmra.mrb[26].mxu0 %v11179_v55 }
 0xb3f   :  { %8296 = vmatpush3.bf16.msra.mxu0 %v8295_v43  ;;  %7413 = vmatprep.mubr.msk.f32.mxu0 %vm8559_vm9, %v11736_v38 }
 0xb40   :  { %8297 = vmatprep.subr.bf16.mxu0 %v11799_v41 }
 0xb43   :  { %8299 = vmatpush3.bf16.msra.mxu0 %v8298_v13  ;;  %v8521_v13 = vld [vmem:[%s11372_s19 + $0x98] sm:$0xff]  }
 0xb44   :  { %8300 = vmatprep.subr.bf16.mxu0 %v11799_v41 }
 0xb46   :  { %7414 = vmatmul.mubr.f32.vlgmr.msra.gmra.mrb[26].mxu0 %v11169_v50 }
 0xb47   :  { %8302 = vmatpush3.bf16.msra.mxu0 %v8301_v40  ;;  %7424 = vmatprep.mubr.msk.f32.mxu0 %vm8559_vm9, %v11736_v38  ;;  %v8522_v40 = vld [vmem:[%s11372_s19 + $0xa0] sm:$0xff]  }
 0xb48   :  { %8303 = vmatprep.subr.bf16.mxu0 %v11799_v41 }
 0xb4b   :  { %8305 = vmatpush3.bf16.msra.mxu0 %v8304_v21  ;;  %v8523_v21 = vld [vmem:[%s11372_s19 + $0xa8] sm:$0xff]  }
 0xb4c   :  { %8306 = vmatprep.subr.bf16.mxu0 %v11799_v41 }
 0xb4e   :  { %7425 = vmatmul.mubr.f32.vlgmr.msra.gmra.mrb[26].mxu0 %v11172_v18  ;;  %v11803_v18 = vld [vmem:[#allocation35_spill] sm:$0xff] }
 0xb4f   :  { %8308 = vmatpush3.bf16.msra.mxu0 %v8289_v46  ;;  %7435 = vmatprep.mubr.msk.f32.mxu0 %vm8559_vm9, %v11736_v38 }
 0xb50   :  { %8309 = vmatprep.subr.bf16.mxu0 %v11799_v41 }
 0xb53   :  { %8311 = vmatpush3.bf16.msra.mxu0 %v8292_v53 }
 0xb54   :  { %8312 = vmatprep.subr.bf16.mxu0 %v11799_v41 }
 0xb56   :  { %7436 = vmatmul.mubr.f32.vlgmr.msra.gmra.mrb[26].mxu0 %v11175_v0 }
 0xb57   :  { %8314 = vmatpush3.bf16.msra.mxu0 %v8313_v9  ;;  %7446 = vmatprep.mubr.msk.f32.mxu0 %vm8559_vm9, %v11736_v38 }
 0xb58   :  { %8315 = vmatprep.subr.bf16.mxu0 %v11799_v41 }
 0xb5b   :  { %8317 = vmatpush3.bf16.msra.mxu0 %v8316_v10 }
 0xb5c   :  { %8318 = vmatprep.subr.bf16.mxu0 %v11799_v41 }
 0xb5e   :  { %7447 = vmatmul.mubr.f32.vlgmr.msra.gmra.mrb[26].mxu0 %v11169_v50 }
 0xb5f   :  { %8320 = vmatpush3.bf16.msra.mxu0 %v8289_v46  ;;  %7457 = vmatprep.mubr.msk.f32.mxu0 %vm8559_vm9, %v11736_v38  ;;  %v8505_v38 = vld [vmem:[%s11372_s19 + $0x8] sm:$0xff]  }
 0xb60   :  { %8321 = vmatprep.subr.bf16.mxu0 %v11799_v41  ;;  %v8506_v41 = vld [vmem:[%s11372_s19 + $0x50] sm:$0xff]  }
 0xb63   :  { %8323 = vmatpush3.bf16.msra.mxu0 %v8292_v53  ;;  %v11810_v53 = vld [vmem:[#allocation41_spill] sm:$0xff] }
 0xb64   :  { %7192 = vmatprep.subr.bf16.mxu0 %v8502_v52 }
 0xb66   :  { %7458 = vmatmul.mubr.f32.vlgmr.msra.gmra.mrb[26].mxu0 %v11169_v50 }
 0xb67   :  { %7193 = vmatpush3.bf16.msra.mxu0 %v8503_v4 }
 0xb68   :  { %7194 = vmatprep.subr.bf16.mxu0 %v8504_v12 }
 0xb6b   :  { %7195 = vmatpush3.bf16.msra.mxu0 %v8505_v38 }
 0xb6c   :  { %7196 = vmatprep.subr.bf16.mxu0 %v8506_v41 }
 0xb6f   :  { %7197 = vmatpush3.bf16.msra.mxu0 %v8507_v59 }
 0xb70   :  { %7198 = vmatprep.subr.bf16.mxu0 %v8508_v23 }
 0xb73   :  { %7199 = vmatpush3.bf16.msra.mxu0 %v8509_v58 }
 0xb74   :  { %7200 = vmatprep.subr.bf16.mxu0 %v8510_v19 }
 0xb77   :  { %7201 = vmatpush3.bf16.msra.mxu0 %v8511_v45 }
 0xb78   :  { %7202 = vmatprep.subr.bf16.mxu0 %v8512_v31 }
 0xb7b   :  { %7203 = vmatpush3.bf16.msra.mxu0 %v8513_v11 }
 0xb7c   :  { %7204 = vmatprep.subr.bf16.mxu0 %v8514_v24 }
 0xb7f   :  { %7205 = vmatpush3.bf16.msra.mxu0 %v8515_v54 }
 0xb80   :  { %7206 = vmatprep.subr.bf16.mxu0 %v8516_v3 }
 0xb83   :  { %7207 = vmatpush3.bf16.msra.mxu0 %v8517_v26 }
 0xb84   :  { %7460 = vmatprep.subr.bf16.mxu0 %v8518_v8 }
 0xc09   :  { %v5805_v36 = vpop.f32.mrb[24].mxu0 }
 0xc0a   :  { %v6298_v27 = vrot.slane %v5805_v36, %v11801_v14  ;;  %v5807_v30 = vpop.f32.mrb[25].mxu0  ;;  %v6322_v55 = vrot.slane %v5805_v36, %v11804_v48 }
 0xc0b   :  { %v6302_v1 = vrot.slane %v5807_v30, %v11801_v14  ;;  %v6326_v44 = vrot.slane %v5807_v30, %v11804_v48  ;;  %v6847_v30 = vld [vmem:[%s11373_s20] ss:$0 sm:$0xff]  ;;  %s8561_s20 = smov [#allocation2]  }
 0xc0c   :  { %v6307_v50 = vmul.f32 %v6298_v27, %v11802_v49  ;;  %v6310_v0 = vmul.f32 %v6298_v27, %v11803_v18  ;;  %v6313_v39 = vmul.f32 %v6298_v27, %v11809_v25  ;;  %v6316_v56 = vmul.f32 %v6298_v27, %v11810_v53  ;;  %s6758_s1 = sshll.u32 %s8561_s20, 4  ;;  %s6759_s1 = int_to_ptr.vmem [resolvable:$true] %s6758_s1 }
 0xc0d   :  { %v6308_v61 = vmul.f32 %v6302_v1, %v11805_v29  ;;  %v6311_v22 = vmul.f32 %v6302_v1, %v11806_v62  ;;  %v6314_v28 = vmul.f32 %v6302_v1, %v11807_v34  ;;  %v6317_v5 = vmul.f32 %v6302_v1, %v11808_v47  ;;  %s8530_s28 = scalar_lea.vmem %s6759_s1, 512  ;;  %p8535_p1 = scmp.lt.s32.totalorder %s6759_s1, %s6759_s1 }
 0xc0e   :  { %v6331_v57 = vadd.f32 %v6322_v55, %v6307_v50  ;;  %v6334_v6 = vadd.f32 %v6322_v55, %v6310_v0  ;;  %v6337_v17 = vadd.f32 %v6322_v55, %v6313_v39  ;;  %v6340_v43 = vadd.f32 %v6322_v55, %v6316_v56  ;;  %p8531_p0 = scmp.ne.s32.totalorder %s6759_s1, %s8530_s28  ;;  %p8536_p2 = scmp.lt.s32.totalorder %s8530_s28, %s8530_s28 }
 0xc0f   :  { %v6332_v15 = vadd.f32 %v6326_v44, %v6308_v61  ;;  %v6335_v37 = vadd.f32 %v6326_v44, %v6311_v22  ;;  %v6338_v32 = vadd.f32 %v6326_v44, %v6314_v28  ;;  %v6341_v46 = vadd.f32 %v6326_v44, %v6317_v5 }
 0xc10   :  { %v6343_v16 = vpack.c.bf16 %v6334_v6, %v6331_v57  ;;  %v6346_v20 = vpack.c.bf16 %v6340_v43, %v6337_v17  ;;  %p8537_p3 = por %p8536_p2, %p8535_p1 }
 0xc11   :  { %v6344_v7 = vpack.c.bf16 %v6335_v37, %v6332_v15  ;;  %v6347_v35 = vpack.c.bf16 %v6341_v46, %v6338_v32 }
 0xc12   :  { %p8538_p4 = pnand %p8537_p3, %p8531_p0 }
 0xc13   :  { %6570 = vmatprep.mubr.bf16.mxu0 %v6344_v7 }
 0xc14   :  { %6571 = vmatmul.mubr.bf16.vlgmr.msra.gmra.mrb[28].mxu0 %v6343_v16 }
 0xc15   :  { %6578 = vmatprep.mubr.bf16.mxu0 %v6347_v35  ;;  %7461 = vmatpush3.bf16.msra.mxu0 %v8518_v8 }
 0xc16   :  { %7462 = vmatprep.subr.bf16.mxu0 %v8519_v33 }
 0xc19   :  { %7463 = vmatpush3.bf16.msra.mxu0 %v8519_v33 }
 0xc1a   :  { %7464 = vmatprep.subr.bf16.mxu0 %v8520_v42 }
 0xc1c   :  { %6579 = vmatmul.mubr.bf16.gmra.mrb[32].mxu0 %v6346_v20 }
 0xc1d   :  { %7465 = vmatpush3.bf16.msra.mxu0 %v8520_v42 }
 0xc1e   :  { %7466 = vmatprep.subr.bf16.mxu0 %v8521_v13 }
 0xc21   :  { %7467 = vmatpush3.bf16.msra.mxu0 %v8521_v13 }
 0xc22   :  { %7468 = vmatprep.subr.bf16.mxu0 %v8522_v40 }
 0xc25   :  { %7469 = vmatpush3.bf16.msra.mxu0 %v8522_v40 }
 0xc26   :  { %7470 = vmatprep.subr.bf16.mxu0 %v8523_v21 }
 0xc29   :  { %7471 = vmatpush3.bf16.msra.mxu0 %v8523_v21 }
 0xc39   :  { %v6291_v9 = vpop.f32.mrb[26].mxu0 }
 0xc3a   :  { %v6306_v10 = vrot.slane %v6291_v9, %v11801_v14  ;;  %v7459_v52 = vpop.f32.mrb[27].mxu0  ;;  %v6330_v4 = vrot.slane %v6291_v9, %v11804_v48 }
 0xc3c   :  { %v6309_v12 = vmul.f32 %v6306_v10, %v10732_v2  ;;  %v6312_v38 = vmul.f32 %v6306_v10, %v10730_v60  ;;  %v6315_v41 = vmul.f32 %v6306_v10, %v10734_v51  ;;  %v6318_v59 = vmul.f32 %v6306_v10, %v10748_v63 }
 0xc3e   :  { %v6339_v23 = vadd.f32 %v6330_v4, %v6315_v41  ;;  %v6342_v58 = vadd.f32 %v6330_v4, %v6318_v59  ;;  %v6333_v19 = vadd.f32 %v6330_v4, %v6309_v12  ;;  %v6336_v45 = vadd.f32 %v6330_v4, %v6312_v38 }
 0xc40   :  { %v6348_v31 = vpack.c.bf16 %v6342_v58, %v6339_v23  ;;  %v6345_v11 = vpack.c.bf16 %v6336_v45, %v6333_v19 }
 0xc42   :  { %7472 = vmatprep.mubr.msk.bf16.mxu0 %vm3655_vm8, %v6345_v11 }
 0xc43   :  { %7473 = vmatmul.mubr.msk.bf16.vlgmr.msra.gmra.mrb[36].mxu0 %vm3655_vm8, %v6348_v31 }
 0xce7   :  { %v7208_v14 = vpop.f32.mrb[28].mxu0 }
 0xce8   :  { %v7209_v24 = vpop.f32.mrb[29].mxu0 }
 0xce9   :  { %v7210_v54 = vadd.f32 %v7209_v24, %v7208_v14  ;;  %v7211_v2 = vpop.f32.mrb[30].mxu0 }
 0xcea   :  { %v7212_v3 = vpop.f32.mrb[31].mxu0 }
 0xceb   :  { %v7213_v60 = vadd.f32 %v7212_v3, %v7211_v2  ;;  %v6573_v50 = vadd.f32 %v7210_v54, %v6847_v30 }
 0xced   :  { %v6576_v29 = vadd.f32 %v7213_v60, %v6847_v30 }
 0xcef   :  { %v7214_v26 = vpop.f32.mrb[32].mxu0 }
 0xcf0   :  { %v7215_v51 = vpop.f32.mrb[33].mxu0 }
 0xcf1   :  { %v7216_v8 = vadd.f32 %v7215_v51, %v7214_v26  ;;  %v7217_v63 = vpop.f32.mrb[34].mxu0 }
 0xcf2   :  { %v7218_v36 = vpop.f32.mrb[35].mxu0 }
 0xcf3   :  { %v7219_v27 = vadd.f32 %v7218_v36, %v7217_v63  ;;  %v6581_v1 = vadd.f32 %v7216_v8, %v6847_v30 }
 0xcf5   :  { %v6584_v48 = vadd.f32 %v7219_v27, %v6847_v30 }
 0xd16   :  { %v7474_v49 = vpop.f32.mrb[36].mxu0 }
 0xd17   :  { %v6630_v18 = vadd.f32 %v7474_v49, %v6581_v1  ;;  %v6621_v0 = vpop.f32.mrb[37].mxu0 }
 0xd18   :  { %v6622_v55 = vadd.f32 %v6621_v0, %v6573_v50  ;;  %v7475_v44 = vpop.f32.mrb[38].mxu0 }
 0xd19   :  { %v6633_v61 = vadd.f32 %v7475_v44, %v6584_v48  ;;  %v6624_v62 = vpop.f32.mrb[39].mxu0  ;;  %v6638_v34 = vmax.f32 %v6630_v18, 0.0 }
 0xd1a   :  { %v6625_v22 = vadd.f32 %v6624_v62, %v6576_v29  ;;  %v6636_v47 = vmax.f32 %v6622_v55, 0.0 }
 0xd1b   :  { %v6639_v28 = vmax.f32 %v6633_v61, 0.0 }
 0xd1c   :  { %v6637_v5 = vmax.f32 %v6625_v22, 0.0 }
 0xd1d   :  { %v6641_v57 = vpack.c.bf16 %v6639_v28, %v6638_v34 }
 0xd1e   :  { %v6640_v6 = vpack.c.bf16 %v6637_v5, %v6636_v47 }
 0xd20   :  { %6644 = vrot.lane.b32.xlu0 %v6640_v6, %s8560_s23  ;;  %7480 = vmatprep.mubr.msk.bf16.mxu1 %vm5263_vm10, %v6640_v6 }
 0xd24   :  { %6646 = vrot.lane.b32.xlu0 %v6641_v57, %s8560_s23 }
 0xd92   :  { %v6645_v15 = vpop.permute.xlu0 %6644 }
 0xd93   :  { %v6655_v37 = vsel %vm5263_vm10, %v6645_v15, 0  ;;  %8395 = vmatprep.subr.msk.bf16.mxu1 %vm5263_vm10, %v6645_v15 }
 0xd94   :  { %7477 = vmatpush3.bf16.xpose.msra.mxu1 %v6655_v37 }
 0xd96   :  { %v6647_v32 = vpop.permute.xlu0 %6646 }
 0xd97   :  { %8396 = vmatprep.subr.msk.bf16.mxu1 %vm5263_vm10, %v6647_v32  ;;  %v6658_v46 = vsel %vm5263_vm10, %v6647_v32, 0 }
 0xd9c   :  { %7479 = vmatpush3.bf16.xpose.msra.mxu1 %v6658_v46 }
 0xda3   :  { %7481 = vmatmul.mubr.msk.bf16.vlgmr.msra.gmra.mrb[32].mxu1 %vm5263_vm10, %v6641_v57 }
 0xe76   :  { %v7482_v7 = vpop.f32.mrb[32].mxu1 }
 0xe77   :  { %v6694_v16 = vpop.f32.mrb[33].mxu1 }
 0xe78   :  { %6709 = vxpose.xlu1.b32.start [1/4] (short) (narrow) %v6694_v16, 32  ;;  %v7483_v25 = vpop.f32.mrb[34].mxu1 }
 0xe79   :  { %v6697_v39 = vpop.f32.mrb[35].mxu1 }
 0xe7c   :  { %6710 = vxpose.xlu1.b32.cont [2/4] (short) (narrow) %v6697_v39, 32 }
 0xe80   :  { %6711 = vxpose.xlu1.b32.cont [3/4] (short) (narrow) %v7482_v7, 32 }
 0xe84   :  { %6712 = vxpose.xlu1.b32.end [4/4] (short) (narrow) %v7483_v25, 32 }
 0xef8   :  { %v6725_v53 = vpop.trf.xlu1 }
 0xef9   :  { %v6741_v56 = vsub.f32 %v6694_v16, %v6725_v53 }
 0xefb   :  { %v6745_v33 = vmax.f32 %v6741_v56, 0.0 }
 0xefc   :  { %v6726_v35 = vpop.trf.xlu1 }
 0xefd   :  { %6749 = vst.msk [vmem:[#allocation2] sm:$0xff] %vm5263_vm10, %v6745_v33  ;;  %v6742_v17 = vsub.f32 %v6697_v39, %v6726_v35 }
 0xeff   :  { %v6746_v43 = vmax.f32 %v6742_v17, 0.0 }
 0xf00   :  { %v6727_v42 = vpop.trf.xlu1 }
 0xf01   :  { %6750 = vst.msk [vmem:[#allocation2 + $0x8] sm:$0xff] %vm5263_vm10, %v6746_v43  ;;  %v6743_v20 = vsub.f32 %v7482_v7, %v6727_v42 }
 0xf03   :  { %v6747_v13 = vmax.f32 %v6743_v20, 0.0 }
 0xf04   :  { %v6728_v40 = vpop.trf.xlu1 }
 0xf05   :  { %6751 = vst.msk [vmem:[#allocation2 + $0x10] sm:$0xff] %vm5263_vm10, %v6747_v13  ;;  %v6744_v21 = vsub.f32 %v7483_v25, %v6728_v40 }
 0xf07   :  { %v6748_v9 = vmax.f32 %v6744_v21, 0.0 }
 0xf09   :  { %6752 = vst.msk [vmem:[#allocation2 + $0x18] sm:$0xff] %vm5263_vm10, %v6748_v9 }
 0xf0a   :  { %8541 = shalt.err (!%p8538_p4)
}
 0xf0b   :  { %s8542_s24 = scalar_lea.hbm %s11374_s21, 512 }
 0xf0c   :  { %p8543_p5 = scmp.ne.s32.totalorder %s11374_s21, %s8542_s24  ;;  %p8546_p6 = scmp.lt.u32.totalorder %s8542_s24, %s11374_s21 }
 0xf0e   :  { %p8548_p7 = pnand %p8546_p6, %p8543_p5 }
 0xf10   :  { %8551 = shalt.err (!%p8548_p7)
}
 0xf11   :  { %s8562_s17 = smov 128   ;;  %s8563_s18 = smov 8  }
 0xf12   :  { %6764 = dma.vmem_to_hbm [thread:$0]  %s6759_s1, 512, %s11374_s21, [#allocation3], %s8562_s17, %s8562_s17, %s8563_s18  }
 0xf13   :  { %8552 = dma.done.wait [#allocation3], 512  }
 0xf14   :  { %8553 = vsyncadd [#allocation3], 4294966784 }
 0xf15   :  { %6768 = vsyncpa [#allocation3], 1 }

</bundles_post_ra>
